<compile_context>
chip_gen: v5e
topology: v5e:2x2
jax: 0.10.0
libtpu: 0.0.40
codegen_flags: <defaults>
</compile_context>

<pallas_src>
import numpy as np
import jax
import jax.numpy as jnp
from jax.experimental import pallas as pl
from jax.experimental.pallas import tpu as pltpu

# ----------------------- speechbrain default hyper-params -----------------------
SAMPLE_RATE = 16000
N_FFT = 400
WIN_LENGTH = int(round(SAMPLE_RATE / 1000.0 * 25))   # 400 samples
HOP_LENGTH = int(round(SAMPLE_RATE / 1000.0 * 10))   # 160 samples
N_FREQ = N_FFT // 2 + 1                              # 201 (onesided)
NF_PAD = 256                                         # freq bins padded to lane tiles
N_MELS = 23
N_MFCC = 20
F_MIN, F_MAX = 0.0, SAMPLE_RATE / 2.0
LEFT_FRAMES, RIGHT_FRAMES = 5, 5
CTX = LEFT_FRAMES + RIGHT_FRAMES + 1                 # 11
DELTA_WIN = 5
TOP_DB = 80.0
AMIN = 1e-10
DB_MULTIPLIER = 10.0                                 # power_spectrogram=2
N_OUT = 3 * N_MFCC * CTX                             # 660


# ----------------------- deterministic parameter construction -------------------
def build_stft_bases():
    """Windowed real/imag DFT bases: (N_FFT, N_FREQ)."""
    n = np.arange(N_FFT, dtype=np.float64)
    k = np.arange(N_FREQ, dtype=np.float64)
    # torch.hamming_window(400, periodic=True)
    window = 0.54 - 0.46 * np.cos(2.0 * np.pi * n / N_FFT)
    ang = 2.0 * np.pi * np.outer(n, k) / N_FFT
    cos_b = (window[:, None] * np.cos(ang)).astype(np.float32)
    sin_b = (window[:, None] * np.sin(ang)).astype(np.float32)
    return cos_b, sin_b


def build_mel_fbank():
    """Triangular mel filterbank matrix (N_FREQ, N_MELS), frozen (Hz) params."""
    def to_mel(hz):
        return 2595.0 * np.log10(1.0 + hz / 700.0)

    def to_hz(mel):
        return 700.0 * (10.0 ** (mel / 2595.0) - 1.0)

    mel = np.linspace(to_mel(F_MIN), to_mel(F_MAX), N_MELS + 2)
    hz = to_hz(mel)
    band = (hz[1:] - hz[:-1])[:-1]          # (N_MELS,)
    f_central = hz[1:-1]                    # (N_MELS,)
    all_freqs = np.linspace(0, SAMPLE_RATE // 2, N_FREQ)
    slope = (all_freqs[None, :] - f_central[:, None]) / band[:, None]
    tri = np.maximum(0.0, np.minimum(slope + 1.0, -slope + 1.0))   # (N_MELS, N_FREQ)
    return tri.T.astype(np.float32)         # (N_FREQ, N_MELS)


def build_dct_mat():
    """Ortho-normalized DCT-II matrix (N_MELS, N_MFCC)."""
    n = np.arange(N_MELS, dtype=np.float64)
    k = np.arange(N_MFCC, dtype=np.float64)[:, None]
    dct = np.cos(np.pi / float(N_MELS) * (n + 0.5) * k)     # (N_MFCC, N_MELS)
    dct[0] *= 1.0 / np.sqrt(2.0)
    dct *= np.sqrt(2.0 / float(N_MELS))
    return dct.T.astype(np.float32)                         # (N_MELS, N_MFCC)


def build_delta_op(t_frames):
    """(T, T) operator equivalent to speechbrain Deltas (reference only)."""
    nd = (DELTA_WIN - 1) // 2
    denom = nd * (nd + 1) * (2 * nd + 1) / 3.0
    op = np.zeros((t_frames, t_frames), dtype=np.float64)
    for t in range(t_frames):
        for j in range(-nd, nd + 1):
            s = min(max(t + j, 0), t_frames - 1)
            op[t, s] += j
    return (op / denom).astype(np.float32)


def build_ctx_ops(t_frames):
    """(CTX, T, T) zero-padded time-shift operators (reference only)."""
    ops = np.zeros((CTX, t_frames, t_frames), dtype=np.float32)
    for c in range(CTX):
        off = c - LEFT_FRAMES
        for t in range(t_frames):
            s = t + off
            if 0 <= s < t_frames:
                ops[c, t, s] = 1.0
    return ops


# ----------------------------------- kernel -------------------------------------
def _mfcc_kernel(frames_ref, basis_ref, fbank_ref, dctx_ref, lanectx_ref, out_ref):
    # frames_ref block: (Bb*T_pad, N_FFT) fused slab of Bb utterances (T_pad % 8 == 0)
    # out_ref block:    (Bb, T, N_OUT)
    bb, n_t, _ = out_ref.shape
    rows = frames_ref.shape[0]
    t_pad = rows // bb

    # ---- fused matmul chain over all Bb utterances at once (large MXU M-dim) ----
    # Single windowed real/imag DFT matmul (freq padded 201 -> 256 lanes per half).
    spec = jnp.dot(frames_ref[...], basis_ref[...],
                   preferred_element_type=jnp.float32)           # (rows, 2*NF_PAD)
    re = spec[:, :NF_PAD]
    im = spec[:, NF_PAD:]
    power = re * re + im * im                                    # (rows, NF_PAD)

    fb = jnp.dot(power, fbank_ref[...],
                 preferred_element_type=jnp.float32)             # (rows, N_MELS)
    c_log = np.float32(DB_MULTIPLIER / np.log(10.0))
    x_db = c_log * jnp.log(jnp.maximum(fb, np.float32(AMIN)))

    # Per-utterance top_db clip.  Padding frames are zeros -> exactly -100 dB after
    # the amin clamp, so they can never win the per-utterance max.
    maxcol = jnp.concatenate(
        [jnp.full((t_pad, 1), jnp.max(x_db[s * t_pad:(s + 1) * t_pad]), jnp.float32)
         for s in range(bb)], axis=0)                            # (rows, 1)
    x_db = jnp.maximum(x_db, maxcol - np.float32(TOP_DB))

    # DCT with each coefficient pre-replicated CTX times along lanes -> (rows, 220).
    # This bakes the final (coeff, context) lane interleave into the matmul.
    mfcc_e = jnp.dot(x_db, dctx_ref[...], preferred_element_type=jnp.float32)

    lane_c = lanectx_ref[...]                                    # (1, N_OUT) int32 = lane % 11

    # ---- per-utterance tail (VPU/XLU): deltas + context window -------------------
    for s in range(bb):
        # Sublane-aligned slice (t_pad is a multiple of 8); drops the pad frames.
        x = mfcc_e[s * t_pad:s * t_pad + n_t]                    # (T, 220)

        # 5-tap replicate-edge FIR as a sublane-shift stencil (no matmul).
        def delta(v):
            f = v.shape[1]
            top = jnp.broadcast_to(v[0:1, :], (2, f))
            bot = jnp.broadcast_to(v[n_t - 1:n_t, :], (2, f))
            vp = jnp.concatenate([top, v, bot], axis=0)          # (T+4, f)
            return ((vp[3:3 + n_t] - vp[1:1 + n_t])
                    + 2.0 * (vp[4:4 + n_t] - vp[0:n_t])) * np.float32(0.1)

        d1 = delta(x)
        d2 = delta(d1)
        full = jnp.concatenate([x, d1, d2], axis=1)              # (T, 660)

        # Context window: 11 zero-padded time shifts, one per lane group (lane % 11).
        # The lane masks are disjoint -> pure selects; the center tap (offset 0) is
        # the unshifted slab itself (no slice of `padded` needed).
        padded = jnp.concatenate(
            [jnp.zeros((LEFT_FRAMES, N_OUT), jnp.float32),
             full,
             jnp.zeros((RIGHT_FRAMES, N_OUT), jnp.float32)], axis=0)   # (T+10, 660)

        acc = jnp.where(lane_c == LEFT_FRAMES, full, np.float32(0.0))
        for c in range(CTX):
            if c == LEFT_FRAMES:
                continue
            acc = jnp.where(lane_c == c, padded[c:c + n_t], acc)
        out_ref[s] = acc                                         # lane-dense (T, 660) store


# ------------------------------------ wrapper ------------------------------------
def _pick_batch_tile(batch, t_pad, target_rows=512):
    """Utterances folded into one grid step (MXU M-dim = bb * t_pad)."""
    bb = max(1, target_rows // t_pad)
    bb = min(bb, batch)
    if batch > 1:
        # Keep at least 2 grid steps so v7x's two TensorCores both get work.
        bb = min(bb, (batch + 1) // 2)
    return max(1, bb)


def mfcc_pallas(wav):
    """wav: (B, L) float32  ->  (B, T, N_MFCC*3*CTX) float32."""
    wav = jnp.asarray(wav, jnp.float32)
    B, L = wav.shape
    T = 1 + L // HOP_LENGTH
    T_pad = ((T + 7) // 8) * 8                   # frames per utterance, sublane multiple
    Bb = _pick_batch_tile(B, T_pad)
    n_steps = (B + Bb - 1) // Bb
    B_pad = n_steps * Bb

    # Host-side glue: batch pad + center zero-pad + overlapping-window framing.
    # Real frames only read the first L + N_FFT padded samples, exactly matching
    # torch.stft's constant (zero) center padding; extra zeros only feed pad frames.
    # TODO(synk): drop this 2.5x unfold by framing in-kernel from raw audio.
    pad_l = N_FFT // 2
    pad_r = (T_pad - 1) * HOP_LENGTH + N_FFT - pad_l - L
    wav_pad = jnp.pad(wav, ((0, B_pad - B), (pad_l, pad_r)))
    gather_idx = np.arange(T_pad)[:, None] * HOP_LENGTH + np.arange(N_FFT)[None, :]
    frames = wav_pad[:, gather_idx].reshape(B_pad * T_pad, N_FFT)   # (B_pad*T_pad, 400)

    # Fused + lane-padded STFT basis: [cos | sin], each padded 201 -> 256 lanes.
    cos_b, sin_b = build_stft_bases()
    basis = np.zeros((N_FFT, 2 * NF_PAD), dtype=np.float32)
    basis[:, :N_FREQ] = cos_b
    basis[:, NF_PAD:NF_PAD + N_FREQ] = sin_b

    # Mel filterbank with zero rows for the padded freq bins.
    fbank = np.zeros((NF_PAD, N_MELS), dtype=np.float32)
    fbank[:N_FREQ] = build_mel_fbank()

    # DCT with each output coefficient replicated CTX times (lane interleave baked in).
    dct_exp = np.repeat(build_dct_mat(), CTX, axis=1)                # (N_MELS, 220)

    # Per-lane context offset id: output lane f*CTX + c holds context shift (c - 5).
    lane_ctx = np.tile(np.arange(CTX, dtype=np.int32), 3 * N_MFCC)[None, :]   # (1, 660)

    out = pl.pallas_call(
        _mfcc_kernel,
        out_shape=jax.ShapeDtypeStruct((B_pad, T, N_OUT), jnp.float32),
        grid_spec=pltpu.PrefetchScalarGridSpec(
            num_scalar_prefetch=0,
            grid=(n_steps,),
            in_specs=[
                pl.BlockSpec((Bb * T_pad, N_FFT), lambda b: (b, 0)),
                pl.BlockSpec((N_FFT, 2 * NF_PAD), lambda b: (0, 0)),
                pl.BlockSpec((NF_PAD, N_MELS), lambda b: (0, 0)),
                pl.BlockSpec((N_MELS, N_MFCC * CTX), lambda b: (0, 0)),
                pl.BlockSpec((1, N_OUT), lambda b: (0, 0)),
            ],
            out_specs=pl.BlockSpec((Bb, T, N_OUT), lambda b: (b, 0, 0)),
        ),
        compiler_params=pltpu.CompilerParams(
            dimension_semantics=("parallel",)),
    )(frames, jnp.asarray(basis), jnp.asarray(fbank),
      jnp.asarray(dct_exp), jnp.asarray(lane_ctx))
    return out[:B]


# ------------------------------ pure numpy reference ------------------------------
def mfcc_reference(wav_np):
    wav_np = np.asarray(wav_np, dtype=np.float64)
    B, L = wav_np.shape
    T = 1 + L // HOP_LENGTH
    pad = N_FFT // 2
    wav_pad = np.pad(wav_np, ((0, 0), (pad, pad)))
    idx = np.arange(T)[:, None] * HOP_LENGTH + np.arange(N_FFT)[None, :]
    frames = wav_pad[:, idx]                                         # (B, T, N_FFT)

    cos_b, sin_b = build_stft_bases()
    fbank = build_mel_fbank()
    dct_m = build_dct_mat()
    delta_op = build_delta_op(T).astype(np.float64)
    ctx_ops = build_ctx_ops(T).astype(np.float64)

    re = frames @ cos_b.astype(np.float64)
    im = frames @ sin_b.astype(np.float64)
    power = re * re + im * im
    fb = power @ fbank.astype(np.float64)
    x_db = DB_MULTIPLIER * np.log10(np.maximum(fb, AMIN))
    x_db = np.maximum(x_db, x_db.max(axis=(1, 2), keepdims=True) - TOP_DB)
    mfcc = x_db @ dct_m.astype(np.float64)                           # (B, T, N_MFCC)
    d1 = np.einsum("ts,bsf->btf", delta_op, mfcc)
    d2 = np.einsum("ts,bsf->btf", delta_op, d1)
    full = np.concatenate([mfcc, d1, d2], axis=2)                    # (B, T, 60)
    ctx = np.einsum("cts,bsf->btfc", ctx_ops, full)                  # (B, T, 60, CTX)
    return ctx.reshape(B, T, 3 * N_MFCC * CTX)


# -------------------------------------- main --------------------------------------
if __name__ == "__main__":
    key = jax.random.PRNGKey(0)
    # B=3 exercises: multi-utterance grid blocks (Bb=2), batch padding (B_pad=4),
    # and a >=2-step parallel grid.  L=3200 -> T = 21 frames.
    B, L = 3, 3200
    wav = jax.random.normal(key, (B, L), dtype=jnp.float32)

    feats = jax.block_until_ready(mfcc_pallas(wav))

    T = 1 + L // HOP_LENGTH
    assert feats.shape == (B, T, N_OUT), feats.shape
    assert bool(jnp.all(jnp.isfinite(feats)))

    ref = mfcc_reference(np.asarray(wav))
    np.testing.assert_allclose(np.asarray(feats), ref, rtol=5e-2, atol=5e-2)

    print("KERNEL_OK")
</pallas_src>

<mosaic_0001>
module attributes {stable_mosaic.version = 11 : i64} {
  func.func @_mfcc_kernel(%arg0: i32, %arg1: memref<48x400xf32, #tpu.memory_space<vmem>>, %arg2: memref<400x512xf32, #tpu.memory_space<vmem>>, %arg3: memref<256x23xf32, #tpu.memory_space<vmem>>, %arg4: memref<23x220xf32, #tpu.memory_space<vmem>>, %arg5: memref<1x660xi32, #tpu.memory_space<vmem>>, %arg6: memref<2x21x660xf32, #tpu.memory_space<vmem>>) attributes {dimension_semantics = [#tpu.dimension_semantics<parallel>], iteration_bounds = array<i64: 2>, scalar_prefetch = 0 : i64, scratch_operands = 0 : i64, tpu.core_type = #tpu.core_type<tc>, window_params = [{transform_indices = @transform_0, window_bounds = array<i64: 48, 400>}, {pipeline_mode = #tpu.pipeline_mode<synchronous>, transform_indices = @transform_1, window_bounds = array<i64: 400, 512>}, {pipeline_mode = #tpu.pipeline_mode<synchronous>, transform_indices = @transform_2, window_bounds = array<i64: 256, 23>}, {pipeline_mode = #tpu.pipeline_mode<synchronous>, transform_indices = @transform_3, window_bounds = array<i64: 23, 220>}, {pipeline_mode = #tpu.pipeline_mode<synchronous>, transform_indices = @transform_4, window_bounds = array<i64: 1, 660>}, {transform_indices = @transform_5, window_bounds = array<i64: 2, 21, 660>}]} {
    %c0 = arith.constant 0 : index
    %c0_0 = arith.constant 0 : index
    %0 = vector.load %arg1[%c0, %c0_0] : memref<48x400xf32, #tpu.memory_space<vmem>>, vector<48x400xf32>
    %c0_1 = arith.constant 0 : index
    %c0_2 = arith.constant 0 : index
    %1 = vector.load %arg2[%c0_1, %c0_2] : memref<400x512xf32, #tpu.memory_space<vmem>>, vector<400x512xf32>
    %cst = arith.constant dense<0.000000e+00> : vector<48x512xf32>
    %2 = tpu.matmul %0, %1, %cst {dimension_numbers = #tpu.dot_dimension_numbers<[1], [0], [0], [1], [0, 0, 1, 1], [], []>} : vector<48x400xf32>, vector<400x512xf32>, vector<48x512xf32> -> vector<48x512xf32>
    %3 = vector.extract_strided_slice %2 {offsets = [0, 0], sizes = [48, 256], strides = [1, 1]} : vector<48x512xf32> to vector<48x256xf32>
    %4 = vector.extract_strided_slice %2 {offsets = [0, 256], sizes = [48, 256], strides = [1, 1]} : vector<48x512xf32> to vector<48x256xf32>
    %5 = arith.mulf %3, %3 : vector<48x256xf32>
    %6 = arith.mulf %4, %4 : vector<48x256xf32>
    %7 = arith.addf %5, %6 : vector<48x256xf32>
    %c0_3 = arith.constant 0 : index
    %c0_4 = arith.constant 0 : index
    %8 = vector.load %arg3[%c0_3, %c0_4] : memref<256x23xf32, #tpu.memory_space<vmem>>, vector<256x23xf32>
    %cst_5 = arith.constant dense<0.000000e+00> : vector<48x23xf32>
    %9 = tpu.matmul %7, %8, %cst_5 {dimension_numbers = #tpu.dot_dimension_numbers<[1], [0], [0], [1], [0, 0, 1, 1], [], []>} : vector<48x256xf32>, vector<256x23xf32>, vector<48x23xf32> -> vector<48x23xf32>
    %cst_6 = arith.constant 1.000000e-10 : f32
    %10 = vector.broadcast %cst_6 : f32 to vector<48x23xf32>
    %11 = arith.maximumf %9, %10 : vector<48x23xf32>
    %12 = math.log %11 : vector<48x23xf32>
    %cst_7 = arith.constant 4.34294462 : f32
    %13 = vector.broadcast %cst_7 : f32 to vector<48x23xf32>
    %14 = arith.mulf %13, %12 : vector<48x23xf32>
    %15 = vector.extract_strided_slice %14 {offsets = [0, 0], sizes = [24, 23], strides = [1, 1]} : vector<48x23xf32> to vector<24x23xf32>
    %16 = vector.shape_cast %15 : vector<24x23xf32> to vector<1x24x23xf32>
    %cst_8 = arith.constant dense<0xFF800000> : vector<1xf32>
    %17 = vector.multi_reduction <maximumf>, %16, %cst_8 [1, 2] : vector<1x24x23xf32> to vector<1xf32>
    %18 = vector.shape_cast %17 : vector<1xf32> to vector<1x1x1xf32>
    %19 = vector.extract %18[0, 0, 0] : f32 from vector<1x1x1xf32>
    %20 = vector.broadcast %19 : f32 to vector<24x1xf32>
    %21 = vector.extract_strided_slice %14 {offsets = [24, 0], sizes = [24, 23], strides = [1, 1]} : vector<48x23xf32> to vector<24x23xf32>
    %22 = vector.shape_cast %21 : vector<24x23xf32> to vector<1x24x23xf32>
    %cst_9 = arith.constant dense<0xFF800000> : vector<1xf32>
    %23 = vector.multi_reduction <maximumf>, %22, %cst_9 [1, 2] : vector<1x24x23xf32> to vector<1xf32>
    %24 = vector.shape_cast %23 : vector<1xf32> to vector<1x1x1xf32>
    %25 = vector.extract %24[0, 0, 0] : f32 from vector<1x1x1xf32>
    %26 = vector.broadcast %25 : f32 to vector<24x1xf32>
    %27 = tpu.concatenate %20, %26 in 0 : vector<24x1xf32>, vector<24x1xf32> -> vector<48x1xf32>
    %cst_10 = arith.constant 8.000000e+01 : f32
    %28 = vector.broadcast %cst_10 : f32 to vector<48x1xf32>
    %29 = arith.subf %27, %28 : vector<48x1xf32>
    %30 = vector.broadcast %29 : vector<48x1xf32> to vector<48x23xf32>
    %31 = arith.maximumf %14, %30 : vector<48x23xf32>
    %c0_11 = arith.constant 0 : index
    %c0_12 = arith.constant 0 : index
    %32 = vector.load %arg4[%c0_11, %c0_12] : memref<23x220xf32, #tpu.memory_space<vmem>>, vector<23x220xf32>
    %cst_13 = arith.constant dense<0.000000e+00> : vector<48x220xf32>
    %33 = tpu.matmul %31, %32, %cst_13 {dimension_numbers = #tpu.dot_dimension_numbers<[1], [0], [0], [1], [0, 0, 1, 1], [], []>} : vector<48x23xf32>, vector<23x220xf32>, vector<48x220xf32> -> vector<48x220xf32>
    %c0_14 = arith.constant 0 : index
    %c0_15 = arith.constant 0 : index
    %34 = vector.load %arg5[%c0_14, %c0_15] : memref<1x660xi32, #tpu.memory_space<vmem>>, vector<1x660xi32>
    %35 = vector.extract_strided_slice %33 {offsets = [0, 0], sizes = [21, 220], strides = [1, 1]} : vector<48x220xf32> to vector<21x220xf32>
    %36 = vector.extract_strided_slice %35 {offsets = [0, 0], sizes = [1, 220], strides = [1, 1]} : vector<21x220xf32> to vector<1x220xf32>
    %37 = vector.shape_cast %36 : vector<1x220xf32> to vector<1x220xf32>
    %38 = vector.broadcast %37 : vector<1x220xf32> to vector<2x220xf32>
    %39 = vector.extract_strided_slice %35 {offsets = [20, 0], sizes = [1, 220], strides = [1, 1]} : vector<21x220xf32> to vector<1x220xf32>
    %40 = vector.shape_cast %39 : vector<1x220xf32> to vector<1x220xf32>
    %41 = vector.broadcast %40 : vector<1x220xf32> to vector<2x220xf32>
    %42 = tpu.concatenate %38, %35, %41 in 0 : vector<2x220xf32>, vector<21x220xf32>, vector<2x220xf32> -> vector<25x220xf32>
    %43 = vector.extract_strided_slice %42 {offsets = [3, 0], sizes = [21, 220], strides = [1, 1]} : vector<25x220xf32> to vector<21x220xf32>
    %44 = vector.extract_strided_slice %42 {offsets = [1, 0], sizes = [21, 220], strides = [1, 1]} : vector<25x220xf32> to vector<21x220xf32>
    %45 = arith.subf %43, %44 : vector<21x220xf32>
    %46 = vector.extract_strided_slice %42 {offsets = [4, 0], sizes = [21, 220], strides = [1, 1]} : vector<25x220xf32> to vector<21x220xf32>
    %47 = vector.extract_strided_slice %42 {offsets = [0, 0], sizes = [21, 220], strides = [1, 1]} : vector<25x220xf32> to vector<21x220xf32>
    %48 = arith.subf %46, %47 : vector<21x220xf32>
    %cst_16 = arith.constant 2.000000e+00 : f32
    %49 = vector.broadcast %cst_16 : f32 to vector<21x220xf32>
    %50 = arith.mulf %49, %48 : vector<21x220xf32>
    %51 = arith.addf %45, %50 : vector<21x220xf32>
    %cst_17 = arith.constant 1.000000e-01 : f32
    %52 = vector.broadcast %cst_17 : f32 to vector<21x220xf32>
    %53 = arith.mulf %51, %52 : vector<21x220xf32>
    %54 = vector.extract_strided_slice %53 {offsets = [0, 0], sizes = [1, 220], strides = [1, 1]} : vector<21x220xf32> to vector<1x220xf32>
    %55 = vector.shape_cast %54 : vector<1x220xf32> to vector<1x220xf32>
    %56 = vector.broadcast %55 : vector<1x220xf32> to vector<2x220xf32>
    %57 = vector.extract_strided_slice %53 {offsets = [20, 0], sizes = [1, 220], strides = [1, 1]} : vector<21x220xf32> to vector<1x220xf32>
    %58 = vector.shape_cast %57 : vector<1x220xf32> to vector<1x220xf32>
    %59 = vector.broadcast %58 : vector<1x220xf32> to vector<2x220xf32>
    %60 = tpu.concatenate %56, %53, %59 in 0 : vector<2x220xf32>, vector<21x220xf32>, vector<2x220xf32> -> vector<25x220xf32>
    %61 = vector.extract_strided_slice %60 {offsets = [3, 0], sizes = [21, 220], strides = [1, 1]} : vector<25x220xf32> to vector<21x220xf32>
    %62 = vector.extract_strided_slice %60 {offsets = [1, 0], sizes = [21, 220], strides = [1, 1]} : vector<25x220xf32> to vector<21x220xf32>
    %63 = arith.subf %61, %62 : vector<21x220xf32>
    %64 = vector.extract_strided_slice %60 {offsets = [4, 0], sizes = [21, 220], strides = [1, 1]} : vector<25x220xf32> to vector<21x220xf32>
    %65 = vector.extract_strided_slice %60 {offsets = [0, 0], sizes = [21, 220], strides = [1, 1]} : vector<25x220xf32> to vector<21x220xf32>
    %66 = arith.subf %64, %65 : vector<21x220xf32>
    %cst_18 = arith.constant 2.000000e+00 : f32
    %67 = vector.broadcast %cst_18 : f32 to vector<21x220xf32>
    %68 = arith.mulf %67, %66 : vector<21x220xf32>
    %69 = arith.addf %63, %68 : vector<21x220xf32>
    %cst_19 = arith.constant 1.000000e-01 : f32
    %70 = vector.broadcast %cst_19 : f32 to vector<21x220xf32>
    %71 = arith.mulf %69, %70 : vector<21x220xf32>
    %72 = tpu.concatenate %35, %53, %71 in 1 : vector<21x220xf32>, vector<21x220xf32>, vector<21x220xf32> -> vector<21x660xf32>
    %cst_20 = arith.constant 0.000000e+00 : f32
    %73 = vector.broadcast %cst_20 : f32 to vector<5x660xf32>
    %cst_21 = arith.constant 0.000000e+00 : f32
    %74 = vector.broadcast %cst_21 : f32 to vector<5x660xf32>
    %75 = tpu.concatenate %73, %72, %74 in 0 : vector<5x660xf32>, vector<21x660xf32>, vector<5x660xf32> -> vector<31x660xf32>
    %c5_i32 = arith.constant 5 : i32
    %76 = vector.broadcast %c5_i32 : i32 to vector<1x660xi32>
    %77 = arith.cmpi eq, %34, %76 : vector<1x660xi32>
    %cst_22 = arith.constant 0.000000e+00 : f32
    %78 = vector.shape_cast %77 : vector<1x660xi1> to vector<1x660xi1>
    %79 = vector.broadcast %78 : vector<1x660xi1> to vector<21x660xi1>
    %80 = vector.broadcast %cst_22 : f32 to vector<21x660xf32>
    %81 = arith.select %79, %72, %80 : vector<21x660xi1>, vector<21x660xf32>
    %c0_i32 = arith.constant 0 : i32
    %82 = vector.broadcast %c0_i32 : i32 to vector<1x660xi32>
    %83 = arith.cmpi eq, %34, %82 : vector<1x660xi32>
    %84 = vector.extract_strided_slice %75 {offsets = [0, 0], sizes = [21, 660], strides = [1, 1]} : vector<31x660xf32> to vector<21x660xf32>
    %85 = vector.shape_cast %83 : vector<1x660xi1> to vector<1x660xi1>
    %86 = vector.broadcast %85 : vector<1x660xi1> to vector<21x660xi1>
    %87 = arith.select %86, %84, %81 : vector<21x660xi1>, vector<21x660xf32>
    %c1_i32 = arith.constant 1 : i32
    %88 = vector.broadcast %c1_i32 : i32 to vector<1x660xi32>
    %89 = arith.cmpi eq, %34, %88 : vector<1x660xi32>
    %90 = vector.extract_strided_slice %75 {offsets = [1, 0], sizes = [21, 660], strides = [1, 1]} : vector<31x660xf32> to vector<21x660xf32>
    %91 = vector.shape_cast %89 : vector<1x660xi1> to vector<1x660xi1>
    %92 = vector.broadcast %91 : vector<1x660xi1> to vector<21x660xi1>
    %93 = arith.select %92, %90, %87 : vector<21x660xi1>, vector<21x660xf32>
    %c2_i32 = arith.constant 2 : i32
    %94 = vector.broadcast %c2_i32 : i32 to vector<1x660xi32>
    %95 = arith.cmpi eq, %34, %94 : vector<1x660xi32>
    %96 = vector.extract_strided_slice %75 {offsets = [2, 0], sizes = [21, 660], strides = [1, 1]} : vector<31x660xf32> to vector<21x660xf32>
    %97 = vector.shape_cast %95 : vector<1x660xi1> to vector<1x660xi1>
    %98 = vector.broadcast %97 : vector<1x660xi1> to vector<21x660xi1>
    %99 = arith.select %98, %96, %93 : vector<21x660xi1>, vector<21x660xf32>
    %c3_i32 = arith.constant 3 : i32
    %100 = vector.broadcast %c3_i32 : i32 to vector<1x660xi32>
    %101 = arith.cmpi eq, %34, %100 : vector<1x660xi32>
    %102 = vector.extract_strided_slice %75 {offsets = [3, 0], sizes = [21, 660], strides = [1, 1]} : vector<31x660xf32> to vector<21x660xf32>
    %103 = vector.shape_cast %101 : vector<1x660xi1> to vector<1x660xi1>
    %104 = vector.broadcast %103 : vector<1x660xi1> to vector<21x660xi1>
    %105 = arith.select %104, %102, %99 : vector<21x660xi1>, vector<21x660xf32>
    %c4_i32 = arith.constant 4 : i32
    %106 = vector.broadcast %c4_i32 : i32 to vector<1x660xi32>
    %107 = arith.cmpi eq, %34, %106 : vector<1x660xi32>
    %108 = vector.extract_strided_slice %75 {offsets = [4, 0], sizes = [21, 660], strides = [1, 1]} : vector<31x660xf32> to vector<21x660xf32>
    %109 = vector.shape_cast %107 : vector<1x660xi1> to vector<1x660xi1>
    %110 = vector.broadcast %109 : vector<1x660xi1> to vector<21x660xi1>
    %111 = arith.select %110, %108, %105 : vector<21x660xi1>, vector<21x660xf32>
    %c6_i32 = arith.constant 6 : i32
    %112 = vector.broadcast %c6_i32 : i32 to vector<1x660xi32>
    %113 = arith.cmpi eq, %34, %112 : vector<1x660xi32>
    %114 = vector.extract_strided_slice %75 {offsets = [6, 0], sizes = [21, 660], strides = [1, 1]} : vector<31x660xf32> to vector<21x660xf32>
    %115 = vector.shape_cast %113 : vector<1x660xi1> to vector<1x660xi1>
    %116 = vector.broadcast %115 : vector<1x660xi1> to vector<21x660xi1>
    %117 = arith.select %116, %114, %111 : vector<21x660xi1>, vector<21x660xf32>
    %c7_i32 = arith.constant 7 : i32
    %118 = vector.broadcast %c7_i32 : i32 to vector<1x660xi32>
    %119 = arith.cmpi eq, %34, %118 : vector<1x660xi32>
    %120 = vector.extract_strided_slice %75 {offsets = [7, 0], sizes = [21, 660], strides = [1, 1]} : vector<31x660xf32> to vector<21x660xf32>
    %121 = vector.shape_cast %119 : vector<1x660xi1> to vector<1x660xi1>
    %122 = vector.broadcast %121 : vector<1x660xi1> to vector<21x660xi1>
    %123 = arith.select %122, %120, %117 : vector<21x660xi1>, vector<21x660xf32>
    %c8_i32 = arith.constant 8 : i32
    %124 = vector.broadcast %c8_i32 : i32 to vector<1x660xi32>
    %125 = arith.cmpi eq, %34, %124 : vector<1x660xi32>
    %126 = vector.extract_strided_slice %75 {offsets = [8, 0], sizes = [21, 660], strides = [1, 1]} : vector<31x660xf32> to vector<21x660xf32>
    %127 = vector.shape_cast %125 : vector<1x660xi1> to vector<1x660xi1>
    %128 = vector.broadcast %127 : vector<1x660xi1> to vector<21x660xi1>
    %129 = arith.select %128, %126, %123 : vector<21x660xi1>, vector<21x660xf32>
    %c9_i32 = arith.constant 9 : i32
    %130 = vector.broadcast %c9_i32 : i32 to vector<1x660xi32>
    %131 = arith.cmpi eq, %34, %130 : vector<1x660xi32>
    %132 = vector.extract_strided_slice %75 {offsets = [9, 0], sizes = [21, 660], strides = [1, 1]} : vector<31x660xf32> to vector<21x660xf32>
    %133 = vector.shape_cast %131 : vector<1x660xi1> to vector<1x660xi1>
    %134 = vector.broadcast %133 : vector<1x660xi1> to vector<21x660xi1>
    %135 = arith.select %134, %132, %129 : vector<21x660xi1>, vector<21x660xf32>
    %c10_i32 = arith.constant 10 : i32
    %136 = vector.broadcast %c10_i32 : i32 to vector<1x660xi32>
    %137 = arith.cmpi eq, %34, %136 : vector<1x660xi32>
    %138 = vector.extract_strided_slice %75 {offsets = [10, 0], sizes = [21, 660], strides = [1, 1]} : vector<31x660xf32> to vector<21x660xf32>
    %139 = vector.shape_cast %137 : vector<1x660xi1> to vector<1x660xi1>
    %140 = vector.broadcast %139 : vector<1x660xi1> to vector<21x660xi1>
    %141 = arith.select %140, %138, %135 : vector<21x660xi1>, vector<21x660xf32>
    %c0_23 = arith.constant 0 : index
    %c0_24 = arith.constant 0 : index
    %c0_25 = arith.constant 0 : index
    %142 = vector.load %arg6[%c0_23, %c0_24, %c0_25] : memref<2x21x660xf32, #tpu.memory_space<vmem>>, vector<1x21x660xf32>
    %143 = vector.shape_cast %142 : vector<1x21x660xf32> to vector<21x660xf32>
    %144 = vector.shape_cast %141 : vector<21x660xf32> to vector<1x21x660xf32>
    tpu.vector_store %arg6[%c0_23, %c0_24, %c0_25], %144 {strides = array<i32>} : memref<2x21x660xf32, #tpu.memory_space<vmem>>, vector<1x21x660xf32>,
    %145 = vector.extract_strided_slice %33 {offsets = [24, 0], sizes = [21, 220], strides = [1, 1]} : vector<48x220xf32> to vector<21x220xf32>
    %146 = vector.extract_strided_slice %145 {offsets = [0, 0], sizes = [1, 220], strides = [1, 1]} : vector<21x220xf32> to vector<1x220xf32>
    %147 = vector.shape_cast %146 : vector<1x220xf32> to vector<1x220xf32>
    %148 = vector.broadcast %147 : vector<1x220xf32> to vector<2x220xf32>
    %149 = vector.extract_strided_slice %145 {offsets = [20, 0], sizes = [1, 220], strides = [1, 1]} : vector<21x220xf32> to vector<1x220xf32>
    %150 = vector.shape_cast %149 : vector<1x220xf32> to vector<1x220xf32>
    %151 = vector.broadcast %150 : vector<1x220xf32> to vector<2x220xf32>
    %152 = tpu.concatenate %148, %145, %151 in 0 : vector<2x220xf32>, vector<21x220xf32>, vector<2x220xf32> -> vector<25x220xf32>
    %153 = vector.extract_strided_slice %152 {offsets = [3, 0], sizes = [21, 220], strides = [1, 1]} : vector<25x220xf32> to vector<21x220xf32>
    %154 = vector.extract_strided_slice %152 {offsets = [1, 0], sizes = [21, 220], strides = [1, 1]} : vector<25x220xf32> to vector<21x220xf32>
    %155 = arith.subf %153, %154 : vector<21x220xf32>
    %156 = vector.extract_strided_slice %152 {offsets = [4, 0], sizes = [21, 220], strides = [1, 1]} : vector<25x220xf32> to vector<21x220xf32>
    %157 = vector.extract_strided_slice %152 {offsets = [0, 0], sizes = [21, 220], strides = [1, 1]} : vector<25x220xf32> to vector<21x220xf32>
    %158 = arith.subf %156, %157 : vector<21x220xf32>
    %cst_26 = arith.constant 2.000000e+00 : f32
    %159 = vector.broadcast %cst_26 : f32 to vector<21x220xf32>
    %160 = arith.mulf %159, %158 : vector<21x220xf32>
    %161 = arith.addf %155, %160 : vector<21x220xf32>
    %cst_27 = arith.constant 1.000000e-01 : f32
    %162 = vector.broadcast %cst_27 : f32 to vector<21x220xf32>
    %163 = arith.mulf %161, %162 : vector<21x220xf32>
    %164 = vector.extract_strided_slice %163 {offsets = [0, 0], sizes = [1, 220], strides = [1, 1]} : vector<21x220xf32> to vector<1x220xf32>
    %165 = vector.shape_cast %164 : vector<1x220xf32> to vector<1x220xf32>
    %166 = vector.broadcast %165 : vector<1x220xf32> to vector<2x220xf32>
    %167 = vector.extract_strided_slice %163 {offsets = [20, 0], sizes = [1, 220], strides = [1, 1]} : vector<21x220xf32> to vector<1x220xf32>
    %168 = vector.shape_cast %167 : vector<1x220xf32> to vector<1x220xf32>
    %169 = vector.broadcast %168 : vector<1x220xf32> to vector<2x220xf32>
    %170 = tpu.concatenate %166, %163, %169 in 0 : vector<2x220xf32>, vector<21x220xf32>, vector<2x220xf32> -> vector<25x220xf32>
    %171 = vector.extract_strided_slice %170 {offsets = [3, 0], sizes = [21, 220], strides = [1, 1]} : vector<25x220xf32> to vector<21x220xf32>
    %172 = vector.extract_strided_slice %170 {offsets = [1, 0], sizes = [21, 220], strides = [1, 1]} : vector<25x220xf32> to vector<21x220xf32>
    %173 = arith.subf %171, %172 : vector<21x220xf32>
    %174 = vector.extract_strided_slice %170 {offsets = [4, 0], sizes = [21, 220], strides = [1, 1]} : vector<25x220xf32> to vector<21x220xf32>
    %175 = vector.extract_strided_slice %170 {offsets = [0, 0], sizes = [21, 220], strides = [1, 1]} : vector<25x220xf32> to vector<21x220xf32>
    %176 = arith.subf %174, %175 : vector<21x220xf32>
    %cst_28 = arith.constant 2.000000e+00 : f32
    %177 = vector.broadcast %cst_28 : f32 to vector<21x220xf32>
    %178 = arith.mulf %177, %176 : vector<21x220xf32>
    %179 = arith.addf %173, %178 : vector<21x220xf32>
    %cst_29 = arith.constant 1.000000e-01 : f32
    %180 = vector.broadcast %cst_29 : f32 to vector<21x220xf32>
    %181 = arith.mulf %179, %180 : vector<21x220xf32>
    %182 = tpu.concatenate %145, %163, %181 in 1 : vector<21x220xf32>, vector<21x220xf32>, vector<21x220xf32> -> vector<21x660xf32>
    %cst_30 = arith.constant 0.000000e+00 : f32
    %183 = vector.broadcast %cst_30 : f32 to vector<5x660xf32>
    %cst_31 = arith.constant 0.000000e+00 : f32
    %184 = vector.broadcast %cst_31 : f32 to vector<5x660xf32>
    %185 = tpu.concatenate %183, %182, %184 in 0 : vector<5x660xf32>, vector<21x660xf32>, vector<5x660xf32> -> vector<31x660xf32>
    %c5_i32_32 = arith.constant 5 : i32
    %186 = vector.broadcast %c5_i32_32 : i32 to vector<1x660xi32>
    %187 = arith.cmpi eq, %34, %186 : vector<1x660xi32>
    %cst_33 = arith.constant 0.000000e+00 : f32
    %188 = vector.shape_cast %187 : vector<1x660xi1> to vector<1x660xi1>
    %189 = vector.broadcast %188 : vector<1x660xi1> to vector<21x660xi1>
    %190 = vector.broadcast %cst_33 : f32 to vector<21x660xf32>
    %191 = arith.select %189, %182, %190 : vector<21x660xi1>, vector<21x660xf32>
    %c0_i32_34 = arith.constant 0 : i32
    %192 = vector.broadcast %c0_i32_34 : i32 to vector<1x660xi32>
    %193 = arith.cmpi eq, %34, %192 : vector<1x660xi32>
    %194 = vector.extract_strided_slice %185 {offsets = [0, 0], sizes = [21, 660], strides = [1, 1]} : vector<31x660xf32> to vector<21x660xf32>
    %195 = vector.shape_cast %193 : vector<1x660xi1> to vector<1x660xi1>
    %196 = vector.broadcast %195 : vector<1x660xi1> to vector<21x660xi1>
    %197 = arith.select %196, %194, %191 : vector<21x660xi1>, vector<21x660xf32>
    %c1_i32_35 = arith.constant 1 : i32
    %198 = vector.broadcast %c1_i32_35 : i32 to vector<1x660xi32>
    %199 = arith.cmpi eq, %34, %198 : vector<1x660xi32>
    %200 = vector.extract_strided_slice %185 {offsets = [1, 0], sizes = [21, 660], strides = [1, 1]} : vector<31x660xf32> to vector<21x660xf32>
    %201 = vector.shape_cast %199 : vector<1x660xi1> to vector<1x660xi1>
    %202 = vector.broadcast %201 : vector<1x660xi1> to vector<21x660xi1>
    %203 = arith.select %202, %200, %197 : vector<21x660xi1>, vector<21x660xf32>
    %c2_i32_36 = arith.constant 2 : i32
    %204 = vector.broadcast %c2_i32_36 : i32 to vector<1x660xi32>
    %205 = arith.cmpi eq, %34, %204 : vector<1x660xi32>
    %206 = vector.extract_strided_slice %185 {offsets = [2, 0], sizes = [21, 660], strides = [1, 1]} : vector<31x660xf32> to vector<21x660xf32>
    %207 = vector.shape_cast %205 : vector<1x660xi1> to vector<1x660xi1>
    %208 = vector.broadcast %207 : vector<1x660xi1> to vector<21x660xi1>
    %209 = arith.select %208, %206, %203 : vector<21x660xi1>, vector<21x660xf32>
    %c3_i32_37 = arith.constant 3 : i32
    %210 = vector.broadcast %c3_i32_37 : i32 to vector<1x660xi32>
    %211 = arith.cmpi eq, %34, %210 : vector<1x660xi32>
    %212 = vector.extract_strided_slice %185 {offsets = [3, 0], sizes = [21, 660], strides = [1, 1]} : vector<31x660xf32> to vector<21x660xf32>
    %213 = vector.shape_cast %211 : vector<1x660xi1> to vector<1x660xi1>
    %214 = vector.broadcast %213 : vector<1x660xi1> to vector<21x660xi1>
    %215 = arith.select %214, %212, %209 : vector<21x660xi1>, vector<21x660xf32>
    %c4_i32_38 = arith.constant 4 : i32
    %216 = vector.broadcast %c4_i32_38 : i32 to vector<1x660xi32>
    %217 = arith.cmpi eq, %34, %216 : vector<1x660xi32>
    %218 = vector.extract_strided_slice %185 {offsets = [4, 0], sizes = [21, 660], strides = [1, 1]} : vector<31x660xf32> to vector<21x660xf32>
    %219 = vector.shape_cast %217 : vector<1x660xi1> to vector<1x660xi1>
    %220 = vector.broadcast %219 : vector<1x660xi1> to vector<21x660xi1>
    %221 = arith.select %220, %218, %215 : vector<21x660xi1>, vector<21x660xf32>
    %c6_i32_39 = arith.constant 6 : i32
    %222 = vector.broadcast %c6_i32_39 : i32 to vector<1x660xi32>
    %223 = arith.cmpi eq, %34, %222 : vector<1x660xi32>
    %224 = vector.extract_strided_slice %185 {offsets = [6, 0], sizes = [21, 660], strides = [1, 1]} : vector<31x660xf32> to vector<21x660xf32>
    %225 = vector.shape_cast %223 : vector<1x660xi1> to vector<1x660xi1>
    %226 = vector.broadcast %225 : vector<1x660xi1> to vector<21x660xi1>
    %227 = arith.select %226, %224, %221 : vector<21x660xi1>, vector<21x660xf32>
    %c7_i32_40 = arith.constant 7 : i32
    %228 = vector.broadcast %c7_i32_40 : i32 to vector<1x660xi32>
    %229 = arith.cmpi eq, %34, %228 : vector<1x660xi32>
    %230 = vector.extract_strided_slice %185 {offsets = [7, 0], sizes = [21, 660], strides = [1, 1]} : vector<31x660xf32> to vector<21x660xf32>
    %231 = vector.shape_cast %229 : vector<1x660xi1> to vector<1x660xi1>
    %232 = vector.broadcast %231 : vector<1x660xi1> to vector<21x660xi1>
    %233 = arith.select %232, %230, %227 : vector<21x660xi1>, vector<21x660xf32>
    %c8_i32_41 = arith.constant 8 : i32
    %234 = vector.broadcast %c8_i32_41 : i32 to vector<1x660xi32>
    %235 = arith.cmpi eq, %34, %234 : vector<1x660xi32>
    %236 = vector.extract_strided_slice %185 {offsets = [8, 0], sizes = [21, 660], strides = [1, 1]} : vector<31x660xf32> to vector<21x660xf32>
    %237 = vector.shape_cast %235 : vector<1x660xi1> to vector<1x660xi1>
    %238 = vector.broadcast %237 : vector<1x660xi1> to vector<21x660xi1>
    %239 = arith.select %238, %236, %233 : vector<21x660xi1>, vector<21x660xf32>
    %c9_i32_42 = arith.constant 9 : i32
    %240 = vector.broadcast %c9_i32_42 : i32 to vector<1x660xi32>
    %241 = arith.cmpi eq, %34, %240 : vector<1x660xi32>
    %242 = vector.extract_strided_slice %185 {offsets = [9, 0], sizes = [21, 660], strides = [1, 1]} : vector<31x660xf32> to vector<21x660xf32>
    %243 = vector.shape_cast %241 : vector<1x660xi1> to vector<1x660xi1>
    %244 = vector.broadcast %243 : vector<1x660xi1> to vector<21x660xi1>
    %245 = arith.select %244, %242, %239 : vector<21x660xi1>, vector<21x660xf32>
    %c10_i32_43 = arith.constant 10 : i32
    %246 = vector.broadcast %c10_i32_43 : i32 to vector<1x660xi32>
    %247 = arith.cmpi eq, %34, %246 : vector<1x660xi32>
    %248 = vector.extract_strided_slice %185 {offsets = [10, 0], sizes = [21, 660], strides = [1, 1]} : vector<31x660xf32> to vector<21x660xf32>
    %249 = vector.shape_cast %247 : vector<1x660xi1> to vector<1x660xi1>
    %250 = vector.broadcast %249 : vector<1x660xi1> to vector<21x660xi1>
    %251 = arith.select %250, %248, %245 : vector<21x660xi1>, vector<21x660xf32>
    %c1 = arith.constant 1 : index
    %c0_44 = arith.constant 0 : index
    %c0_45 = arith.constant 0 : index
    %252 = vector.load %arg6[%c1, %c0_44, %c0_45] : memref<2x21x660xf32, #tpu.memory_space<vmem>>, vector<1x21x660xf32>
    %253 = vector.shape_cast %252 : vector<1x21x660xf32> to vector<21x660xf32>
    %254 = vector.shape_cast %251 : vector<21x660xf32> to vector<1x21x660xf32>
    tpu.vector_store %arg6[%c1, %c0_44, %c0_45], %254 {strides = array<i32>} : memref<2x21x660xf32, #tpu.memory_space<vmem>>, vector<1x21x660xf32>,
    return
  }
  func.func @transform_0(%arg0: i32) -> (i32, i32) {
    %c0_i32 = arith.constant 0 : i32
    %c0_i32_0 = arith.constant 0 : i32
    return %arg0, %c0_i32 : i32, i32
  }
  func.func @transform_1(%arg0: i32) -> (i32, i32) {
    %c0_i32 = arith.constant 0 : i32
    %c0_i32_0 = arith.constant 0 : i32
    %c0_i32_1 = arith.constant 0 : i32
    return %c0_i32, %c0_i32_0 : i32, i32
  }
  func.func @transform_2(%arg0: i32) -> (i32, i32) {
    %c0_i32 = arith.constant 0 : i32
    %c0_i32_0 = arith.constant 0 : i32
    %c0_i32_1 = arith.constant 0 : i32
    return %c0_i32, %c0_i32_0 : i32, i32
  }
  func.func @transform_3(%arg0: i32) -> (i32, i32) {
    %c0_i32 = arith.constant 0 : i32
    %c0_i32_0 = arith.constant 0 : i32
    %c0_i32_1 = arith.constant 0 : i32
    return %c0_i32, %c0_i32_0 : i32, i32
  }
  func.func @transform_4(%arg0: i32) -> (i32, i32) {
    %c0_i32 = arith.constant 0 : i32
    %c0_i32_0 = arith.constant 0 : i32
    %c0_i32_1 = arith.constant 0 : i32
    return %c0_i32, %c0_i32_0 : i32, i32
  }
  func.func @transform_5(%arg0: i32) -> (i32, i32, i32) {
    %c0_i32 = arith.constant 0 : i32
    %c0_i32_0 = arith.constant 0 : i32
    %c0_i32_1 = arith.constant 0 : i32
    return %arg0, %c0_i32, %c0_i32_0 : i32, i32, i32
  }
}

</mosaic_0001>

<bundles_post_ra>
// kernel: tpu_custom_call.1
= control target key start
LH: loop header
LB: loop body
LE: loop exit
PB: predicated region body
PF: predicated region fallthrough
CT: control target
= control target key end

     0   :  { %10 = vsyncpa [#allocation3], 0  ;;  %s8592_s0 = inlined_call_operand.hbm [shape: f32[96,400], index: 0, kind: input, shape index: {}]   ;;  %s8593_s1 = inlined_call_operand.hbm [shape: f32[400,512], index: 1, kind: input, shape index: {}]   ;;  %s8594_s2 = inlined_call_operand.vmem [shape: f32[256,23], index: 2, kind: input, shape index: {}]   ;;  %s8595_s3 = inlined_call_operand.vmem [shape: f32[23,220], index: 3, kind: input, shape index: {}]   ;;  %s8596_s4 = inlined_call_operand.vmem [shape: s32[1,660], index: 4, kind: input, shape index: {}]   ;;  %s8597_s5 = inlined_call_operand.vmem [shape: f32[4,21,660], index: 5, kind: output, shape index: {}]  }
   0x1   :  { %12 = vsyncpa [#allocation3 + $0x1], 0 }
   0x2   :  { %13 = vsyncpa [#allocation5], 0  ;;  %s4670_s18 = smov 0   ;;  %s4672_s19 = smov 0  }
   0x3   :  { %s4674_s20 = smov 0   ;;  %s4676_s21 = smov 0  }
   0x4 LB: > { %s8598_s22 = sadd.s32 4294967295, %s4632_s21   ;;  %p39_p0 = scmp.ne.s32.totalorder %s4624_s19, %s4620_s18  ;;  %s4632_s21 = sphi %s4676_s21, %s9536_s21   ;;  %s4628_s20 = sphi %s4674_s20, %s9535_s20   ;;  %s4624_s19 = sphi %s4672_s19, %s9534_s19   ;;  %s4620_s18 = sphi %s4670_s18, %s9533_s18  }
   0x5   : > { %p4692_p1 = scmp.eq.s32.totalorder %s8598_s22, 0  ;;  %p4386_p2 = scmp.ge.s32.totalorder %s4632_s21, 1 }
   0x6   : > { %p160_p3 = scmp.lt.s32.totalorder %s4632_s21, 3  ;;  %s171_s27 = sshll.u32 %s8593_s1, 4  ;;  %s172_s27 = int_to_ptr.hbm [resolvable:$true] %s171_s27 }
   0x7   : > { %p4700_p4 = por %p4692_p1, %p39_p0  ;;  %s4634_s29 = smov [#allocation4]  }
   0x8   : > { %p4707_p5 = pnand %p4386_p2, %p160_p3  ;;  %s173_s30 = sshll.u32 %s4634_s29, 4  ;;  %s174_s30 = int_to_ptr.vmem [resolvable:$true] %s173_s30 }
   0x9   : > { %s4716_s6 = sadd.s32 1, %s4632_s21   ;;  %s4635_s7 = smov 512  }
   0xa   : > { %p4471_p6 = pneg %p4707_p5  ;;  %s4636_s8 = smov 32  }
   0xb   : > { %s23_s9 = ssub.s32 %s4632_s21, %s4716_s6  ;;  %s26_s10 = sadd.s32 1, %s4628_s20 }
   0xc   : > { %p4472_p7 = pnand %p4471_p6, %p4692_p1  ;;  %p24_p8 = scmp.eq.s32.totalorder %s23_s9, 0 }
   0xd   : > { %p33_p9 = scmp.ne.s32.totalorder %s4628_s20, %s4624_s19  ;;  %p34_p10 = scmp.eq.s32.totalorder %s4632_s21, 0 }
   0xe   : > { %4474 = dma.hbm_to_vmem [thread:$0]  (!%p4472_p7), %s172_s27, 25600, %s174_s30, [#allocation5], %s4635_s7, %s4635_s7, %s4636_s8  }
   0xf   : > { %p4480_p11 = scmp.lt.s32.totalorder %s4632_s21, 2  ;;  %p35_p12 = por %p34_p10, %p33_p9 }
  0x10   : > { %s4729_s11 = scalar_select %p24_p8, %s4628_s20, %s26_s10  }
  0x11   : > { %s196_s12 = sand.u32 1, %s4628_s20   ;;  %s4457_s14 = smul.u32 192, %s4632_s21 }
  0x12   : > { %s4458_s13 = smul.u32 192, %s196_s12  ;;  %p4733_p13 = pnand %p4480_p11, %p35_p12 }
  0x13   : > { %s206_s18 = scalar_lea.hbm %s8592_s0, %s4457_s14  ;;  %s197_s29 = scalar_lea.sflag [#allocation3], %s196_s12 }
  0x14   : > { %s200_s25 = scalar_lea.vmem [#allocation2], %s4458_s13  ;;  %s207_s27 = sshll.u32 %s206_s18, 4  ;;  %s208_s27 = int_to_ptr.hbm [resolvable:$true] %s207_s27 }
  0x15   : > { %s209_s26 = sshll.u32 %s200_s25, 4  ;;  %s4564_s30 = sshra.s32 %s208_s27, 4  ;;  %s210_s26 = int_to_ptr.vmem [resolvable:$true] %s209_s26  ;;  %s4565_s30 = int_to_ptr.hbm [resolvable:$true] %s4564_s30 }
  0x16   : > { %s4566_s9 = scalar_lea.hbm %s4565_s30, 192  ;;  %p4568_p2 = pneg %p4733_p13 }
  0x17   : > { %p4567_p0 = scmp.ne.s32.totalorder %s4565_s30, %s4566_s9  ;;  %s4571_s16 = scalar_lea.hbm %s8592_s0, 384 }
  0x18   : > { %p4572_p7 = scmp.lt.s32.totalorder %s4565_s30, %s8592_s0  ;;  %p4573_p8 = scmp.lt.s32.totalorder %s4571_s16, %s4566_s9 }
  0x19   : > { %p4569_p3 = pnand %p4568_p2, %p4567_p0 }
  0x1a   : > { %p4574_p9 = por %p4573_p8, %p4572_p7 }
  0x1b   : > { %p4570_p6 = pneg %p4569_p3 }
  0x1d   : > { %p4575_p10 = pnand %p4574_p9, %p4570_p6 }
  0x1f   : > { %4578 = shalt.err (!%p4575_p10)
}
  0x20   : > { %4478 = dma.hbm_to_vmem [thread:$0]  (!%p4733_p13), %s208_s27, 3072, %s210_s26, %s197_s29, %s4635_s7, %s4635_s7, %s4636_s8  }
  0x21   : > { %221 = sbr.rel (%p4707_p5) target bundleno = 1508 (0x5e4), region = 40 }
  0x26   : > { %s223_s22 = sand.u32 1, %s4624_s19  }
  0x27   : > { %s4459_s12 = smul.u32 192, %s223_s22  ;;  %s224_s13 = scalar_lea.sflag [#allocation3], %s223_s22 }
  0x29   : > { %s4756_s18 = scalar_lea.vmem [#allocation2], %s4459_s12 }
  0x2a   : > { %4611 = dma.done.wait (%p4700_p4), %s224_s13, 3072  }
  0x2b   : > { %4613 = vsyncadd (%p4700_p4), %s224_s13, 4294964224 }
  0x2c   : > { %4615 = dma.done.wait (%p4692_p1), [#allocation5], 25600  }
  0x2d   : > { %4617 = vsyncadd (%p4692_p1), [#allocation5], 4294941696  ;;  %v481_v0 = vld [vmem:[#allocation4 + $0x5e0] sm:$0xff]  ;;  %v4767_v29 = vld [vmem:[%s4756_s18 + $0x18] sm:$0xff]  ;;  %vm493_vm0 = vcmask 130048   ;;  %vm1234_vm1 = vcmask 187392  }
  0x2e   : > { %v353_v1 = vld [vmem:[#allocation4 + $0x1e0] sm:$0xff]  ;;  %582 = vmatpush.msra.mxu2 %v481_v0  ;;  %v354_v33 = vld [vmem:[#allocation4 + $0x1e8] sm:$0xff]  ;;  %v4772_v45 = vld [vmem:[%s4756_s18 + $0x38] sm:$0xff]  ;;  %vm1307_vm2 = vcmask 1046528   ;;  %vm8643_vm10 = vcmask 1041408   ;;  %vm8626_vm11 = vcmask 1044480  }
  0x2f   : > { %v417_v2 = vld [vmem:[#allocation4 + $0x3e0] sm:$0xff]  ;;  %512 = vmatpush.msra.mxu0 %v353_v1  ;;  %v350_v37 = vld [vmem:[#allocation4 + $0x1c8] sm:$0xff]  ;;  %v4777_v56 = vld [vmem:[%s4756_s18 + $0x10] sm:$0xff]  ;;  %s8880_s23 = sadd.s32 4294967295, %s4632_s21   ;;  %s4638_s15 = smov 92  }
  0x30   : > { %v477_v3 = vld [vmem:[#allocation4 + $0x5c0] sm:$0xff]  ;;  %547 = vmatpush.msra.mxu1 %v417_v2  ;;  %v346_v41 = vld [vmem:[#allocation4 + $0x1a8] sm:$0xff]  ;;  %v4788_v1 = vld [vmem:[%s4756_s18 + $0x58] sm:$0xff]  ;;  %s5603_s24 = sshll.u32 %s8880_s23, 1  ;;  %s4639_s25 = smov 56  }
  0x31   : > { %v349_v4 = vld [vmem:[#allocation4 + $0x1c0] sm:$0xff]  ;;  %583 = vmatpush.msra.mxu2 %v477_v3  ;;  %v342_v49 = vld [vmem:[#allocation4 + $0x188] sm:$0xff]  ;;  %p263_p1 = scmp.lt.s32.totalorder %s5603_s24, 3 }
  0x32   : > { %v413_v5 = vld [vmem:[#allocation4 + $0x3c0] sm:$0xff]  ;;  %513 = vmatpush.msra.mxu0 %v349_v4  ;;  %v338_v53 = vld [vmem:[#allocation4 + $0x168] sm:$0xff] }
  0x33   : > { %v473_v6 = vld [vmem:[#allocation4 + $0x5a0] sm:$0xff]  ;;  %548 = vmatpush.msra.mxu1 %v413_v5  ;;  %v490_v58 = vld [vmem:[#allocation4 + $0x628] sm:$0xff]  ;;  %s9538_s24 = smov (!%p263_p1, %s5603_s24), 3 }
  0x34   : > { %v345_v7 = vld [vmem:[#allocation4 + $0x1a0] sm:$0xff]  ;;  %584 = vmatpush.msra.mxu2 %v473_v6  ;;  %v4783_v60 = vld [vmem:[%s4756_s18 + $0x8] sm:$0xff]  ;;  %s4460_s21 = smul.u32 144, %s9538_s24 }
  0x35   : > { %v409_v8 = vld [vmem:[#allocation4 + $0x3a0] sm:$0xff]  ;;  %514 = vmatpush.msra.mxu0 %v345_v7  ;;  %v418_v61 = vld [vmem:[#allocation4 + $0x3e8] sm:$0xff] }
  0x36   : > { %v469_v9 = vld [vmem:[#allocation4 + $0x580] sm:$0xff]  ;;  %549 = vmatpush.msra.mxu1 %v409_v8  ;;  %v482_v62 = vld [vmem:[#allocation4 + $0x5e8] sm:$0xff]  ;;  %v4794_v8 = vld [vmem:[%s4756_s18 + $0x30] sm:$0xff]  ;;  %s5749_s8 = scalar_lea.vmem %s8597_s5, %s4460_s21 }
  0x37   : > { %v341_v10 = vld [vmem:[#allocation4 + $0x180] sm:$0xff]  ;;  %585 = vmatpush.msra.mxu2 %v469_v9  ;;  %v334_v63 = vld [vmem:[#allocation4 + $0x148] sm:$0xff] }
  0x38   : > { %v405_v11 = vld [vmem:[#allocation4 + $0x380] sm:$0xff]  ;;  %515 = vmatpush.msra.mxu0 %v341_v10  ;;  %v414_v0 = vld [vmem:[#allocation4 + $0x3c8] sm:$0xff] }
  0x39   : > { %v465_v12 = vld [vmem:[#allocation4 + $0x560] sm:$0xff]  ;;  %550 = vmatpush.msra.mxu1 %v405_v11  ;;  %v478_v2 = vld [vmem:[#allocation4 + $0x5c8] sm:$0xff] }
  0x3a   : > { %v337_v13 = vld [vmem:[#allocation4 + $0x160] sm:$0xff]  ;;  %586 = vmatpush.msra.mxu2 %v465_v12  ;;  %v330_v3 = vld [vmem:[#allocation4 + $0x128] sm:$0xff] }
  0x3b   : > { %v401_v14 = vld [vmem:[#allocation4 + $0x360] sm:$0xff]  ;;  %516 = vmatpush.msra.mxu0 %v337_v13  ;;  %v410_v4 = vld [vmem:[#allocation4 + $0x3a8] sm:$0xff] }
  0x3c   : > { %v461_v15 = vld [vmem:[#allocation4 + $0x540] sm:$0xff]  ;;  %551 = vmatpush.msra.mxu1 %v401_v14  ;;  %v486_v5 = vld [vmem:[#allocation4 + $0x608] sm:$0xff] }
  0x3d   : > { %v333_v16 = vld [vmem:[#allocation4 + $0x140] sm:$0xff]  ;;  %587 = vmatpush.msra.mxu2 %v461_v15  ;;  %v474_v6 = vld [vmem:[#allocation4 + $0x5a8] sm:$0xff] }
  0x3e   : > { %v397_v17 = vld [vmem:[#allocation4 + $0x340] sm:$0xff]  ;;  %517 = vmatpush.msra.mxu0 %v333_v16  ;;  %v326_v7 = vld [vmem:[#allocation4 + $0x108] sm:$0xff] }
  0x3f   : > { %v457_v18 = vld [vmem:[#allocation4 + $0x520] sm:$0xff]  ;;  %552 = vmatpush.msra.mxu1 %v397_v17  ;;  %v406_v9 = vld [vmem:[#allocation4 + $0x388] sm:$0xff]  ;;  %v4805_v17 = vld [vmem:[%s4756_s18 + $0x78] sm:$0xff] }
  0x40   : > { %v329_v19 = vld [vmem:[#allocation4 + $0x120] sm:$0xff]  ;;  %588 = vmatpush.msra.mxu2 %v457_v18  ;;  %v470_v11 = vld [vmem:[#allocation4 + $0x588] sm:$0xff] }
  0x41   : > { %v393_v20 = vld [vmem:[#allocation4 + $0x320] sm:$0xff]  ;;  %518 = vmatpush.msra.mxu0 %v329_v19  ;;  %v4800_v12 = vld [vmem:[%s4756_s18 + $0x28] sm:$0xff] }
  0x42   : > { %v453_v21 = vld [vmem:[#allocation4 + $0x500] sm:$0xff]  ;;  %553 = vmatpush.msra.mxu1 %v393_v20  ;;  %v402_v13 = vld [vmem:[#allocation4 + $0x368] sm:$0xff] }
  0x43   : > { %v325_v22 = vld [vmem:[#allocation4 + $0x100] sm:$0xff]  ;;  %589 = vmatpush.msra.mxu2 %v453_v21  ;;  %v466_v14 = vld [vmem:[#allocation4 + $0x568] sm:$0xff] }
  0x44   : > { %v489_v23 = vld [vmem:[#allocation4 + $0x620] sm:$0xff]  ;;  %519 = vmatpush.msra.mxu0 %v325_v22  ;;  %v322_v15 = vld [vmem:[#allocation4 + $0xe8] sm:$0xff] }
  0x45   : > { %v389_v24 = vld [vmem:[#allocation4 + $0x300] sm:$0xff]  ;;  %631 = vmatpush.msra.mxu3 %v489_v23  ;;  %v398_v16 = vld [vmem:[#allocation4 + $0x348] sm:$0xff]  ;;  %v4811_v23 = vld [vmem:[%s4756_s18 + $0x50] sm:$0xff] }
  0x46   : > { %v485_v25 = vld [vmem:[#allocation4 + $0x600] sm:$0xff]  ;;  %554 = vmatpush.msra.mxu1 %v389_v24  ;;  %v462_v18 = vld [vmem:[#allocation4 + $0x548] sm:$0xff] }
  0x47   : > { %v449_v26 = vld [vmem:[#allocation4 + $0x4e0] sm:$0xff]  ;;  %632 = vmatpush.msra.mxu3 %v485_v25  ;;  %v318_v19 = vld [vmem:[#allocation4 + $0xc8] sm:$0xff] }
  0x48   : > { %v321_v27 = vld [vmem:[#allocation4 + $0xe0] sm:$0xff]  ;;  %590 = vmatpush.msra.mxu2 %v449_v26  ;;  %4395 = vmatmul.msk.f32.vlgmr.msra.gmra.mxu3 %vm493_vm0, %v4767_v29  ;;  %v394_v20 = vld [vmem:[#allocation4 + $0x328] sm:$0xff] }
  0x49   : > { %v385_v28 = vld [vmem:[#allocation4 + $0x2e0] sm:$0xff]  ;;  %520 = vmatpush.msra.mxu0 %v321_v27  ;;  %652 = vmatpush.msrb.mxu3 %v354_v33  ;;  %v458_v21 = vld [vmem:[#allocation4 + $0x528] sm:$0xff] }
  0x4a   : > { %v445_v30 = vld [vmem:[#allocation4 + $0x4c0] sm:$0xff]  ;;  %555 = vmatpush.msra.mxu1 %v385_v28  ;;  %v314_v22 = vld [vmem:[#allocation4 + $0xa8] sm:$0xff] }
  0x4b   : > { %v317_v31 = vld [vmem:[#allocation4 + $0xc0] sm:$0xff]  ;;  %591 = vmatpush.msra.mxu2 %v445_v30  ;;  %653 = vmatpush.msrb.mxu3 %v350_v37  ;;  %v390_v24 = vld [vmem:[#allocation4 + $0x308] sm:$0xff]  ;;  %v491_v37 = vld [vmem:[#allocation4 + $0x630] sm:$0xff] }
  0x4c   : > { %v381_v32 = vld [vmem:[#allocation4 + $0x2c0] sm:$0xff]  ;;  %521 = vmatpush.msra.mxu0 %v317_v31  ;;  %v454_v26 = vld [vmem:[#allocation4 + $0x508] sm:$0xff] }
  0x4d   : > { %v441_v34 = vld [vmem:[#allocation4 + $0x4a0] sm:$0xff]  ;;  %556 = vmatpush.msra.mxu1 %v381_v32  ;;  %654 = vmatpush.msrb.mxu3 %v346_v41  ;;  %v4817_v27 = vld [vmem:[%s4756_s18 + $0x48] sm:$0xff]  ;;  %v4822_v32 = vld [vmem:[%s4756_s18 + $0x98] sm:$0xff] }
  0x4e   : > { %v313_v35 = vld [vmem:[#allocation4 + $0xa0] sm:$0xff]  ;;  %592 = vmatpush.msra.mxu2 %v441_v34  ;;  %v386_v28 = vld [vmem:[#allocation4 + $0x2e8] sm:$0xff] }
  0x4f   : > { %v377_v36 = vld [vmem:[#allocation4 + $0x2a0] sm:$0xff]  ;;  %522 = vmatpush.msra.mxu0 %v313_v35  ;;  %655 = vmatpush.msrb.mxu3 %v342_v49  ;;  %v450_v30 = vld [vmem:[#allocation4 + $0x4e8] sm:$0xff]  ;;  %v4839_v49 = vld [vmem:[%s4756_s18 + $0xb8] sm:$0xff] }
  0x50   : > { %v437_v38 = vld [vmem:[#allocation4 + $0x480] sm:$0xff]  ;;  %557 = vmatpush.msra.mxu1 %v377_v36  ;;  %4396 = vmatmul.msk.f32.gmra.mxu3 %vm493_vm0, %v4772_v45  ;;  %v310_v31 = vld [vmem:[#allocation4 + $0x88] sm:$0xff] }
  0x51   : > { %v309_v39 = vld [vmem:[#allocation4 + $0x80] sm:$0xff]  ;;  %593 = vmatpush.msra.mxu2 %v437_v38  ;;  %656 = vmatpush.msrb.mxu3 %v338_v53  ;;  %v382_v33 = vld [vmem:[#allocation4 + $0x2c8] sm:$0xff]  ;;  %v355_v53 = vld [vmem:[#allocation4 + $0x1f0] sm:$0xff] }
  0x52   : > { %v373_v40 = vld [vmem:[#allocation4 + $0x280] sm:$0xff]  ;;  %523 = vmatpush.msra.mxu0 %v309_v39  ;;  %v446_v34 = vld [vmem:[#allocation4 + $0x4c8] sm:$0xff] }
  0x53   : > { %v433_v42 = vld [vmem:[#allocation4 + $0x460] sm:$0xff]  ;;  %558 = vmatpush.msra.mxu1 %v373_v40  ;;  %657 = vmatpush.msrb.mxu3 %v334_v63  ;;  %v306_v35 = vld [vmem:[#allocation4 + $0x68] sm:$0xff]  ;;  %v4828_v40 = vld [vmem:[%s4756_s18 + $0x70] sm:$0xff] }
  0x54   : > { %v305_v43 = vld [vmem:[#allocation4 + $0x60] sm:$0xff]  ;;  %594 = vmatpush.msra.mxu2 %v433_v42  ;;  %v378_v36 = vld [vmem:[#allocation4 + $0x2a8] sm:$0xff] }
  0x55   : > { %v369_v44 = vld [vmem:[#allocation4 + $0x260] sm:$0xff]  ;;  %524 = vmatpush.msra.mxu0 %v305_v43  ;;  %658 = vmatpush.msrb.mxu3 %v330_v3  ;;  %v442_v38 = vld [vmem:[#allocation4 + $0x4a8] sm:$0xff]  ;;  %v419_v3 = vld [vmem:[#allocation4 + $0x3f0] sm:$0xff] }
  0x56   : > { %v429_v46 = vld [vmem:[#allocation4 + $0x440] sm:$0xff]  ;;  %559 = vmatpush.msra.mxu1 %v369_v44  ;;  %v302_v39 = vld [vmem:[#allocation4 + $0x48] sm:$0xff] }
  0x57   : > { %v301_v47 = vld [vmem:[#allocation4 + $0x40] sm:$0xff]  ;;  %595 = vmatpush.msra.mxu2 %v429_v46  ;;  %659 = vmatpush.msrb.mxu3 %v326_v7  ;;  %v374_v41 = vld [vmem:[#allocation4 + $0x288] sm:$0xff]  ;;  %v479_v7 = vld [vmem:[#allocation4 + $0x5d0] sm:$0xff] }
  0x58   : > { %v365_v48 = vld [vmem:[#allocation4 + $0x240] sm:$0xff]  ;;  %525 = vmatpush.msra.mxu0 %v301_v47  ;;  %4397 = vmatmul.msk.f32.gmra.mxu3 %vm493_vm0, %v4788_v1  ;;  %v438_v43 = vld [vmem:[#allocation4 + $0x488] sm:$0xff] }
  0x59   : > { %v425_v50 = vld [vmem:[#allocation4 + $0x420] sm:$0xff]  ;;  %560 = vmatpush.msra.mxu1 %v365_v48  ;;  %660 = vmatpush.msrb.mxu3 %v322_v15  ;;  %v4834_v44 = vld [vmem:[%s4756_s18 + $0x68] sm:$0xff]  ;;  %v475_v15 = vld [vmem:[#allocation4 + $0x5b0] sm:$0xff] }
  0x5a   : > { %v297_v51 = vld [vmem:[#allocation4 + $0x20] sm:$0xff]  ;;  %596 = vmatpush.msra.mxu2 %v425_v50  ;;  %v298_v46 = vld [vmem:[#allocation4 + $0x28] sm:$0xff] }
  0x5b   : > { %v361_v52 = vld [vmem:[#allocation4 + $0x220] sm:$0xff]  ;;  %526 = vmatpush.msra.mxu0 %v297_v51  ;;  %661 = vmatpush.msrb.mxu3 %v318_v19  ;;  %v370_v47 = vld [vmem:[#allocation4 + $0x268] sm:$0xff]  ;;  %v407_v19 = vld [vmem:[#allocation4 + $0x390] sm:$0xff] }
  0x5c   : > { %v421_v54 = vld [vmem:[#allocation4 + $0x400] sm:$0xff]  ;;  %561 = vmatpush.msra.mxu1 %v361_v52  ;;  %v434_v48 = vld [vmem:[#allocation4 + $0x468] sm:$0xff] }
  0x5d   : > { %v293_v55 = vld [vmem:[#allocation4] sm:$0xff]  ;;  %597 = vmatpush.msra.mxu2 %v421_v54  ;;  %662 = vmatpush.msrb.mxu3 %v314_v22  ;;  %v294_v50 = vld [vmem:[#allocation4 + $0x8] sm:$0xff]  ;;  %v331_v22 = vld [vmem:[#allocation4 + $0x130] sm:$0xff] }
  0x5e   : > { %v357_v57 = vld [vmem:[#allocation4 + $0x200] sm:$0xff]  ;;  %527 = vmatpush.msra.mxu0 %v293_v55  ;;  %598 = vmatmul.f32.vlgmr.msra.gmra.mxu2 %v4777_v56  ;;  %v366_v51 = vld [vmem:[#allocation4 + $0x248] sm:$0xff]  ;;  %v4845_v55 = vld [vmem:[%s4756_s18 + $0x90] sm:$0xff] }
  0x5f   : > { %v4780_v59 = vld [vmem:[%s4756_s18] sm:$0xff]  ;;  %562 = vmatpush.msra.mxu1 %v357_v57  ;;  %771 = vmatpush.msrb.mxu2 %v490_v58  ;;  %v430_v52 = vld [vmem:[#allocation4 + $0x448] sm:$0xff] }
  0x60   : > { %528 = vmatmul.f32.vlgmr.msra.gmra.mxu0 %v4780_v59  ;;  %563 = vmatmul.f32.vlgmr.msra.gmra.mxu1 %v4783_v60  ;;  %v4797_v10 = vld [vmem:[%s4756_s18 + $0x20] sm:$0xff]  ;;  %v362_v54 = vld [vmem:[#allocation4 + $0x228] sm:$0xff] }
  0x61   : > { %687 = vmatpush.msrb.mxu0 %v418_v61  ;;  %722 = vmatpush.msrb.mxu1 %v482_v62  ;;  %v4814_v25 = vld [vmem:[%s4756_s18 + $0x40] sm:$0xff]  ;;  %v426_v57 = vld [vmem:[#allocation4 + $0x428] sm:$0xff]  ;;  %v351_v61 = vld [vmem:[#allocation4 + $0x1d0] sm:$0xff] }
  0x62   : > { %772 = vmatpush.msrb.mxu2 %v486_v5  ;;  %4398 = vmatmul.msk.f32.gmra.mxu3 %vm493_vm0, %v4805_v17  ;;  %v4831_v42 = vld [vmem:[%s4756_s18 + $0x60] sm:$0xff]  ;;  %v4851_v62 = vld [vmem:[%s4756_s18 + $0x88] sm:$0xff]  ;;  %v343_v5 = vld [vmem:[#allocation4 + $0x190] sm:$0xff] }
  0x63   : > { %688 = vmatpush.msrb.mxu0 %v414_v0  ;;  %723 = vmatpush.msrb.mxu1 %v478_v2  ;;  %v4848_v58 = vld [vmem:[%s4756_s18 + $0x80] sm:$0xff]  ;;  %v358_v63 = vld [vmem:[#allocation4 + $0x208] sm:$0xff]  ;;  %v347_v2 = vld [vmem:[#allocation4 + $0x1b0] sm:$0xff] }
  0x64   : > { %663 = vmatpush.msrb.mxu3 %v310_v31  ;;  %911 = vmatpush.msra.mxu2 %v491_v37  ;;  %v422_v0 = vld [vmem:[#allocation4 + $0x408] sm:$0xff]  ;;  %v463_v31 = vld [vmem:[#allocation4 + $0x550] sm:$0xff] }
  0x65   : > { %689 = vmatpush.msrb.mxu0 %v410_v4  ;;  %724 = vmatpush.msrb.mxu1 %v474_v6  ;;  %v483_v4 = vld [vmem:[#allocation4 + $0x5f0] sm:$0xff] }
  0x66   : > { %601 = vmatmul.f32.gmra.mxu2 %v4794_v8  ;;  %664 = vmatpush.msrb.mxu3 %v306_v35  ;;  %v415_v6 = vld [vmem:[#allocation4 + $0x3d0] sm:$0xff] }
  0x67   : > { %690 = vmatpush.msrb.mxu0 %v406_v9  ;;  %725 = vmatpush.msrb.mxu1 %v470_v11  ;;  %v339_v9 = vld [vmem:[#allocation4 + $0x170] sm:$0xff] }
  0x68   : > { %531 = vmatmul.f32.gmra.mxu0 %v4797_v10  ;;  %566 = vmatmul.f32.gmra.mxu1 %v4800_v12  ;;  %v4858_v11 = vld [vmem:[%s4756_s18 + $0xb0] sm:$0xff] }
  0x69   : > { %691 = vmatpush.msrb.mxu0 %v402_v13  ;;  %726 = vmatpush.msrb.mxu1 %v466_v14  ;;  %v411_v13 = vld [vmem:[#allocation4 + $0x3b0] sm:$0xff]  ;;  %v4861_v14 = vld [vmem:[%s4756_s18 + $0xa0] sm:$0xff] }
  0x6a   : > { %4399 = vmatmul.msk.f32.gmra.mxu3 %vm493_vm0, %v4822_v32  ;;  %v459_v35 = vld [vmem:[#allocation4 + $0x530] sm:$0xff] }
  0x6b   : > { %692 = vmatpush.msrb.mxu0 %v398_v16  ;;  %727 = vmatpush.msrb.mxu1 %v462_v18  ;;  %v4864_v16 = vld [vmem:[%s4756_s18 + $0xa8] sm:$0xff]  ;;  %v335_v18 = vld [vmem:[#allocation4 + $0x150] sm:$0xff] }
  0x6c   : > { %665 = vmatpush.msrb.mxu3 %v302_v39  ;;  %v391_v37 = vld [vmem:[#allocation4 + $0x310] sm:$0xff] }
  0x6d   : > { %693 = vmatpush.msrb.mxu0 %v394_v20  ;;  %728 = vmatpush.msrb.mxu1 %v458_v21  ;;  %v471_v20 = vld [vmem:[#allocation4 + $0x590] sm:$0xff] }
  0x6e   : > { %604 = vmatmul.f32.gmra.mxu2 %v4811_v23  ;;  %666 = vmatpush.msrb.mxu3 %v298_v46  ;;  %v487_v21 = vld [vmem:[#allocation4 + $0x610] sm:$0xff] }
  0x6f   : > { %694 = vmatpush.msrb.mxu0 %v390_v24  ;;  %729 = vmatpush.msrb.mxu1 %v454_v26  ;;  %v403_v24 = vld [vmem:[#allocation4 + $0x370] sm:$0xff] }
  0x70   : > { %534 = vmatmul.f32.gmra.mxu0 %v4814_v25  ;;  %569 = vmatmul.f32.gmra.mxu1 %v4817_v27  ;;  %v467_v26 = vld [vmem:[#allocation4 + $0x570] sm:$0xff] }
  0x71   : > { %695 = vmatpush.msrb.mxu0 %v386_v28  ;;  %730 = vmatpush.msrb.mxu1 %v450_v30  ;;  %v327_v28 = vld [vmem:[#allocation4 + $0x110] sm:$0xff] }
  0x72   : > { %4400 = vmatmul.msk.f32.gmra.mxu3 %vm493_vm0, %v4839_v49  ;;  %v399_v30 = vld [vmem:[#allocation4 + $0x350] sm:$0xff]  ;;  %912 = vmatpush.msra.mxu2 %v487_v21  ;;  %v484_v21 = vld [vmem:[#allocation4 + $0x5f8] sm:$0xff] }
  0x73   : > { %696 = vmatpush.msrb.mxu0 %v382_v33  ;;  %731 = vmatpush.msrb.mxu1 %v446_v34  ;;  %v323_v33 = vld [vmem:[#allocation4 + $0xf0] sm:$0xff] }
  0x74   : > { %667 = vmatpush.msrb.mxu3 %v294_v50  ;;  %v395_v34 = vld [vmem:[#allocation4 + $0x330] sm:$0xff] }
  0x75   : > { %697 = vmatpush.msrb.mxu0 %v378_v36  ;;  %732 = vmatpush.msrb.mxu1 %v442_v38  ;;  %v319_v36 = vld [vmem:[#allocation4 + $0xd0] sm:$0xff] }
  0x76   : > { %607 = vmatmul.f32.gmra.mxu2 %v4828_v40  ;;  %792 = vmatpush.msra.mxu3 %v355_v53  ;;  %v455_v38 = vld [vmem:[#allocation4 + $0x510] sm:$0xff] }
  0x77   : > { %698 = vmatpush.msrb.mxu0 %v374_v41  ;;  %733 = vmatpush.msrb.mxu1 %v438_v43  ;;  %v315_v39 = vld [vmem:[#allocation4 + $0xb0] sm:$0xff] }
  0x78   : > { %537 = vmatmul.f32.gmra.mxu0 %v4831_v42  ;;  %572 = vmatmul.f32.gmra.mxu1 %v4834_v44  ;;  %v387_v41 = vld [vmem:[#allocation4 + $0x2f0] sm:$0xff] }
  0x79   : > { %699 = vmatpush.msrb.mxu0 %v370_v47  ;;  %734 = vmatpush.msrb.mxu1 %v434_v48  ;;  %v451_v43 = vld [vmem:[#allocation4 + $0x4f0] sm:$0xff] }
  0x7a   : > { %793 = vmatpush.msra.mxu3 %v351_v61  ;;  %v311_v46 = vld [vmem:[#allocation4 + $0x90] sm:$0xff] }
  0x7b   : > { %700 = vmatpush.msrb.mxu0 %v366_v51  ;;  %735 = vmatpush.msrb.mxu1 %v430_v52  ;;  %v383_v47 = vld [vmem:[#allocation4 + $0x2d0] sm:$0xff] }
  0x7c   : > { %794 = vmatpush.msra.mxu3 %v347_v2  ;;  %v447_v48 = vld [vmem:[#allocation4 + $0x4d0] sm:$0xff] }
  0x7d   : > { %701 = vmatpush.msrb.mxu0 %v362_v54  ;;  %736 = vmatpush.msrb.mxu1 %v426_v57  ;;  %v307_v50 = vld [vmem:[#allocation4 + $0x70] sm:$0xff] }
  0x7e   : > { %610 = vmatmul.f32.gmra.mxu2 %v4845_v55  ;;  %668 = vmatmul.f32.vlgmr.msrb.gmra.mxu3 %v4780_v59  ;;  %v379_v51 = vld [vmem:[#allocation4 + $0x2b0] sm:$0xff] }
  0x7f   : > { %702 = vmatpush.msrb.mxu0 %v358_v63  ;;  %737 = vmatpush.msrb.mxu1 %v422_v0  ;;  %v443_v52 = vld [vmem:[#allocation4 + $0x4b0] sm:$0xff] }
  0x80   : > { %540 = vmatmul.f32.gmra.mxu0 %v4848_v58  ;;  %575 = vmatmul.f32.gmra.mxu1 %v4851_v62  ;;  %v303_v53 = vld [vmem:[#allocation4 + $0x50] sm:$0xff] }
  0x81   : > { %827 = vmatpush.msra.mxu0 %v419_v3  ;;  %862 = vmatpush.msra.mxu1 %v483_v4  ;;  %v375_v54 = vld [vmem:[#allocation4 + $0x290] sm:$0xff] }
  0x82   : > { %795 = vmatpush.msra.mxu3 %v343_v5  ;;  %v439_v57 = vld [vmem:[#allocation4 + $0x490] sm:$0xff]  ;;  %v356_v5 = vld [vmem:[#allocation4 + $0x1f8] sm:$0xff] }
  0x83   : > { %828 = vmatpush.msra.mxu0 %v415_v6  ;;  %863 = vmatpush.msra.mxu1 %v479_v7  ;;  %v299_v61 = vld [vmem:[#allocation4 + $0x30] sm:$0xff] }
  0x84   : > { %796 = vmatpush.msra.mxu3 %v339_v9  ;;  %v371_v63 = vld [vmem:[#allocation4 + $0x270] sm:$0xff]  ;;  %v352_v9 = vld [vmem:[#allocation4 + $0x1d8] sm:$0xff] }
  0x85   : > { %829 = vmatpush.msra.mxu0 %v411_v13  ;;  %864 = vmatpush.msra.mxu1 %v475_v15  ;;  %v435_v0 = vld [vmem:[#allocation4 + $0x470] sm:$0xff]  ;;  %v492_v15 = vld [vmem:[#allocation4 + $0x638] sm:$0xff] }
  0x86   : > { %613 = vmatmul.f32.gmra.mxu2 %v4858_v11  ;;  %797 = vmatpush.msra.mxu3 %v335_v18  ;;  %v295_v2 = vld [vmem:[#allocation4 + $0x10] sm:$0xff] }
  0x87   : > { %830 = vmatpush.msra.mxu0 %v407_v19  ;;  %865 = vmatpush.msra.mxu1 %v471_v20  ;;  %v367_v3 = vld [vmem:[#allocation4 + $0x250] sm:$0xff]  ;;  %v348_v19 = vld [vmem:[#allocation4 + $0x1b8] sm:$0xff] }
  0x88   : > { %543 = vmatmul.f32.gmra.mxu0 %v4861_v14  ;;  %578 = vmatmul.f32.gmra.mxu1 %v4864_v16  ;;  %v431_v4 = vld [vmem:[#allocation4 + $0x450] sm:$0xff]  ;;  %v420_v20 = vld [vmem:[#allocation4 + $0x3f8] sm:$0xff] }
  0x89   : > { %671 = vmatmul.f32.gmra.mxu3 %v4797_v10  ;;  %831 = vmatpush.msra.mxu0 %v403_v24  ;;  %v363_v6 = vld [vmem:[#allocation4 + $0x230] sm:$0xff]  ;;  %v416_v24 = vld [vmem:[#allocation4 + $0x3d8] sm:$0xff] }
  0x8a   : > { %798 = vmatpush.msra.mxu3 %v331_v22  ;;  %866 = vmatpush.msra.mxu1 %v467_v26  ;;  %v427_v7 = vld [vmem:[#allocation4 + $0x430] sm:$0xff]  ;;  %v344_v22 = vld [vmem:[#allocation4 + $0x198] sm:$0xff] }
  0x8b   : > { %832 = vmatpush.msra.mxu0 %v399_v30  ;;  %v359_v13 = vld [vmem:[#allocation4 + $0x210] sm:$0xff]  ;;  %v480_v26 = vld [vmem:[#allocation4 + $0x5d8] sm:$0xff] }
  0x8c   : > { %799 = vmatpush.msra.mxu3 %v327_v28  ;;  %867 = vmatpush.msra.mxu1 %v463_v31  ;;  %v423_v18 = vld [vmem:[#allocation4 + $0x410] sm:$0xff]  ;;  %v340_v28 = vld [vmem:[#allocation4 + $0x178] sm:$0xff] }
  0x8d   : > { %833 = vmatpush.msra.mxu0 %v395_v34  ;;  %v412_v30 = vld [vmem:[#allocation4 + $0x3b8] sm:$0xff] }
  0x8e   : > { %4401 = vmatmul.msk.f32.vlgmr.msrb.gmra.mxu2 %vm493_vm0, %v4767_v29  ;;  %800 = vmatpush.msra.mxu3 %v323_v33  ;;  %v476_v31 = vld [vmem:[#allocation4 + $0x5b8] sm:$0xff] }
  0x8f   : > { %868 = vmatpush.msra.mxu1 %v459_v35  ;;  %834 = vmatpush.msra.mxu0 %v391_v37  ;;  %v336_v33 = vld [vmem:[#allocation4 + $0x158] sm:$0xff] }
  0x90   : > { %703 = vmatmul.f32.vlgmr.msrb.gmra.mxu0 %v4783_v60  ;;  %738 = vmatmul.f32.vlgmr.msrb.gmra.mxu1 %v4777_v56  ;;  %v408_v34 = vld [vmem:[#allocation4 + $0x398] sm:$0xff] }
  0x91   : > { %801 = vmatpush.msra.mxu3 %v319_v36  ;;  %869 = vmatpush.msra.mxu1 %v455_v38  ;;  %v472_v35 = vld [vmem:[#allocation4 + $0x598] sm:$0xff] }
  0x92   : > { %674 = vmatmul.f32.gmra.mxu3 %v4814_v25  ;;  %835 = vmatpush.msra.mxu0 %v387_v41  ;;  %v332_v36 = vld [vmem:[#allocation4 + $0x138] sm:$0xff] }
  0x93   : > { %802 = vmatpush.msra.mxu3 %v315_v39  ;;  %870 = vmatpush.msra.mxu1 %v451_v43  ;;  %v404_v37 = vld [vmem:[#allocation4 + $0x378] sm:$0xff] }
  0x94   : > { %836 = vmatpush.msra.mxu0 %v383_v47  ;;  %1051 = vmatpush.msrb.mxu2 %v492_v15  ;;  %v468_v38 = vld [vmem:[#allocation4 + $0x578] sm:$0xff] }
  0x95   : > { %803 = vmatpush.msra.mxu3 %v311_v46  ;;  %871 = vmatpush.msra.mxu1 %v447_v48  ;;  %v328_v39 = vld [vmem:[#allocation4 + $0x118] sm:$0xff] }
  0x96   : > { %4402 = vmatmul.msk.f32.gmra.mxu2 %vm493_vm0, %v4772_v45  ;;  %837 = vmatpush.msra.mxu0 %v379_v51  ;;  %v400_v41 = vld [vmem:[#allocation4 + $0x358] sm:$0xff] }
  0x97   : > { %804 = vmatpush.msra.mxu3 %v307_v50  ;;  %872 = vmatpush.msra.mxu1 %v443_v52  ;;  %v464_v43 = vld [vmem:[#allocation4 + $0x558] sm:$0xff] }
  0x98   : > { %706 = vmatmul.f32.gmra.mxu0 %v4800_v12  ;;  %741 = vmatmul.f32.gmra.mxu1 %v4794_v8  ;;  %v324_v46 = vld [vmem:[#allocation4 + $0xf8] sm:$0xff] }
  0x99   : > { %805 = vmatpush.msra.mxu3 %v303_v53  ;;  %838 = vmatpush.msra.mxu0 %v375_v54  ;;  %v396_v47 = vld [vmem:[#allocation4 + $0x338] sm:$0xff] }
  0x9a   : > { %677 = vmatmul.f32.gmra.mxu3 %v4831_v42  ;;  %873 = vmatpush.msra.mxu1 %v439_v57  ;;  %v460_v48 = vld [vmem:[#allocation4 + $0x538] sm:$0xff] }
  0x9b   : > { %806 = vmatpush.msra.mxu3 %v299_v61  ;;  %839 = vmatpush.msra.mxu0 %v371_v63  ;;  %v320_v50 = vld [vmem:[#allocation4 + $0xd8] sm:$0xff] }
  0x9c   : > { %874 = vmatpush.msra.mxu1 %v435_v0  ;;  %v392_v51 = vld [vmem:[#allocation4 + $0x318] sm:$0xff] }
  0x9d   : > { %807 = vmatpush.msra.mxu3 %v295_v2  ;;  %840 = vmatpush.msra.mxu0 %v367_v3  ;;  %v488_v52 = vld [vmem:[#allocation4 + $0x618] sm:$0xff] }
  0x9e   : > { %4403 = vmatmul.msk.f32.gmra.mxu2 %vm493_vm0, %v4788_v1  ;;  %875 = vmatpush.msra.mxu1 %v431_v4  ;;  %v456_v53 = vld [vmem:[#allocation4 + $0x518] sm:$0xff] }
  0x9f   : > { %932 = vmatpush.msrb.mxu3 %v356_v5  ;;  %841 = vmatpush.msra.mxu0 %v363_v6  ;;  %v316_v54 = vld [vmem:[#allocation4 + $0xb8] sm:$0xff] }
  0xa0   : > { %709 = vmatmul.f32.gmra.mxu0 %v4817_v27  ;;  %744 = vmatmul.f32.gmra.mxu1 %v4811_v23  ;;  %v388_v57 = vld [vmem:[#allocation4 + $0x2f8] sm:$0xff] }
  0xa1   : > { %876 = vmatpush.msra.mxu1 %v427_v7  ;;  %933 = vmatpush.msrb.mxu3 %v352_v9  ;;  %v452_v61 = vld [vmem:[#allocation4 + $0x4f8] sm:$0xff] }
  0xa2   : > { %680 = vmatmul.f32.gmra.mxu3 %v4848_v58  ;;  %842 = vmatpush.msra.mxu0 %v359_v13  ;;  %v312_v63 = vld [vmem:[#allocation4 + $0x98] sm:$0xff] }
  0xa3   : > { %877 = vmatpush.msra.mxu1 %v423_v18  ;;  %934 = vmatpush.msrb.mxu3 %v348_v19  ;;  %v384_v0 = vld [vmem:[#allocation4 + $0x2d8] sm:$0xff] }
  0xa4   : > { %967 = vmatpush.msrb.mxu0 %v420_v20  ;;  %1052 = vmatpush.msrb.mxu2 %v488_v52  ;;  %v448_v2 = vld [vmem:[#allocation4 + $0x4d8] sm:$0xff] }
  0xa5   : > { %1002 = vmatpush.msrb.mxu1 %v484_v21  ;;  %935 = vmatpush.msrb.mxu3 %v344_v22  ;;  %v308_v3 = vld [vmem:[#allocation4 + $0x78] sm:$0xff] }
  0xa6   : > { %4404 = vmatmul.msk.f32.gmra.mxu2 %vm493_vm0, %v4805_v17  ;;  %968 = vmatpush.msrb.mxu0 %v416_v24  ;;  %v380_v4 = vld [vmem:[#allocation4 + $0x2b8] sm:$0xff] }
  0xa7   : > { %1003 = vmatpush.msrb.mxu1 %v480_v26  ;;  %936 = vmatpush.msrb.mxu3 %v340_v28  ;;  %v444_v5 = vld [vmem:[#allocation4 + $0x4b8] sm:$0xff] }
  0xa8   : > { %712 = vmatmul.f32.gmra.mxu0 %v4834_v44  ;;  %747 = vmatmul.f32.gmra.mxu1 %v4828_v40  ;;  %v304_v6 = vld [vmem:[#allocation4 + $0x58] sm:$0xff] }
  0xa9   : > { %969 = vmatpush.msrb.mxu0 %v412_v30  ;;  %1004 = vmatpush.msrb.mxu1 %v476_v31  ;;  %v376_v7 = vld [vmem:[#allocation4 + $0x298] sm:$0xff] }
  0xaa   : > { %683 = vmatmul.f32.gmra.mxu3 %v4861_v14  ;;  %v440_v9 = vld [vmem:[#allocation4 + $0x498] sm:$0xff] }
  0xab   : > { %937 = vmatpush.msrb.mxu3 %v336_v33  ;;  %970 = vmatpush.msrb.mxu0 %v408_v34  ;;  %v300_v13 = vld [vmem:[#allocation4 + $0x38] sm:$0xff] }
  0xac   : > { %1005 = vmatpush.msrb.mxu1 %v472_v35  ;;  %v372_v15 = vld [vmem:[#allocation4 + $0x278] sm:$0xff] }
  0xad   : > { %938 = vmatpush.msrb.mxu3 %v332_v36  ;;  %971 = vmatpush.msrb.mxu0 %v404_v37  ;;  %v436_v18 = vld [vmem:[#allocation4 + $0x478] sm:$0xff] }
  0xae   : > { %4405 = vmatmul.msk.f32.gmra.mxu2 %vm493_vm0, %v4822_v32  ;;  %1006 = vmatpush.msrb.mxu1 %v468_v38  ;;  %v296_v19 = vld [vmem:[#allocation4 + $0x18] sm:$0xff] }
  0xaf   : > { %939 = vmatpush.msrb.mxu3 %v328_v39  ;;  %972 = vmatpush.msrb.mxu0 %v400_v41  ;;  %v368_v20 = vld [vmem:[#allocation4 + $0x258] sm:$0xff] }
  0xb0   : > { %715 = vmatmul.f32.gmra.mxu0 %v4851_v62  ;;  %750 = vmatmul.f32.gmra.mxu1 %v4845_v55  ;;  %v432_v21 = vld [vmem:[#allocation4 + $0x458] sm:$0xff] }
  0xb1   : > { %1007 = vmatpush.msrb.mxu1 %v464_v43  ;;  %940 = vmatpush.msrb.mxu3 %v324_v46  ;;  %v364_v22 = vld [vmem:[#allocation4 + $0x238] sm:$0xff] }
  0xb2   : > { %808 = vmatmul.f32.vlgmr.msra.gmra.mxu3 %v4780_v59  ;;  %973 = vmatpush.msrb.mxu0 %v396_v47  ;;  %v428_v24 = vld [vmem:[#allocation4 + $0x438] sm:$0xff] }
  0xb3   : > { %1008 = vmatpush.msrb.mxu1 %v460_v48  ;;  %941 = vmatpush.msrb.mxu3 %v320_v50  ;;  %v360_v26 = vld [vmem:[#allocation4 + $0x218] sm:$0xff] }
  0xb4   : > { %974 = vmatpush.msrb.mxu0 %v392_v51  ;;  %v424_v28 = vld [vmem:[#allocation4 + $0x418] sm:$0xff] }
  0xb5   : > { %942 = vmatpush.msrb.mxu3 %v316_v54  ;;  %1009 = vmatpush.msrb.mxu1 %v456_v53  ;;  %v1119_v52 = vld [vmem:[%s8594_s2 + $0x58] sm:$0xff] }
  0xb6   : > { %4406 = vmatmul.msk.f32.gmra.mxu2 %vm493_vm0, %v4839_v49  ;;  %975 = vmatpush.msrb.mxu0 %v388_v57 }
  0xb7   : > { %1010 = vmatpush.msrb.mxu1 %v452_v61  ;;  %943 = vmatpush.msrb.mxu3 %v312_v63 }
  0xb8   : > { %718 = vmatmul.f32.gmra.mxu0 %v4864_v16  ;;  %753 = vmatmul.f32.gmra.mxu1 %v4858_v11 }
  0xb9   : > { %976 = vmatpush.msrb.mxu0 %v384_v0  ;;  %1011 = vmatpush.msrb.mxu1 %v448_v2  ;;  %v1116_v0 = vld [vmem:[%s8594_s2 + $0x40] sm:$0xff] }
  0xba   : > { %811 = vmatmul.f32.gmra.mxu3 %v4797_v10 }
  0xbb   : > { %944 = vmatpush.msrb.mxu3 %v308_v3  ;;  %977 = vmatpush.msrb.mxu0 %v380_v4  ;;  %v1115_v3 = vld [vmem:[%s8594_s2 + $0x38] sm:$0xff] }
  0xbc   : > { %1012 = vmatpush.msrb.mxu1 %v444_v5 }
  0xbd   : > { %945 = vmatpush.msrb.mxu3 %v304_v6  ;;  %978 = vmatpush.msrb.mxu0 %v376_v7 }
  0xbe   : > { %4407 = vmatmul.msk.f32.vlgmr.msra.gmra.mxu2 %vm493_vm0, %v4767_v29  ;;  %1013 = vmatpush.msrb.mxu1 %v440_v9 }
  0xbf   : > { %946 = vmatpush.msrb.mxu3 %v300_v13  ;;  %979 = vmatpush.msrb.mxu0 %v372_v15  ;;  %v1112_v13 = vld [vmem:[%s8594_s2 + $0x20] sm:$0xff] }
  0xc0   : > { %843 = vmatmul.f32.vlgmr.msra.gmra.mxu0 %v4783_v60  ;;  %878 = vmatmul.f32.vlgmr.msra.gmra.mxu1 %v4777_v56 }
  0xc1   : > { %1014 = vmatpush.msrb.mxu1 %v436_v18  ;;  %947 = vmatpush.msrb.mxu3 %v296_v19  ;;  %v1111_v18 = vld [vmem:[%s8594_s2 + $0x18] sm:$0xff] }
  0xc2   : > { %814 = vmatmul.f32.gmra.mxu3 %v4814_v25  ;;  %980 = vmatpush.msrb.mxu0 %v368_v20 }
  0xc3   : > { %1015 = vmatpush.msrb.mxu1 %v432_v21  ;;  %v1110_v21 = vld [vmem:[%s8594_s2 + $0x10] sm:$0xff] }
  0xc4   : > { %981 = vmatpush.msrb.mxu0 %v364_v22 }
  0xc5   : > { %1016 = vmatpush.msrb.mxu1 %v428_v24  ;;  %v1109_v24 = vld [vmem:[%s8594_s2 + $0x8] sm:$0xff] }
  0xc6   : > { %4408 = vmatmul.msk.f32.gmra.mxu2 %vm493_vm0, %v4772_v45  ;;  %982 = vmatpush.msrb.mxu0 %v360_v26 }
  0xc7   : > { %1017 = vmatpush.msrb.mxu1 %v424_v28 }
  0xc8   : > { %846 = vmatmul.f32.gmra.mxu0 %v4800_v12  ;;  %881 = vmatmul.f32.gmra.mxu1 %v4794_v8 }
  0xca   : > { %817 = vmatmul.f32.gmra.mxu3 %v4831_v42 }
  0xcb   : > { %v4915_v30 = vpop.f32.mrf.mxu3 }
  0xce   : > { %4409 = vmatmul.msk.f32.gmra.mxu2 %vm493_vm0, %v4788_v1 }
  0xd0   : > { %849 = vmatmul.f32.gmra.mxu0 %v4817_v27  ;;  %884 = vmatmul.f32.gmra.mxu1 %v4811_v23 }
  0xd2   : > { %820 = vmatmul.f32.gmra.mxu3 %v4848_v58 }
  0xd3   : > { %v4922_v31 = vpop.f32.mrf.mxu3 }
  0xd6   : > { %4410 = vmatmul.msk.f32.gmra.mxu2 %vm493_vm0, %v4805_v17 }
  0xd8   : > { %852 = vmatmul.f32.gmra.mxu0 %v4834_v44  ;;  %887 = vmatmul.f32.gmra.mxu1 %v4828_v40 }
  0xda   : > { %823 = vmatmul.f32.gmra.mxu3 %v4861_v14 }
  0xdb   : > { %v4939_v38 = vpop.f32.mrf.mxu3 }
  0xdd   : > { %v4924_v33 = vpop.f32.mrf.mxu0  ;;  %v4926_v34 = vpop.f32.mrf.mxu1 }
  0xde   : > { %4411 = vmatmul.msk.f32.gmra.mxu2 %vm493_vm0, %v4822_v32 }
  0xe0   : > { %855 = vmatmul.f32.gmra.mxu0 %v4851_v62  ;;  %890 = vmatmul.f32.gmra.mxu1 %v4845_v55 }
  0xe1   : > { %v4932_v35 = vpop.f32.mrf.mxu2 }
  0xe2   : > { %948 = vmatmul.f32.vlgmr.msrb.gmra.mxu3 %v4780_v59 }
  0xe5   : > { %v4935_v36 = vpop.f32.mrf.mxu0  ;;  %v4937_v37 = vpop.f32.mrf.mxu1 }
  0xe6   : > { %4412 = vmatmul.msk.f32.gmra.mxu2 %vm493_vm0, %v4839_v49  ;;  %v4952_v43 = vpop.f32.mrf.mxu3 }
  0xe8   : > { %858 = vmatmul.f32.gmra.mxu0 %v4864_v16  ;;  %893 = vmatmul.f32.gmra.mxu1 %v4858_v11 }
  0xe9   : > { %v4945_v39 = vpop.f32.mrf.mxu2 }
  0xea   : > { %951 = vmatmul.f32.gmra.mxu3 %v4797_v10 }
  0xed   : > { %v4948_v41 = vpop.f32.mrf.mxu0  ;;  %v4950_v59 = vpop.f32.mrf.mxu1 }
  0xee   : > { %4413 = vmatmul.msk.f32.vlgmr.msrb.gmra.mxu2 %vm493_vm0, %v4767_v29  ;;  %v4965_v48 = vpop.f32.mrf.mxu3 }
  0xf0   : > { %983 = vmatmul.f32.vlgmr.msrb.gmra.mxu0 %v4783_v60  ;;  %1018 = vmatmul.f32.vlgmr.msrb.gmra.mxu1 %v4777_v56 }
  0xf1   : > { %v4958_v46 = vpop.f32.mrf.mxu2 }
  0xf2   : > { %954 = vmatmul.f32.gmra.mxu3 %v4814_v25 }
  0xf5   : > { %v4961_v47 = vpop.f32.mrf.mxu0  ;;  %v4963_v10 = vpop.f32.mrf.mxu1 }
  0xf6   : > { %4414 = vmatmul.msk.f32.gmra.mxu2 %vm493_vm0, %v4772_v45  ;;  %v4978_v25 = vpop.f32.mrf.mxu3 }
  0xf8   : > { %986 = vmatmul.f32.gmra.mxu0 %v4800_v12  ;;  %1021 = vmatmul.f32.gmra.mxu1 %v4794_v8 }
  0xf9   : > { %v4971_v29 = vpop.f32.mrf.mxu2 }
  0xfa   : > { %957 = vmatmul.f32.gmra.mxu3 %v4831_v42 }
  0xfd   : > { %v4974_v56 = vpop.f32.mrf.mxu0  ;;  %v4976_v60 = vpop.f32.mrf.mxu1 }
  0xfe   : > { %4415 = vmatmul.msk.f32.gmra.mxu2 %vm493_vm0, %v4788_v1  ;;  %v1123_v1 = vld [vmem:[%s8594_s2 + $0x78] sm:$0xff] }
  0xff   : > { %1140 = vmatpush.msra.mxu3 %v1123_v1  ;;  %v1108_v1 = vld [vmem:[%s8594_s2] sm:$0xff] }
 0x100   : > { %989 = vmatmul.f32.gmra.mxu0 %v4817_v27  ;;  %1024 = vmatmul.f32.gmra.mxu1 %v4811_v23  ;;  %v1122_v27 = vld [vmem:[%s8594_s2 + $0x70] sm:$0xff] }
 0x101   : > { %v4984_v45 = vpop.f32.mrf.mxu2  ;;  %v669_v42 = vpop.f32.mrf.mxu3  ;;  %1141 = vmatpush.msra.mxu3 %v1122_v27 }
 0x102   : > { %960 = vmatmul.f32.gmra.mxu3 %v4848_v58 }
 0x105   : > { %v4987_v8 = vpop.f32.mrf.mxu0  ;;  %v4989_v12 = vpop.f32.mrf.mxu1 }
 0x106   : > { %4416 = vmatmul.msk.f32.gmra.mxu2 %vm493_vm0, %v4805_v17  ;;  %v1121_v17 = vld [vmem:[%s8594_s2 + $0x68] sm:$0xff] }
 0x107   : > { %1142 = vmatpush.msra.mxu3 %v1121_v17 }
 0x108   : > { %992 = vmatmul.f32.gmra.mxu0 %v4834_v44  ;;  %1027 = vmatmul.f32.gmra.mxu1 %v4828_v40 }
 0x109   : > { %v4998_v23 = vpop.f32.mrf.mxu2 }
 0x10a   : > { %963 = vmatmul.f32.gmra.mxu3 %v4861_v14  ;;  %v1120_v14 = vld [vmem:[%s8594_s2 + $0x60] sm:$0xff] }
 0x10b   : > { %1143 = vmatpush.msra.mxu3 %v1120_v14 }
 0x10c   : > { %v672_v50 = vpop.f32.mrf.mxu3 }
 0x10d   : > { %v704_v58 = vpop.f32.mrf.mxu0  ;;  %v739_v44 = vpop.f32.mrf.mxu1  ;;  %1144 = vmatpush.msra.mxu3 %v1119_v52  ;;  %v1138_v52 = vld [vmem:[%s8594_s2 + $0xf0] sm:$0xff] }
 0x10e   : > { %v705_v40 = vadd.f32 %v704_v58, %v669_v42  ;;  %4417 = vmatmul.msk.f32.gmra.mxu2 %vm493_vm0, %v4822_v32  ;;  %v1118_v32 = vld [vmem:[%s8594_s2 + $0x50] sm:$0xff]  ;;  %v1139_v58 = vld [vmem:[%s8594_s2 + $0xf8] sm:$0xff] }
 0x10f   : > { %1145 = vmatpush.msra.mxu3 %v1118_v32  ;;  %1175 = vmatpush.msra.mxu0 %v1139_v58 }
 0x110   : > { %v740_v51 = vadd.f32 %v739_v44, %v705_v40  ;;  %995 = vmatmul.f32.gmra.mxu0 %v4851_v62  ;;  %1030 = vmatmul.f32.gmra.mxu1 %v4845_v55  ;;  %v1117_v62 = vld [vmem:[%s8594_s2 + $0x48] sm:$0xff] }
 0x111   : > { %v774_v53 = vpop.f32.mrf.mxu2  ;;  %1146 = vmatpush.msra.mxu3 %v1117_v62  ;;  %1176 = vmatpush.msra.mxu0 %v1138_v52 }
 0x112   : > { %v5017_v54 = vadd.f32 %v774_v53, %v740_v51  ;;  %v1137_v53 = vld [vmem:[%s8594_s2 + $0xe8] sm:$0xff] }
 0x113   : > { %1147 = vmatpush.msra.mxu3 %v1116_v0  ;;  %1177 = vmatpush.msra.mxu0 %v1137_v53 }
 0x115   : > { %v707_v57 = vpop.f32.mrf.mxu0  ;;  %v742_v55 = vpop.f32.mrf.mxu1  ;;  %1148 = vmatpush.msra.mxu3 %v1115_v3  ;;  %v1135_v3 = vld [vmem:[%s8594_s2 + $0xd8] sm:$0xff] }
 0x116   : > { %v708_v61 = vadd.f32 %v707_v57, %v672_v50  ;;  %v675_v63 = vpop.f32.mrf.mxu3  ;;  %4418 = vmatmul.msk.f32.gmra.mxu2 %vm493_vm0, %v4839_v49  ;;  %v1114_v49 = vld [vmem:[%s8594_s2 + $0x30] sm:$0xff] }
 0x117   : > { %1149 = vmatpush.msra.mxu3 %v1114_v49  ;;  %v1134_v49 = vld [vmem:[%s8594_s2 + $0xd0] sm:$0xff] }
 0x118   : > { %v743_v2 = vadd.f32 %v742_v55, %v708_v61  ;;  %998 = vmatmul.f32.gmra.mxu0 %v4864_v16  ;;  %1033 = vmatmul.f32.gmra.mxu1 %v4858_v11  ;;  %v1113_v16 = vld [vmem:[%s8594_s2 + $0x28] sm:$0xff] }
 0x119   : > { %v777_v4 = vpop.f32.mrf.mxu2  ;;  %1150 = vmatpush.msra.mxu3 %v1113_v16  ;;  %v565_v16 = vadd.f32 %v4926_v34, %v4924_v33  ;;  %v1131_v34 = vld [vmem:[%s8594_s2 + $0xb8] sm:$0xff] }
 0x11a   : > { %v5035_v5 = vadd.f32 %v777_v4, %v743_v2  ;;  %v1136_v2 = vld [vmem:[%s8594_s2 + $0xe0] sm:$0xff] }
 0x11b   : > { %1151 = vmatpush.msra.mxu3 %v1112_v13  ;;  %1178 = vmatpush.msra.mxu0 %v1136_v2 }
 0x11d   : > { %v710_v6 = vpop.f32.mrf.mxu0  ;;  %v745_v11 = vpop.f32.mrf.mxu1  ;;  %1152 = vmatpush.msra.mxu3 %v1111_v18  ;;  %1179 = vmatpush.msra.mxu0 %v1135_v3  ;;  %v1127_v3 = vld [vmem:[%s8594_s2 + $0x98] sm:$0xff] }
 0x11e   : > { %v711_v7 = vadd.f32 %v710_v6, %v675_v63  ;;  %v678_v9 = vpop.f32.mrf.mxu3 }
 0x11f   : > { %1153 = vmatpush.msra.mxu3 %v1110_v21  ;;  %1180 = vmatpush.msra.mxu0 %v1134_v49  ;;  %v1132_v21 = vld [vmem:[%s8594_s2 + $0xc0] sm:$0xff]  ;;  %v574_v49 = vadd.f32 %v4963_v10, %v4961_v47 }
 0x120   : > { %v746_v15 = vadd.f32 %v745_v11, %v711_v7  ;;  %v600_v11 = vadd.f32 %v4932_v35, %v565_v16  ;;  %v1124_v47 = vld [vmem:[%s8594_s2 + $0x80] sm:$0xff] }
 0x121   : > { %v780_v19 = vpop.f32.mrf.mxu2  ;;  %1154 = vmatpush.msra.mxu3 %v1109_v24  ;;  %v568_v24 = vadd.f32 %v4937_v37, %v4935_v36 }
 0x122   : > { %v5049_v20 = vadd.f32 %v780_v19, %v746_v15  ;;  %v1133_v19 = vld [vmem:[%s8594_s2 + $0xc8] sm:$0xff]  ;;  %v635_v33 = vadd.f32 %v4915_v30, %v600_v11  ;;  %v609_v11 = vadd.f32 %v4971_v29, %v574_v49 }
 0x123   : > { %1155 = vmatpush.msra.mxu3 %v1108_v1  ;;  %1181 = vmatpush.msra.mxu0 %v1133_v19 }
 0x125   : > { %v713_v22 = vpop.f32.mrf.mxu0  ;;  %v748_v28 = vpop.f32.mrf.mxu1  ;;  %1182 = vmatpush.msra.mxu0 %v1132_v21 }
 0x126   : > { %v714_v26 = vadd.f32 %v713_v22, %v678_v9  ;;  %v681_v42 = vpop.f32.mrf.mxu3 }
 0x127   : > { %1183 = vmatpush.msra.mxu0 %v1131_v34 }
 0x128   : > { %v749_v27 = vadd.f32 %v748_v28, %v714_v26  ;;  %v1072_v28 = vmul.f32 %v635_v33, %v635_v33  ;;  %v577_v33 = vadd.f32 %v4976_v60, %v4974_v56 }
 0x129   : > { %v783_v17 = vpop.f32.mrf.mxu2 }
 0x12a   : > { %v5063_v40 = vadd.f32 %v783_v17, %v749_v27 }
 0x12d   : > { %v716_v44 = vpop.f32.mrf.mxu0  ;;  %v751_v14 = vpop.f32.mrf.mxu1 }
 0x12e   : > { %v717_v50 = vadd.f32 %v716_v44, %v681_v42  ;;  %v684_v51 = vpop.f32.mrf.mxu3  ;;  %v603_v42 = vadd.f32 %v4945_v39, %v568_v24  ;;  %v612_v24 = vadd.f32 %v4984_v45, %v577_v33 }
 0x130   : > { %v752_v32 = vadd.f32 %v751_v14, %v717_v50  ;;  %v1130_v50 = vld [vmem:[%s8594_s2 + $0xb0] sm:$0xff]  ;;  %v1129_v14 = vld [vmem:[%s8594_s2 + $0xa8] sm:$0xff]  ;;  %v638_v37 = vadd.f32 %v4922_v31, %v603_v42  ;;  %v1128_v31 = vld [vmem:[%s8594_s2 + $0xa0] sm:$0xff] }
 0x131   : > { %v786_v57 = vpop.f32.mrf.mxu2  ;;  %1184 = vmatpush.msra.mxu0 %v1130_v50 }
 0x132   : > { %v5071_v62 = vadd.f32 %v786_v57, %v752_v32  ;;  %v1074_v53 = vmul.f32 %v638_v37, %v638_v37 }
 0x133   : > { %1185 = vmatpush.msra.mxu0 %v1129_v14 }
 0x135   : > { %v719_v61 = vpop.f32.mrf.mxu0  ;;  %v754_v63 = vpop.f32.mrf.mxu1  ;;  %1186 = vmatpush.msra.mxu0 %v1128_v31 }
 0x136   : > { %v720_v55 = vadd.f32 %v719_v61, %v684_v51  ;;  %v809_v0 = vpop.f32.mrf.mxu3  ;;  %v571_v51 = vadd.f32 %v4950_v59, %v4948_v41  ;;  %v1126_v59 = vld [vmem:[%s8594_s2 + $0x90] sm:$0xff] }
 0x137   : > { %1187 = vmatpush.msra.mxu0 %v1127_v3  ;;  %v1073_v3 = vmul.f32 %v5017_v54, %v5017_v54 }
 0x138   : > { %v755_v4 = vadd.f32 %v754_v63, %v720_v55  ;;  %v606_v32 = vadd.f32 %v4958_v46, %v571_v51 }
 0x139   : > { %v789_v6 = vpop.f32.mrf.mxu2  ;;  %1188 = vmatpush.msra.mxu0 %v1126_v59 }
 0x13a   : > { %v5084_v7 = vadd.f32 %v789_v6, %v755_v4  ;;  %v641_v41 = vadd.f32 %v4939_v38, %v606_v32  ;;  %v1125_v38 = vld [vmem:[%s8594_s2 + $0x88] sm:$0xff] }
 0x13b   : > { %1189 = vmatpush.msra.mxu0 %v1125_v38 }
 0x13c   : > { %v1076_v16 = vmul.f32 %v641_v41, %v641_v41 }
 0x13d   : > { %v844_v9 = vpop.f32.mrf.mxu0  ;;  %v879_v15 = vpop.f32.mrf.mxu1  ;;  %1190 = vmatpush.msra.mxu0 %v1124_v47 }
 0x13e   : > { %v845_v13 = vadd.f32 %v844_v9, %v809_v0  ;;  %v812_v18 = vpop.f32.mrf.mxu3 }
 0x140   : > { %v880_v22 = vadd.f32 %v879_v15, %v845_v13 }
 0x141   : > { %v914_v35 = vpop.f32.mrf.mxu2 }
 0x142   : > { %v915_v26 = vadd.f32 %v914_v35, %v880_v22  ;;  %v644_v22 = vadd.f32 %v4952_v43, %v609_v11 }
 0x144   : > { %v1084_v1 = vmul.f32 %v915_v26, %v915_v26  ;;  %v1078_v35 = vmul.f32 %v644_v22, %v644_v22  ;;  %v1077_v22 = vmul.f32 %v5049_v20, %v5049_v20 }
 0x145   : > { %v847_v27 = vpop.f32.mrf.mxu0  ;;  %v882_v17 = vpop.f32.mrf.mxu1 }
 0x146   : > { %v848_v58 = vadd.f32 %v847_v27, %v812_v18  ;;  %v815_v44 = vpop.f32.mrf.mxu3  ;;  %v1096_v30 = vadd.f32 %v1084_v1, %v1072_v28 }
 0x148   : > { %v883_v36 = vadd.f32 %v882_v17, %v848_v58  ;;  %1156 = vmatmul.f32.vlgmr.msra.gmra.mxu3 %v1096_v30  ;;  %v580_v30 = vadd.f32 %v4989_v12, %v4987_v8 }
 0x149   : > { %v917_v39 = vpop.f32.mrf.mxu2 }
 0x14a   : > { %v918_v52 = vadd.f32 %v917_v39, %v883_v36  ;;  %v615_v60 = vadd.f32 %v4998_v23, %v580_v30 }
 0x14c   : > { %v1086_v57 = vmul.f32 %v918_v52, %v918_v52 }
 0x14d   : > { %v850_v61 = vpop.f32.mrf.mxu0  ;;  %v885_v63 = vpop.f32.mrf.mxu1 }
 0x14e   : > { %v851_v55 = vadd.f32 %v850_v61, %v815_v44  ;;  %v818_v0 = vpop.f32.mrf.mxu3  ;;  %v1098_v2 = vadd.f32 %v1086_v57, %v1074_v53  ;;  %v647_v44 = vadd.f32 %v4965_v48, %v612_v24  ;;  %v650_v53 = vadd.f32 %v4978_v25, %v615_v60 }
 0x14f   : > { %v1081_v60 = vmul.f32 %v5071_v62, %v5071_v62 }
 0x150   : > { %v886_v4 = vadd.f32 %v885_v63, %v851_v55  ;;  %1159 = vmatmul.f32.gmra.mxu3 %v1098_v2  ;;  %v1080_v56 = vmul.f32 %v647_v44, %v647_v44  ;;  %v1082_v57 = vmul.f32 %v650_v53, %v650_v53  ;;  %v1083_v53 = vmul.f32 %v5084_v7, %v5084_v7 }
 0x151   : > { %v920_v46 = vpop.f32.mrf.mxu2 }
 0x152   : > { %v921_v6 = vadd.f32 %v920_v46, %v886_v4 }
 0x154   : > { %v1088_v9 = vmul.f32 %v921_v6, %v921_v6 }
 0x155   : > { %v853_v13 = vpop.f32.mrf.mxu0  ;;  %v888_v18 = vpop.f32.mrf.mxu1 }
 0x156   : > { %v854_v15 = vadd.f32 %v853_v13, %v818_v0  ;;  %v821_v19 = vpop.f32.mrf.mxu3  ;;  %v1100_v21 = vadd.f32 %v1088_v9, %v1076_v16  ;;  %v1075_v9 = vmul.f32 %v5035_v5, %v5035_v5 }
 0x158   : > { %v889_v10 = vadd.f32 %v888_v18, %v854_v15  ;;  %1162 = vmatmul.f32.gmra.mxu3 %v1100_v21 }
 0x159   : > { %v923_v29 = vpop.f32.mrf.mxu2 }
 0x15a   : > { %v924_v34 = vadd.f32 %v923_v29, %v889_v10 }
 0x15c   : > { %v1090_v26 = vmul.f32 %v924_v34, %v924_v34 }
 0x15d   : > { %v856_v28 = vpop.f32.mrf.mxu0  ;;  %v891_v1 = vpop.f32.mrf.mxu1 }
 0x15e   : > { %v857_v42 = vadd.f32 %v856_v28, %v821_v19  ;;  %v824_v27 = vpop.f32.mrf.mxu3  ;;  %v1102_v58 = vadd.f32 %v1090_v26, %v1078_v35 }
 0x160   : > { %v892_v17 = vadd.f32 %v891_v1, %v857_v42  ;;  %1165 = vmatmul.f32.gmra.mxu3 %v1102_v58  ;;  %v1079_v1 = vmul.f32 %v5063_v40, %v5063_v40 }
 0x161   : > { %v926_v43 = vpop.f32.mrf.mxu2 }
 0x162   : > { %v927_v50 = vadd.f32 %v926_v43, %v892_v17 }
 0x164   : > { %v1092_v14 = vmul.f32 %v927_v50, %v927_v50 }
 0x165   : > { %v859_v45 = vpop.f32.mrf.mxu0  ;;  %v894_v37 = vpop.f32.mrf.mxu1 }
 0x166   : > { %v860_v36 = vadd.f32 %v859_v45, %v824_v27  ;;  %v949_v39 = vpop.f32.mrf.mxu3  ;;  %v1104_v51 = vadd.f32 %v1092_v14, %v1080_v56 }
 0x168   : > { %v895_v52 = vadd.f32 %v894_v37, %v860_v36  ;;  %1168 = vmatmul.f32.gmra.mxu3 %v1104_v51 }
 0x169   : > { %v929_v48 = vpop.f32.mrf.mxu2 }
 0x16a   : > { %v930_v32 = vadd.f32 %v929_v48, %v895_v52 }
 0x16c   : > { %v1094_v61 = vmul.f32 %v930_v32, %v930_v32 }
 0x16d   : > { %v984_v55 = vpop.f32.mrf.mxu0  ;;  %v1019_v12 = vpop.f32.mrf.mxu1 }
 0x16e   : > { %v985_v8 = vadd.f32 %v984_v55, %v949_v39  ;;  %v952_v63 = vpop.f32.mrf.mxu3  ;;  %v1106_v0 = vadd.f32 %v1094_v61, %v1082_v57 }
 0x170   : > { %v1020_v23 = vadd.f32 %v1019_v12, %v985_v8  ;;  %1171 = vmatmul.f32.gmra.mxu3 %v1106_v0 }
 0x171   : > { %v1054_v2 = vpop.f32.mrf.mxu2 }
 0x172   : > { %v1055_v31 = vadd.f32 %v1054_v2, %v1020_v23 }
 0x174   : > { %v1085_v4 = vmul.f32 %v1055_v31, %v1055_v31 }
 0x175   : > { %v987_v41 = vpop.f32.mrf.mxu0  ;;  %v1022_v59 = vpop.f32.mrf.mxu1 }
 0x176   : > { %v988_v25 = vadd.f32 %v987_v41, %v952_v63  ;;  %v955_v46 = vpop.f32.mrf.mxu3  ;;  %v1097_v49 = vadd.f32 %v1085_v4, %v1073_v3 }
 0x178   : > { %v1023_v6 = vadd.f32 %v1022_v59, %v988_v25  ;;  %1191 = vmatmul.f32.vlgmr.msra.gmra.mxu0 %v1097_v49 }
 0x179   : > { %v1057_v16 = vpop.f32.mrf.mxu2 }
 0x17a   : > { %v1058_v11 = vadd.f32 %v1057_v16, %v1023_v6 }
 0x17c   : > { %v1087_v13 = vmul.f32 %v1058_v11, %v1058_v11 }
 0x17d   : > { %v990_v38 = vpop.f32.mrf.mxu0  ;;  %v1025_v18 = vpop.f32.mrf.mxu1 }
 0x17e   : > { %v991_v15 = vadd.f32 %v990_v38, %v955_v46  ;;  %v1099_v19 = vadd.f32 %v1087_v13, %v1075_v9  ;;  %v958_v21 = vpop.f32.mrf.mxu3 }
 0x180   : > { %v1026_v54 = vadd.f32 %v1025_v18, %v991_v15  ;;  %1194 = vmatmul.f32.gmra.mxu0 %v1099_v19 }
 0x181   : > { %v1060_v47 = vpop.f32.mrf.mxu2 }
 0x182   : > { %v1061_v10 = vadd.f32 %v1060_v47, %v1026_v54 }
 0x184   : > { %v1089_v29 = vmul.f32 %v1061_v10, %v1061_v10 }
 0x185   : > { %v993_v33 = vpop.f32.mrf.mxu0  ;;  %v1028_v35 = vpop.f32.mrf.mxu1 }
 0x186   : > { %v994_v34 = vadd.f32 %v993_v33, %v958_v21  ;;  %v1101_v24 = vadd.f32 %v1089_v29, %v1077_v22  ;;  %v961_v5 = vpop.f32.mrf.mxu3 }
 0x188   : > { %v1029_v26 = vadd.f32 %v1028_v35, %v994_v34  ;;  %1197 = vmatmul.f32.gmra.mxu0 %v1101_v24 }
 0x189   : > { %v1063_v28 = vpop.f32.mrf.mxu2 }
 0x18a   : > { %v1064_v42 = vadd.f32 %v1063_v28, %v1029_v26 }
 0x18c   : > { %v1091_v27 = vmul.f32 %v1064_v42, %v1064_v42 }
 0x18d   : > { %v996_v58 = vpop.f32.mrf.mxu0  ;;  %v1031_v44 = vpop.f32.mrf.mxu1 }
 0x18e   : > { %v997_v17 = vadd.f32 %v996_v58, %v961_v5  ;;  %v1103_v43 = vadd.f32 %v1091_v27, %v1079_v1  ;;  %v964_v56 = vpop.f32.mrf.mxu3 }
 0x190   : > { %v1032_v30 = vadd.f32 %v1031_v44, %v997_v17  ;;  %1200 = vmatmul.f32.gmra.mxu0 %v1103_v43 }
 0x191   : > { %v1066_v20 = vpop.f32.mrf.mxu2 }
 0x192   : > { %v1067_v50 = vadd.f32 %v1066_v20, %v1032_v30 }
 0x194   : > { %v1093_v14 = vmul.f32 %v1067_v50, %v1067_v50 }
 0x195   : > { %v999_v45 = vpop.f32.mrf.mxu0  ;;  %v1034_v37 = vpop.f32.mrf.mxu1 }
 0x196   : > { %v1000_v36 = vadd.f32 %v999_v45, %v964_v56  ;;  %v1105_v39 = vadd.f32 %v1093_v14, %v1081_v60 }
 0x198   : > { %v1035_v51 = vadd.f32 %v1034_v37, %v1000_v36  ;;  %1203 = vmatmul.f32.gmra.mxu0 %v1105_v39 }
 0x199   : > { %v1069_v40 = vpop.f32.mrf.mxu2 }
 0x19a   : > { %v1070_v52 = vadd.f32 %v1069_v40, %v1035_v51 }
 0x19c   : > { %v1095_v48 = vmul.f32 %v1070_v52, %v1070_v52 }
 0x19e   : > { %v1107_v32 = vadd.f32 %v1095_v48, %v1083_v53 }
 0x1a0   : > { %1206 = vmatmul.f32.gmra.mxu0 %v1107_v32 }
 0x1cb   : > { %v1157_v57 = vpop.f32.mrf.mxu3 }
 0x1d3   : > { %v1160_v61 = vpop.f32.mrf.mxu3 }
 0x1db   : > { %v1163_v0 = vpop.f32.mrf.mxu3 }
 0x1e3   : > { %v1166_v7 = vpop.f32.mrf.mxu3 }
 0x1eb   : > { %v1169_v38 = vpop.f32.mrf.mxu3 }
 0x1f3   : > { %v1172_v33 = vpop.f32.mrf.mxu3 }
 0x1f5   : > { %v1192_v55 = vpop.f32.mrf.mxu0 }
 0x1f6   : > { %v1193_v8 = vadd.f32 %v1192_v55, %v1157_v57 }
 0x1f8   : > { %v1210_v62 = vmax.f32 %v1193_v8, 1e-10  ;;  %v1288_v8 = vld [vmem:[%s8595_s3 + $0x28] sm:$0x7f] }
 0x1f9   : > { %4428 = vmatpush.msk.msra.mxu2 %vm1307_vm2, %v1288_v8 }
 0x1fa   : > { %4522 = vlog2.f32 %v1210_v62  ;;  %v1287_v62 = vld [vmem:[%s8595_s3 + $0x20] sm:$0x7f] }
 0x1fb   : > { %4421 = vmatpush.msk.msra.mxu1 %vm1307_vm2, %v1287_v62 }
 0x1fd   : > { %v1195_v12 = vpop.f32.mrf.mxu0 }
 0x1fe   : > { %v1196_v63 = vadd.f32 %v1195_v12, %v1160_v61  ;;  %v4637_v61 = vmov 0   ;;  %v1286_v12 = vld [vmem:[%s8595_s3 + $0x18] sm:$0xff] }
 0x1ff   : > { %4520 = vset.pattern.permute.xlu1 %v4637_v61  ;;  %4521 = vset.pattern.permute.xlu0 %v4637_v61 }
 0x200   : > { %v1211_v23 = vmax.f32 %v1196_v63, 1e-10  ;;  %v4523_v3 = vpop.eup %4522  ;;  %v1285_v63 = vld [vmem:[%s8595_s3 + $0x10] sm:$0xff]  ;;  %1363 = vmatpush.msra.mxu2 %v1286_v12 }
 0x201   : > { %v1217_v59 = vmul.f32 0.6931472, %v4523_v3  ;;  %1328 = vmatpush.msra.mxu1 %v1285_v63 }
 0x202   : > { %4524 = vlog2.f32 %v1211_v23  ;;  %v1283_v23 = vld [vmem:[%s8595_s3] sm:$0xff] }
 0x203   : > { %v5152_v6 = vmul.f32 4.3429446, %v1217_v59  ;;  %1329 = vmatpush.msra.mxu1 %v1283_v23 }
 0x205   : > { %v1198_v2 = vpop.f32.mrf.mxu0  ;;  %v1235_v18 = vsel %vm1234_vm1, %v5152_v6, -inf }
 0x206   : > { %v1199_v31 = vadd.f32 %v1198_v2, %v1163_v0  ;;  %v1284_v0 = vld [vmem:[%s8595_s3 + $0x8] sm:$0xff] }
 0x207   : > { %1364 = vmatpush.msra.mxu2 %v1284_v0 }
 0x208   : > { %v4525_v4 = vpop.eup %4524  ;;  %v1212_v41 = vmax.f32 %v1199_v31, 1e-10 }
 0x209   : > { %v1219_v25 = vmul.f32 0.6931472, %v4525_v4 }
 0x20a   : > { %4526 = vlog2.f32 %v1212_v41 }
 0x20b   : > { %v5150_v46 = vmul.f32 4.3429446, %v1219_v25 }
 0x20d   : > { %v1201_v49 = vpop.f32.mrf.mxu0  ;;  %v1236_v13 = vsel %vm1234_vm1, %v5150_v46, -inf }
 0x20e   : > { %v1202_v9 = vadd.f32 %v1201_v49, %v1166_v7  ;;  %v1238_v19 = vmax.f32 %v1235_v18, %v1236_v13 }
 0x210   : > { %v4527_v16 = vpop.eup %4526  ;;  %v1213_v21 = vmax.f32 %v1202_v9, 1e-10 }
 0x211   : > { %v1221_v11 = vmul.f32 0.6931472, %v4527_v16 }
 0x212   : > { %4528 = vlog2.f32 %v1213_v21 }
 0x213   : > { %v5156_v15 = vmul.f32 4.3429446, %v1221_v11  ;;  %v5213_v11 = vld [vmem:[%s8596_s4] sm:$0x3f] }
 0x214   : > { %vm1802_vm3 = vcmp.eq.s32.totalorder %v5213_v11, 5  ;;  %vm1834_vm4 = vcmp.eq.s32.totalorder %v5213_v11, 0  ;;  %vm1866_vm5 = vcmp.eq.s32.totalorder %v5213_v11, 1  ;;  %vm1965_vm6 = vcmp.eq.s32.totalorder %v5213_v11, 2 }
 0x215   : > { %v1204_v54 = vpop.f32.mrf.mxu0  ;;  %v1237_v47 = vsel %vm1234_vm1, %v5156_v15, -inf  ;;  %v5218_v9 = vsel %vm1802_vm3, 1, %v4637_v61  ;;  %v5221_v13 = vsel %vm1834_vm4, 1, %v4637_v61  ;;  %v5228_v18 = vsel %vm1866_vm5, 1, %v4637_v61 }
 0x216   : > { %v1205_v10 = vadd.f32 %v1204_v54, %v1169_v38  ;;  %v1239_v22 = vmax.f32 %v1238_v19, %v1237_v47  ;;  %8841 = vst [vmem:[#allocation8_spill] sm:$0xff] %v5218_v9  ;;  %v1804_v38 = vperm.slane %v5218_v9, 0  ;;  %vm2063_vm7 = vcmp.eq.s32.totalorder %v5213_v11, 3 }
 0x217   : > { %8842 = vst [vmem:[#allocation9_spill] sm:$0xff] %v5221_v13  ;;  %v5236_v21 = vsel %vm1965_vm6, 1, %v4637_v61  ;;  %vm2161_vm9 = vcmp.eq.s32.totalorder %v5213_v11, 4  ;;  %v1868_v47 = vperm.slane %v5228_v18, 0  ;;  %vm2271_vm13 = vcmp.eq.s32.totalorder %v5213_v11, 6 }
 0x218   : > { %v1214_v29 = vmax.f32 %v1205_v10, 1e-10  ;;  %1240 = vmax.xlane.f32.xlu0 %v1239_v22  ;;  %v4529_v24 = vpop.eup %4528  ;;  %8843 = vst [vmem:[#allocation10_spill] sm:$0xff] %v5228_v18  ;;  %vm5231_vm8 = vcmp.eq.s32.totalorder %v1804_v38, 1  ;;  %v5241_v10 = vsel %vm2063_vm7, 1, %v4637_v61  ;;  %vm2399_vm14 = vcmp.eq.s32.totalorder %v5213_v11, 7 }
 0x219   : > { %v1223_v42 = vmul.f32 0.6931472, %v4529_v24  ;;  %8846 = vst [vmem:[#allocation11_spill] sm:$0xff] %v5236_v21  ;;  %v5249_v24 = vsel %vm2161_vm9, 1, %v4637_v61  ;;  %vm5266_vm15 = vcmp.eq.s32.totalorder %v1868_v47, 1  ;;  %vm1442_vm3 = vcmask 1043456  }
 0x21a   : > { %4530 = vlog2.f32 %v1214_v29  ;;  %8847 = vst [vmem:[#allocation12_spill] sm:$0xff] %v5241_v10  ;;  %vm8644_vm5 = vcmask 1040384   ;;  %vm2527_vm9 = vcmp.eq.s32.totalorder %v5213_v11, 8 }
 0x21b   : > { %v1231_v27 = vmul.f32 4.3429446, %v1223_v42  ;;  %8850 = vst [vmem:[#allocation13_spill] sm:$0xff] %v5249_v24  ;;  %v2065_v42 = vperm.slane %v5241_v10, 0 }
 0x21d   : > { %v1207_v34 = vpop.f32.mrf.mxu0  ;;  %v1250_v30 = vsel %vm1234_vm1, %v1231_v27, -inf }
 0x21e   : > { %v1208_v35 = vadd.f32 %v1207_v34, %v1172_v33 }
 0x220   : > { %v4531_v26 = vpop.eup %4530  ;;  %v1215_v5 = vmax.f32 %v1208_v35, 1e-10  ;;  %v1967_v35 = vperm.slane %v5236_v21, 0 }
 0x221   : > { %v1225_v28 = vmul.f32 0.6931472, %v4531_v26 }
 0x222   : > { %4532 = vlog2.f32 %v1215_v5  ;;  %vm5278_vm0 = vcmp.eq.s32.totalorder %v1967_v35, 1  ;;  %v5354_v35 = vsel %vm2527_vm9, 1, %v4637_v61 }
 0x223   : > { %v5162_v1 = vmul.f32 4.3429446, %v1225_v28  ;;  %8867 = vst [vmem:[#allocation18_spill] sm:$0xff] %v5354_v35 }
 0x225   : > { %v1251_v44 = vsel %vm1234_vm1, %v5162_v1, -inf }
 0x226   : > { %v1253_v20 = vmax.f32 %v1250_v30, %v1251_v44  ;;  %v2163_v44 = vperm.slane %v5249_v24, 0  ;;  %v5275_v30 = vsel %vm2399_vm14, 1, %v4637_v61  ;;  %vm2741_vm14 = vcmp.eq.s32.totalorder %v5213_v11, 10 }
 0x227   : > { %8854 = vst [vmem:[#allocation15_spill] sm:$0xff] %v5275_v30 }
 0x228   : > { %v4533_v58 = vpop.eup %4532  ;;  %vm5295_vm4 = vcmp.eq.s32.totalorder %v2163_v44, 1 }
 0x229   : > { %v1227_v17 = vmul.f32 0.6931472, %v4533_v58 }
 0x22b   : > { %v5166_v43 = vmul.f32 4.3429446, %v1227_v17 }
 0x22d   : > { %v1252_v50 = vsel %vm1234_vm1, %v5166_v43, -inf }
 0x22e   : > { %v1254_v56 = vmax.f32 %v1253_v20, %v1252_v50 }
 0x230   : > { %1255 = vmax.xlane.f32.xlu0 %v1254_v56 }
 0x28b   : > { %v1241_v60 = vpop.xlane.xlu0 %1240 }
 0x28c   : > { %v1242_v14 = vrot.slane %v1241_v60, 4 }
 0x28e   : > { %v1243_v45 = vmax.f32 %v1241_v60, %v1242_v14 }
 0x290   : > { %v1244_v36 = vrot.slane %v1243_v45, 2 }
 0x292   : > { %v1245_v37 = vmax.f32 %v1243_v45, %v1244_v36 }
 0x294   : > { %v1246_v39 = vrot.slane %v1245_v37, 1 }
 0x296   : > { %v1247_v51 = vmax.f32 %v1245_v37, %v1246_v39 }
 0x298   : > { %4461 = vpush %v1247_v51  ;;  %v2401_v51 = vperm.slane %v5275_v30, 0 }
 0x29a   : > { %vm5315_vm7 = vcmp.eq.s32.totalorder %v2401_v51, 1 }
 0x2a3   : > { %v1256_v40 = vpop.xlane.xlu0 %1255 }
 0x2a4   : > { %v1257_v52 = vrot.slane %v1256_v40, 4 }
 0x2a6   : > { %v1258_v53 = vmax.f32 %v1256_v40, %v1257_v52 }
 0x2a8   : > { %v1259_v48 = vrot.slane %v1258_v53, 2 }
 0x2aa   : > { %v1260_v32 = vmax.f32 %v1258_v53, %v1259_v48 }
 0x2ac   : > { %v1261_v57 = vrot.slane %v1260_v32, 1 }
 0x2ae   : > { %v1262_v55 = vmax.f32 %v1260_v32, %v1261_v57 }
 0x2b0   : > { %4463 = vpush %v1262_v55 }
 0x2c9   : > { %s4462_s22 = spop %4461 }
 0x2ca   : > { %v1249_v2 = vstv %s4462_s22 }
 0x2cb   : > { %v4419_v31 = vadd.f32 -80.0, %v1249_v2 }
 0x2cd   : > { %1269 = vperm.xlu1 %4520, %v4419_v31  }
 0x2e1   : > { %s4464_s12 = spop %4463 }
 0x2e2   : > { %v1264_v3 = vstv %s4464_s12 }
 0x2e3   : > { %v4420_v4 = vadd.f32 -80.0, %v1264_v3 }
 0x2e5   : > { %1274 = vperm.xlu1 %4520, %v4420_v4  }
 0x33f   : > { %v1270_v41 = vpop.permute.xlu1 %1269 }
 0x340   : > { %v1277_v7 = vmax.f32 %v5152_v6, %v1270_v41  ;;  %v1278_v25 = vmax.f32 %v5150_v46, %v1270_v41  ;;  %v1279_v59 = vmax.f32 %v5156_v15, %v1270_v41  ;;  %v1836_v15 = vperm.slane %v5221_v13, 0 }
 0x342   : > { %4422 = vmatmul.msk.f32.vlgmr.msra.gmra.mxu1 %vm1234_vm1, %v1277_v7  ;;  %4429 = vmatmul.msk.f32.vlgmr.msra.gmra.mxu2 %vm1234_vm1, %v1277_v7  ;;  %vm5243_vm12 = vcmp.eq.s32.totalorder %v1836_v15, 1  ;;  %v5456_v15 = vsel %vm2741_vm14, 1, %v4637_v61 }
 0x343   : > { %8870 = vst [vmem:[#allocation21_spill] sm:$0xff] %v5456_v15 }
 0x34a   : > { %4423 = vmatmul.msk.f32.gmra.mxu1 %vm1234_vm1, %v1278_v25  ;;  %4430 = vmatmul.msk.f32.gmra.mxu2 %vm1234_vm1, %v1278_v25 }
 0x352   : > { %4424 = vmatmul.msk.f32.gmra.mxu1 %vm1234_vm1, %v1279_v59  ;;  %4431 = vmatmul.msk.f32.gmra.mxu2 %vm1234_vm1, %v1279_v59 }
 0x357   : > { %v1275_v49 = vpop.permute.xlu1 %1274 }
 0x358   : > { %v1280_v16 = vmax.f32 %v1231_v27, %v1275_v49  ;;  %v1281_v6 = vmax.f32 %v5162_v1, %v1275_v49  ;;  %v1282_v46 = vmax.f32 %v5166_v43, %v1275_v49  ;;  %v5272_v43 = vsel %vm2271_vm13, 1, %v4637_v61 }
 0x359   : > { %8853 = vst [vmem:[#allocation14_spill] sm:$0xff] %v5272_v43  ;;  %v2273_v39 = vperm.slane %v5272_v43, 0  ;;  %vm2643_vm13 = vcmp.eq.s32.totalorder %v5213_v11, 9 }
 0x35a   : > { %4425 = vmatmul.msk.f32.gmra.mxu1 %vm1234_vm1, %v1280_v16  ;;  %4432 = vmatmul.msk.f32.gmra.mxu2 %vm1234_vm1, %v1280_v16 }
 0x35b   : > { %vm5311_vm6 = vcmp.eq.s32.totalorder %v2273_v39, 1 }
 0x362   : > { %4426 = vmatmul.msk.f32.gmra.mxu1 %vm1234_vm1, %v1281_v6  ;;  %4433 = vmatmul.msk.f32.gmra.mxu2 %vm1234_vm1, %v1281_v6 }
 0x36a   : > { %4427 = vmatmul.msk.f32.gmra.mxu1 %vm1234_vm1, %v1282_v46  ;;  %4434 = vmatmul.msk.f32.gmra.mxu2 %vm1234_vm1, %v1282_v46  ;;  %vm5287_vm1 = vcmp.eq.s32.totalorder %v2065_v42, 1 }
 0x3bf   : > { %v1331_v54 = vpop.f32.mrf.mxu1 }
 0x3c0   : > { %v1385_v22 = vperm.slane %v1331_v54, 0  ;;  %v1396_v29 = vrot.slane %v1331_v54, 6  ;;  %v1736_v33 = vrot.slane %v1331_v54, 3  ;;  %v1816_v28 = vsel %vm5231_vm8, %v1331_v54, 0.0 }
 0x3c2   : > { %v5254_v26 = vsel %vm8643_vm10, %v1385_v22, %v1396_v29  ;;  %v5257_v5 = vsel %vm8626_vm11, 0.0, %v1736_v33 }
 0x3c3   : > { %v1443_v1 = vrot.slane %v5254_v26, 4  ;;  %v1848_v27 = vsel %vm5243_vm12, %v5257_v5, %v1816_v28 }
 0x3c4   : > { %v1899_v17 = vrot.slane %v1848_v27, 7 }
 0x3c5   : > { %v1461_v20 = vsub.f32 %v5254_v26, %v1443_v1  ;;  %v5282_v56 = vpop.f32.mrf.mxu2 }
 0x3c6   : > { %8857 = vst [vmem:[#allocation16_spill] sm:$0xff] %v5282_v56  ;;  %v1947_v60 = vsel %vm5266_vm15, %v5257_v5, %v1899_v17  ;;  %v1386_v45 = vperm.slane %v5282_v56, 0  ;;  %v1397_v36 = vrot.slane %v5282_v56, 6 }
 0x3c7   : > { %v1997_v37 = vrot.slane %v1947_v60, 7  ;;  %v1334_v40 = vpop.f32.mrf.mxu1  ;;  %v5300_v57 = vmul.f32 2.0, %v1461_v20 }
 0x3c8   : > { %v1413_v53 = vsel %vm8643_vm10, %v1386_v45, %v1397_v36  ;;  %v1398_v48 = vrot.slane %v1334_v40, 6  ;;  %v1742_v32 = vrot.slane %v1334_v40, 3  ;;  %v1822_v3 = vsel %vm5231_vm8, %v1334_v40, 0.0 }
 0x3c9   : > { %v2045_v55 = vsel %vm5278_vm0, %v5257_v5, %v1997_v37  ;;  %v1421_v8 = vrot.slane %v1413_v53, 6  ;;  %v1444_v12 = vrot.slane %v1413_v53, 4 }
 0x3ca   : > { %v2095_v62 = vrot.slane %v2045_v55, 7  ;;  %v5306_v63 = vsel %vm8643_vm10, %v1396_v29, %v1398_v48  ;;  %v5309_v0 = vsel %vm8626_vm11, %v1736_v33, %v1742_v32 }
 0x3cb   : > { %v8600_v31 = vrot.slane %v5306_v63, 4  ;;  %v5331_v7 = vsel %vm5243_vm12, %v5309_v0, %v1822_v3  ;;  %v5342_v46 = vsub.f32 %v1413_v53, %v1421_v8  ;;  %v1462_v38 = vsub.f32 %v1413_v53, %v1444_v12 }
 0x3cc   : > { %v5326_v41 = vsel %vm5287_vm1, %v5257_v5, %v2095_v62  ;;  %v1905_v16 = vrot.slane %v5331_v7, 7  ;;  %v2529_v7 = vperm.slane %v5354_v35, 0 }
 0x3cd   : > { %v2193_v59 = vrot.slane %v5326_v41, 7  ;;  %v1446_v49 = vsel %vm1442_vm3, %v1443_v1, %v8600_v31  ;;  %v5340_v6 = vpop.f32.mrf.mxu2  ;;  %v5375_v45 = vmul.f32 2.0, %v1462_v38 }
 0x3ce   : > { %8866 = vst [vmem:[#allocation17_spill] sm:$0xff] %v5340_v6  ;;  %v1400_v54 = vrot.slane %v5340_v6, 6  ;;  %v1463_v22 = vsub.f32 %v5306_v63, %v1446_v49  ;;  %v1906_v29 = vsel %vm8644_vm5, %v1899_v17, %v1905_v16  ;;  %v5392_v49 = vsel %vm2643_vm13, 1, %v4637_v61 }
 0x3cf   : > { %v5349_v47 = vsel %vm5295_vm4, %v5257_v5, %v2193_v59  ;;  %v1337_v33 = vpop.f32.mrf.mxu1  ;;  %v1953_v42 = vsel %vm5266_vm15, %v5309_v0, %v1906_v29  ;;  %8868 = vst [vmem:[#allocation19_spill] sm:$0xff] %v5392_v49  ;;  %vm5458_vm9 = vcmp.eq.s32.totalorder %v2529_v7, 1 }
 0x3d0   : > { %v2309_v28 = vrot.slane %v5349_v47, 6  ;;  %v5363_v1 = vsel %vm8643_vm10, %v1397_v36, %v1400_v54  ;;  %v2003_v27 = vrot.slane %v1953_v42, 7  ;;  %v1387_v20 = vperm.slane %v1337_v33, 4 }
 0x3d1   : > { %v8599_v17 = vrot.slane %v5363_v1, 6  ;;  %v1447_v44 = vrot.slane %v5363_v1, 4  ;;  %v1402_v39 = vrot.slane %v1337_v33, 6  ;;  %v1754_v36 = vrot.slane %v1337_v33, 3 }
 0x3d2   : > { %v5373_v60 = vsel %vm5311_vm6, %v5257_v5, %v2309_v28  ;;  %v5378_v40 = vmul.f32 2.0, %v1463_v22  ;;  %v2004_v53 = vsel %vm8644_vm5, %v1997_v37, %v2003_v27 }
 0x3d3   : > { %v2437_v51 = vrot.slane %v5373_v60, 7  ;;  %v1448_v55 = vsel %vm1442_vm3, %v1444_v12, %v1447_v44  ;;  %v2051_v3 = vsel %vm5278_vm0, %v5309_v0, %v2004_v53  ;;  %v1403_v41 = vsel %vm8643_vm10, %v1398_v48, %v1402_v39 }
 0x3d4   : > { %v2101_v38 = vrot.slane %v2051_v3, 7  ;;  %v5397_v37 = vsel %vm8643_vm10, %v1421_v8, %v8599_v17  ;;  %v5400_v12 = vsel %vm1307_vm2, %v1403_v41, %v1387_v20  ;;  %v5403_v22 = vsel %vm8626_vm11, %v1742_v32, %v1754_v36 }
 0x3d5   : > { %v5410_v48 = vsel %vm5315_vm7, %v5257_v5, %v2437_v51  ;;  %v1464_v42 = vsub.f32 %v5363_v1, %v1448_v55  ;;  %v8601_v8 = vrot.slane %v5400_v12, 4  ;;  %v1828_v32 = vsel %vm5231_vm8, %v1337_v33, 0.0  ;;  %v5420_v41 = vpop.f32.mrf.mxu2 }
 0x3d6   : > { %v2102_v53 = vsel %vm8644_vm5, %v2095_v62, %v2101_v38  ;;  %v2645_v3 = vperm.slane %v5392_v49, 0  ;;  %8869 = vst [vmem:[#allocation20_spill] sm:$0xff] %v5420_v41  ;;  %v1860_v62 = vsel %vm5243_vm12, %v5403_v22, %v1828_v32  ;;  %v1404_v31 = vrot.slane %v5420_v41, 6 }
 0x3d7   : > { %v5422_v25 = vpop.f32.mrf.mxu1  ;;  %v2149_v5 = vsel %vm5287_vm1, %v5309_v0, %v2102_v53  ;;  %v1467_v29 = vsub.f32 %v1387_v20, %v8601_v8  ;;  %v1917_v39 = vrot.slane %v1860_v62, 7  ;;  %v5436_v4 = vmul.f32 2.0, %v1464_v42 }
 0x3d8   : > { %v2199_v17 = vrot.slane %v2149_v5, 7  ;;  %v1388_v53 = vperm.slane %v5420_v41, 4  ;;  %v2926_v55 = vperm.slane %v5422_v25, 0  ;;  %v5443_v8 = vsel %vm8643_vm10, %v1754_v36, 0.0 }
 0x3d9   : > { %v1918_v32 = vsel %vm8644_vm5, %v1905_v16, %v1917_v39  ;;  %v8604_v5 = vrot.slane %v5422_v25, 6  ;;  %v5447_v62 = vmul.f32 2.0, %v1467_v29  ;;  %v1405_v16 = vsel %vm8643_vm10, %v1400_v54, %v1404_v31 }
 0x3da   : > { %v2200_v20 = vsel %vm8644_vm5, %v2193_v59, %v2199_v17  ;;  %v1959_v11 = vsel %vm5266_vm15, %v5403_v22, %v1918_v32  ;;  %v5467_v39 = vsel %vm1307_vm2, %v1405_v16, %v1388_v53  ;;  %v2743_v31 = vperm.slane %v5456_v15, 0 }
 0x3db   : > { %v2253_v42 = vsel %vm5295_vm4, %v5309_v0, %v2200_v20  ;;  %v2015_v59 = vrot.slane %v1959_v11, 7  ;;  %v5472_v61 = vsel %vm8643_vm10, %v2926_v55, %v8604_v5  ;;  %v8602_v20 = vrot.slane %v5422_v25, 3 }
 0x3dc   : > { %v2315_v36 = vrot.slane %v2253_v42, 6  ;;  %v1451_v54 = vrot.slane %v5467_v39, 4  ;;  %vm5488_vm13 = vcmp.eq.s32.totalorder %v2645_v3, 1  ;;  %v8603_v47 = vrot.slane %v5472_v61, 4 }
 0x3dd   : > { %v2016_v7 = vsel %vm8644_vm5, %v2003_v27, %v2015_v59  ;;  %v5496_v11 = vpop.f32.mrf.mxu2  ;;  %vm5528_vm14 = vcmp.eq.s32.totalorder %v2743_v31, 1  ;;  %v8884_v24 = vrot.slane %v5422_v25, 3 }
 0x3de   : > { %v2316_v32 = vsel %vm8643_vm10, %v2309_v28, %v2315_v36  ;;  %v2057_v42 = vsel %vm5278_vm0, %v5403_v22, %v2016_v7  ;;  %v1452_v16 = vsel %vm1442_vm3, %v1447_v44, %v1451_v54  ;;  %v1468_v29 = vsub.f32 %v1388_v53, %v1451_v54 }
 0x3df   : > { %v2381_v55 = vsel %vm5311_vm6, %v5309_v0, %v2316_v32  ;;  %v2113_v28 = vrot.slane %v2057_v42, 7  ;;  %v1466_v7 = vsub.f32 %v5467_v39, %v1452_v16  ;;  %v3000_v3 = vsub.f32 %v5472_v61, %v8603_v47  ;;  %v5520_v16 = vpop.f32.mrf.mxu1 }
 0x3e0   : > { %v2443_v59 = vrot.slane %v2381_v55, 7  ;;  %v5505_v32 = vsel %vm8626_vm11, 0.0, %v8602_v20  ;;  %v3338_v42 = vsel %vm5231_vm8, %v5422_v25, 0.0  ;;  %v5534_v47 = vmul.f32 2.0, %v1468_v29 }
 0x3e1   : > { %v2114_v44 = vsel %vm8644_vm5, %v2101_v38, %v2113_v28  ;;  %v5518_v55 = vsel %vm5243_vm12, %v5505_v32, %v3338_v42  ;;  %v2927_v28 = vperm.slane %v5496_v11, 0  ;;  %v5537_v15 = vmul.f32 2.0, %v1466_v7 }
 0x3e2   : > { %v2444_v53 = vsel %vm8644_vm5, %v2437_v51, %v2443_v59  ;;  %v2155_v20 = vsel %vm5287_vm1, %v5403_v22, %v2114_v44  ;;  %v8609_v5 = vrot.slane %v5518_v55, 7  ;;  %v5539_v44 = vmul.f32 2.0, %v3000_v3 }
 0x3e3   : > { %v2509_v38 = vsel %vm5315_vm7, %v5309_v0, %v2444_v53  ;;  %v2211_v42 = vrot.slane %v2155_v20, 7  ;;  %v8612_v53 = vrot.slane %v5496_v11, 6  ;;  %v8877_v20 = vrot.slane %v5410_v48, 7 }
 0x3e4   : > { %v2566_v54 = vrot.slane %v2509_v38, 7  ;;  %v5555_v7 = vsel %vm5266_vm15, %v5505_v32, %v8609_v5  ;;  %v8883_v41 = vrot.slane %v5520_v16, 3  ;;  %v3344_v10 = vsel %vm5231_vm8, %v5520_v16, 0.0 }
 0x3e5   : > { %v2212_v49 = vsel %vm8644_vm5, %v2199_v17, %v2211_v42  ;;  %v2265_v51 = vsel %vm5295_vm4, %v5443_v8, %v2211_v42  ;;  %v8613_v48 = vrot.slane %v5555_v7, 7  ;;  %v5568_v5 = vsel %vm8643_vm10, %v2927_v28, %v8612_v53 }
 0x3e6   : > { %v2567_v29 = vsel %vm8644_vm5, %v8877_v20, %v2566_v54  ;;  %v2259_v3 = vsel %vm5295_vm4, %v5403_v22, %v2212_v49  ;;  %v2339_v17 = vrot.slane %v2265_v51, 6  ;;  %v8889_v56 = vrot.slane %v5518_v55, 7 }
 0x3e7   : > { %v2625_v38 = vsel %vm5458_vm9, %v5309_v0, %v2567_v29  ;;  %v2327_v42 = vrot.slane %v2259_v3, 6  ;;  %v5576_v49 = vsel %vm5278_vm0, %v5505_v32, %v8613_v48  ;;  %v8878_v29 = vrot.slane %v5520_v16, 6 }
 0x3e8   : > { %v2675_v20 = vrot.slane %v2625_v38, 7  ;;  %v8879_v3 = vrot.slane %v5422_v25, 6  ;;  %v8617_v53 = vrot.slane %v5576_v49, 7 }
 0x3e9   : > { %v2328_v28 = vsel %vm8643_vm10, %v2315_v36, %v2327_v42  ;;  %v2340_v35 = vsel %vm8643_vm10, %v2327_v42, %v2339_v17 }
 0x3ea   : > { %v5584_v38 = vsel %vm8643_vm10, %v8879_v3, %v8878_v29  ;;  %v2723_v31 = vsel %vm5488_vm13, %v5309_v0, %v2675_v20  ;;  %v2387_v48 = vsel %vm5311_vm6, %v5403_v22, %v2328_v28  ;;  %v2393_v51 = vsel %vm5311_vm6, %v5443_v8, %v2340_v35 }
 0x3eb   : > { %v5598_v29 = vrot.slane %v2723_v31, 7  ;;  %v2455_v17 = vrot.slane %v2387_v48, 7  ;;  %v2467_v42 = vrot.slane %v2393_v51, 7  ;;  %v5610_v3 = vsel %vm5287_vm1, %v5505_v32, %v8617_v53 }
 0x3ec   : > { %v8881_v28 = vrot.slane %v5568_v5, 4  ;;  %v8623_v31 = vrot.slane %v5610_v3, 7  ;;  %v8628_v6 = vrot.slane %v5584_v38, 4 }
 0x3ed   : > { %v2456_v51 = vsel %vm8644_vm5, %v2443_v59, %v2455_v17  ;;  %v2468_v30 = vsel %vm8644_vm5, %v2455_v17, %v2467_v42  ;;  %v2821_v53 = vsel %vm5528_vm14, %v5309_v0, %v5598_v29  ;;  %v8882_v0 = vrot.slane %v5472_v61, 4 }
 0x3ee   : > { %v3001_v35 = vsub.f32 %v5568_v5, %v8881_v28  ;;  %v2515_v28 = vsel %vm5315_vm7, %v5403_v22, %v2456_v51  ;;  %v2521_v59 = vsel %vm5315_vm7, %v5443_v8, %v2468_v30  ;;  %v5638_v17 = vsel %vm5295_vm4, %v5505_v32, %v8623_v31 }
 0x3ef   : > { %v2985_v42 = vsel %vm1442_vm3, %v8882_v0, %v8628_v6  ;;  %v2583_v51 = vrot.slane %v2515_v28, 7  ;;  %v2595_v43 = vrot.slane %v2521_v59, 7  ;;  %v8627_v36 = vrot.slane %v5638_v17, 6 }
 0x3f0   : > { %v5646_v48 = vmul.f32 2.0, %v3001_v35  ;;  %v3002_v30 = vsub.f32 %v5584_v38, %v2985_v42  ;;  %v5654_v31 = vsel %vm8626_vm11, %v8884_v24, %v8883_v41  ;;  %v1426_v28 = vrot.slane %v5400_v12, 6 }
 0x3f1   : > { %v2584_v59 = vsel %vm8644_vm5, %v2566_v54, %v2583_v51  ;;  %v2596_v35 = vsel %vm8644_vm5, %v2583_v51, %v2595_v43  ;;  %v5667_v0 = vsel %vm5311_vm6, %v5505_v32, %v8627_v36  ;;  %v5672_v24 = vsel %vm5243_vm12, %v5654_v31, %v3344_v10 }
 0x3f2   : > { %v2631_v25 = vsel %vm5458_vm9, %v5403_v22, %v2584_v59  ;;  %v2637_v43 = vsel %vm5458_vm9, %v5443_v8, %v2596_v35  ;;  %vm8639_vm11 = vcmask 1045504   ;;  %v2858_v41 = vrot.slane %v2821_v53, 2 }
 0x3f3   : > { %v8632_v54 = vrot.slane %v5667_v0, 7  ;;  %v2681_v42 = vrot.slane %v2631_v25, 7  ;;  %v2693_v51 = vrot.slane %v2637_v43, 7  ;;  %v8885_v36 = vrot.slane %v5306_v63, 6 }
 0x3f4   : > { %v5698_v35 = vmul.f32 2.0, %v3002_v30  ;;  %v8886_v25 = vrot.slane %v5400_v12, 4  ;;  %v8887_v43 = vrot.slane %v5306_v63, 4  ;;  %v5713_v30 = vpop.f32.mrf.mxu2 }
 0x3f5   : > { %v1427_v6 = vsel %vm8643_vm10, %v8885_v36, %v1426_v28  ;;  %v5695_v59 = vsel %vm5315_vm7, %v5505_v32, %v8632_v54  ;;  %v2682_v21 = vsel %vm8644_vm5, %v2675_v20, %v2681_v42  ;;  %v2694_v36 = vsel %vm8644_vm5, %v2681_v42, %v2693_v51  ;;  %v5715_v54 = vpop.f32.mrf.mxu1 }
 0x3f6   : > { %v1450_v10 = vsel %vm1442_vm3, %v8887_v43, %v8886_v25  ;;  %v8888_v28 = vrot.slane %v5672_v24, 7  ;;  %v1440_v53 = vsub.f32 %v5400_v12, %v1427_v6  ;;  %v2729_v25 = vsel %vm5488_vm13, %v5403_v22, %v2682_v21 }
 0x3f7   : > { %v2735_v20 = vsel %vm5488_vm13, %v5443_v8, %v2694_v36  ;;  %v2779_v6 = vrot.slane %v2729_v25, 7  ;;  %v8890_v43 = vrot.slane %v5306_v63, 6  ;;  %v2940_v36 = vrot.slane %v5713_v30, 6 }
 0x3f8   : > { %v3399_v32 = vsel %vm8644_vm5, %v8889_v56, %v8888_v28  ;;  %v1465_v56 = vsub.f32 %v5400_v12, %v1450_v10  ;;  %v2791_v42 = vrot.slane %v2735_v20, 7  ;;  %v8891_v28 = vrot.slane %v5254_v26, 6 }
 0x3f9   : > { %v3446_v55 = vsel %vm5266_vm15, %v5654_v31, %v3399_v32  ;;  %v2928_v13 = vperm.slane %v5715_v54, 4  ;;  %v2780_v12 = vsel %vm8644_vm5, %v5598_v29, %v2779_v6  ;;  %v8892_v32 = vrot.slane %v5555_v7, 7 }
 0x3fa   : > { %v5728_v51 = vrot.slane %v3446_v55, 7  ;;  %v1423_v21 = vsel %vm8643_vm10, %v8891_v28, %v8890_v43  ;;  %v1473_v18 = vmul.f32 2.0, %v1465_v56  ;;  %v2792_v10 = vsel %vm8644_vm5, %v2779_v6, %v2791_v42 }
 0x3fb   : > { %v1438_v9 = vsub.f32 %v5306_v63, %v1423_v21  ;;  %v2942_v20 = vrot.slane %v5715_v54, 6  ;;  %v2827_v63 = vsel %vm5528_vm14, %v5403_v22, %v2780_v12  ;;  %v2833_v29 = vsel %vm5528_vm14, %v5443_v8, %v2792_v10 }
 0x3fc   : > { %v3483_v25 = vsel %vm8644_vm5, %v8892_v32, %v5728_v51  ;;  %v1491_v55 = vrot.slane %v1473_v18, 1  ;;  %v2859_v56 = vrot.slane %v2827_v63, 2  ;;  %v2876_v6 = vrot.slane %v2833_v29, 2  ;;  %v5937_v50 = vpop.f32.mrf.mxu2 }
 0x3fd   : > { %v3530_v7 = vsel %vm5278_vm0, %v5654_v31, %v3483_v25  ;;  %v8893_v43 = vrot.slane %v5496_v11, 6  ;;  %v8894_v8 = vrot.slane %v5447_v62, 1  ;;  %v8895_v21 = vrot.slane %v5378_v40, 1 }
 0x3fe   : > { %v5760_v42 = vrot.slane %v3530_v7, 7  ;;  %v2860_v32 = vsel %vm8639_vm11, %v2858_v41, %v2859_v56  ;;  %v2877_v25 = vsel %vm8639_vm11, %v2859_v56, %v2876_v6  ;;  %2919 = vst [vmem:[%s5749_s8 + $0x60] sm:$0x1f] %v2876_v6  ;;  %v8896_v63 = vrot.slane %v5576_v49, 7 }
 0x3ff   : > { %v5767_v22 = vsel %vm8643_vm10, %v8893_v43, %v2940_v36  ;;  %v1496_v28 = vsel %vm1307_vm2, %v1491_v55, %v8894_v8  ;;  %v1492_v18 = vsel %vm1307_vm2, %v8895_v21, %v1491_v55  ;;  %2906 = vst [vmem:[%s5749_s8] sm:$0xff] %v2860_v32  ;;  %v8897_v43 = vrot.slane %v5568_v5, 6 }
 0x400   : > { %v8641_v12 = vrot.slane %v5767_v22, 6  ;;  %v8640_v10 = vrot.slane %v5767_v22, 4  ;;  %v3567_v62 = vsel %vm8644_vm5, %v8896_v63, %v5760_v42  ;;  %v1509_v29 = vadd.f32 %v1496_v28, %v1440_v53  ;;  %2913 = vst [vmem:[%s5749_s8 + $0x30] sm:$0xff] %v2877_v25 }
 0x401   : > { %v3614_v7 = vsel %vm5287_vm1, %v5654_v31, %v3567_v62  ;;  %v1507_v55 = vadd.f32 %v1492_v18, %v1438_v9  ;;  %v8898_v49 = vrot.slane %v5568_v5, 4  ;;  %v3974_v53 = vrot.slane %v5695_v59, 7 }
 0x402   : > { %v5793_v41 = vsel %vm8643_vm10, %v8897_v43, %v8641_v12  ;;  %v5803_v8 = vmul.f32 0.1, %v1509_v29  ;;  %v5806_v28 = vrot.slane %v3614_v7, 7  ;;  %v8899_v18 = vrot.slane %v5520_v16, 6 }
 0x403   : > { %v2987_v56 = vsel %vm1442_vm3, %v8898_v49, %v8640_v10  ;;  %v5808_v21 = vmul.f32 0.1, %v1507_v55  ;;  %v3290_v63 = vrot.slane %v5715_v54, 3  ;;  %v3350_v29 = vsel %vm5231_vm8, %v5715_v54, 0.0 }
 0x404   : > { %v3003_v9 = vsub.f32 %v5767_v22, %v2987_v56  ;;  %v2943_v32 = vsel %vm8643_vm10, %v8899_v18, %v2942_v20  ;;  %v1654_v25 = vrot.slane %v5803_v8, 3  ;;  %v8900_v20 = vrot.slane %v5520_v16, 3 }
 0x405   : > { %v1649_v55 = vrot.slane %v5808_v21, 3  ;;  %v5825_v49 = vsel %vm1307_vm2, %v2943_v32, %v2928_v13  ;;  %vm8901_vm11 = vcmask 1044480   ;;  %v1528_v19 = vrot.slane %v5808_v21, 1 }
 0x406   : > { %v5817_v43 = vmul.f32 2.0, %v3003_v9  ;;  %v5830_v56 = vsel %vm8901_vm11, %v8900_v20, %v3290_v63  ;;  %1666 = vrot.lane.b32.xlu2 %v1654_v25, %s4638_s15  ;;  %v1533_v9 = vrot.slane %v5803_v8, 1  ;;  %v2988_v18 = vrot.slane %v5825_v49, 4  ;;  %vm8902_vm8 = vmmov %vm8901_vm11 }
 0x407   : > { %v1655_v32 = vsel %vm8902_vm8, %v1649_v55, %v1654_v25  ;;  %v3368_v20 = vsel %vm5243_vm12, %v5830_v56, %v3350_v29  ;;  %v8903_v62 = vrot.slane %v5610_v3, 7  ;;  %v8904_v54 = vrot.slane %v5584_v38, 4  ;;  %vm8919_vm11 = vmmov %vm8902_vm8 }
 0x408   : > { %1662 = vrot.lane.b32.xlu0 %v1655_v32, %s4638_s15  ;;  %v3006_v10 = vsub.f32 %v2928_v13, %v2988_v18  ;;  %v3410_v12 = vrot.slane %v3368_v20, 7  ;;  %v8905_v3 = vrot.slane %v5467_v39, 6  ;;  %v8907_v16 = vrot.slane %v5534_v47, 1  ;;  %vm8922_vm12 = vmmov %vm8902_vm8 }
 0x409   : > { %v3651_v6 = vsel %vm8644_vm5, %v8903_v62, %v5806_v28  ;;  %v2989_v7 = vsel %vm1442_vm3, %v8904_v54, %v2988_v18  ;;  %v8906_v62 = vrot.slane %v5363_v1, 6  ;;  %v8908_v54 = vrot.slane %v5537_v15, 1 }
 0x40a   : > { %v3704_v25 = vsel %vm5295_vm4, %v5654_v31, %v3651_v6  ;;  %v3004_v34 = vsub.f32 %v5825_v49, %v2989_v7  ;;  %v5868_v18 = vmul.f32 2.0, %v3006_v10  ;;  %v5871_v6 = vsel %vm8643_vm10, %v3290_v63, 0.0 }
 0x40b   : > { %v5856_v29 = vrot.slane %v3704_v25, 6  ;;  %v1429_v32 = vsel %vm8643_vm10, %v8906_v62, %v8905_v3  ;;  %v1498_v13 = vsel %vm1307_vm2, %v8908_v54, %v8907_v16  ;;  %v8909_v7 = vrot.slane %v5672_v24, 7 }
 0x40c   : > { %v1441_v25 = vsub.f32 %v5467_v39, %v1429_v32  ;;  %v8910_v47 = vrot.slane %v5638_v17, 6  ;;  %v8911_v10 = vrot.slane %v5254_v26, 6  ;;  %v8912_v62 = vrot.slane %v5378_v40, 1 }
 0x40d   : > { %v3411_v20 = vsel %vm8644_vm5, %v8909_v7, %v3410_v12  ;;  %v8913_v24 = vrot.slane %v5300_v57, 1  ;;  %v5892_v39 = vmul.f32 2.0, %v3004_v34  ;;  %v8914_v34 = vrot.slane %v5436_v4, 1 }
 0x40e   : > { %v3452_v3 = vsel %vm5266_vm15, %v5830_v56, %v3411_v20  ;;  %v3753_v16 = vsel %vm8643_vm10, %v8910_v47, %v5856_v29  ;;  %v1436_v63 = vsub.f32 %v5254_v26, %v8911_v10  ;;  %v1510_v17 = vadd.f32 %v1498_v13, %v1441_v25  ;;  %vm8924_vm15 = vmmov %vm8902_vm8 }
 0x40f   : > { %v1487_v12 = vsel %vm1307_vm2, %v8913_v24, %v8912_v62  ;;  %v3494_v32 = vrot.slane %v3452_v3, 7  ;;  %v3818_v58 = vsel %vm5311_vm6, %v5654_v31, %v3753_v16  ;;  %v5902_v26 = vsel %vm1307_vm2, %v1528_v19, %v1533_v9 }
 0x410   : > { %v5904_v40 = vrot.slane %v3818_v58, 7  ;;  %v1505_v57 = vadd.f32 %v1487_v12, %v1436_v63  ;;  %v1494_v7 = vsel %vm1307_vm2, %v8914_v34, %v8908_v54  ;;  %v3034_v20 = vrot.slane %v5868_v18, 1 }
 0x411   : > { %v3495_v13 = vsel %vm8644_vm5, %v5728_v51, %v3494_v32  ;;  %v5914_v25 = vmul.f32 0.1, %v1510_v17  ;;  %v8915_v3 = vmov %v8914_v34  ;;  %v8916_v47 = vrot.slane %v5375_v45, 1 }
 0x412   : > { %v3536_v15 = vsel %vm5278_vm0, %v5830_v56, %v3495_v13  ;;  %v8917_v10 = vrot.slane %v5667_v0, 7  ;;  %v5928_v62 = vmul.f32 0.1, %v1505_v57  ;;  %v8918_v51 = vsub.f32 %v5363_v1, %v5397_v37 }
 0x413   : > { %v1490_v16 = vsel %vm1307_vm2, %v8916_v47, %v8915_v3  ;;  %v3030_v4 = vrot.slane %v5892_v39, 1  ;;  %v3578_v45 = vrot.slane %v3536_v15, 7  ;;  %v1520_v58 = vperm.slane %v5914_v25, 7 }
 0x414   : > { %v3867_v63 = vsel %vm8644_vm5, %v8917_v10, %v5904_v40  ;;  %v1508_v24 = vadd.f32 %v1494_v7, %v8918_v51  ;;  %v1506_v32 = vadd.f32 %v1490_v16, %v5342_v46  ;;  %v1535_v17 = vrot.slane %v5914_v25, 1 }
 0x415   : > { %v3932_v12 = vsel %vm5315_vm7, %v5654_v31, %v3867_v63  ;;  %v1656_v1 = vrot.slane %v5914_v25, 3  ;;  %v3579_v37 = vsel %vm8644_vm5, %v5760_v42, %v3578_v45  ;;  %v1648_v57 = vrot.slane %v5928_v62, 3 }
 0x416   : > { %v5940_v0 = vrot.slane %v3932_v12, 7  ;;  %v2929_v54 = vperm.slane %v5937_v50, 4  ;;  %v2944_v34 = vrot.slane %v5937_v50, 6  ;;  %v3620_v46 = vsel %vm5287_vm1, %v5830_v56, %v3579_v37 }
 0x417   : > { %1668 = vrot.lane.b32.xlu1 %v1656_v1, %s4638_s15  ;;  %v1517_v13 = vperm.slane %v5928_v62, 3  ;;  %v5959_v42 = vmul.f32 0.1, %v1508_v24  ;;  %v3662_v3 = vrot.slane %v3620_v46, 7  ;;  %v1650_v14 = vsel %vm8919_vm11, %v1648_v57, %v1649_v55 }
 0x418   : > { %v3976_v7 = vsel %vm8644_vm5, %v3974_v53, %v5940_v0  ;;  %v2945_v59 = vsel %vm8643_vm10, %v2940_v36, %v2944_v34  ;;  %1658 = vrot.lane.b32.xlu2 %v1650_v14, %s4638_s15  ;;  %v5975_v10 = vmul.f32 0.1, %v1506_v32  ;;  %v1527_v32 = vrot.slane %v5928_v62, 1 }
 0x419   : > { %v4034_v47 = vsel %vm5458_vm9, %v5654_v31, %v3976_v7  ;;  %v2955_v16 = vsel %vm1307_vm2, %v2945_v59, %v2929_v54  ;;  %v1652_v15 = vrot.slane %v5959_v42, 3  ;;  %v3663_v63 = vsel %vm8644_vm5, %v5806_v28, %v3662_v3 }
 0x41a   : > { %v5970_v53 = vrot.slane %v4034_v47, 7  ;;  %v3716_v55 = vsel %vm5295_vm4, %v5871_v6, %v3662_v3  ;;  %v2968_v51 = vrot.slane %v2955_v16, 6  ;;  %v2990_v24 = vrot.slane %v2955_v16, 4 }
 0x41b   : > { %v3710_v36 = vsel %vm5295_vm4, %v5830_v56, %v3663_v63  ;;  %v3776_v45 = vrot.slane %v3716_v55, 6  ;;  %v8920_v57 = vrot.slane %v5767_v22, 6  ;;  %v8921_v46 = vrot.slane %v5767_v22, 4  ;;  %vm8932_vm4 = vmmov %vm8902_vm8 }
 0x41c   : > { %v4118_v12 = vsel %vm5488_vm13, %v5654_v31, %v5970_v53  ;;  %v3764_v37 = vrot.slane %v3710_v36, 6  ;;  %v3007_v3 = vsub.f32 %v2929_v54, %v2990_v24  ;;  %v1531_v47 = vrot.slane %v5959_v42, 1  ;;  %vm8947_vm8 = vmmov %vm8932_vm4 }
 0x41d   : > { %v5990_v28 = vrot.slane %v4118_v12, 7  ;;  %v2969_v34 = vsel %vm8643_vm10, %v8920_v57, %v2968_v51  ;;  %v2991_v52 = vsel %vm1442_vm3, %v8921_v46, %v2990_v24  ;;  %v1657_v14 = vsel %vm8922_vm12, %v1652_v15, %v1656_v1  ;;  %vm8948_vm11 = vmmov %vm8932_vm4 }
 0x41e   : > { %v3005_v7 = vsub.f32 %v2955_v16, %v2991_v52  ;;  %v3765_v59 = vsel %vm8643_vm10, %v5856_v29, %v3764_v37  ;;  %v3777_v63 = vsel %vm8643_vm10, %v3764_v37, %v3776_v45  ;;  %v2981_v55 = vsub.f32 %v2955_v16, %v2969_v34 }
 0x41f   : > { %v1518_v36 = vperm.slane %v5975_v10, 3  ;;  %v3824_v51 = vsel %vm5311_vm6, %v5830_v56, %v3765_v59  ;;  %v3830_v54 = vsel %vm5311_vm6, %v5871_v6, %v3777_v63  ;;  %v4202_v1 = vsel %vm5528_vm14, %v5654_v31, %v5990_v28  ;;  %1664 = vrot.lane.b32.xlu1 %v1657_v14, %s4638_s15  ;;  %vm8940_vm6 = vmmov %vm8932_vm4 }
 0x420   : > { %v6014_v42 = vmul.f32 2.0, %v3005_v7  ;;  %v3878_v29 = vrot.slane %v3824_v51, 7  ;;  %v3890_v16 = vrot.slane %v3830_v54, 7  ;;  %v3015_v24 = vmul.f32 2.0, %v3007_v3 }
 0x421   : > { %v1530_v45 = vrot.slane %v5975_v10, 1  ;;  %v1651_v37 = vrot.slane %v5975_v10, 3  ;;  %v8923_v23 = vperm.slane %v5803_v8, 7  ;;  %v1553_v31 = vrot.slane %v5902_v26, 6 }
 0x422   : > { %v3032_v12 = vrot.slane %v6014_v42, 1  ;;  %v3879_v34 = vsel %vm8644_vm5, %v5904_v40, %v3878_v29  ;;  %v3891_v46 = vsel %vm8644_vm5, %v3878_v29, %v3890_v16  ;;  %v3036_v52 = vrot.slane %v3015_v24, 1 }
 0x423   : > { %v1545_v57 = vsel %vm1307_vm2, %v1533_v9, %v8923_v23  ;;  %v3938_v3 = vsel %vm5315_vm7, %v5830_v56, %v3879_v34  ;;  %v3944_v10 = vsel %vm5315_vm7, %v5871_v6, %v3891_v46  ;;  %v1653_v14 = vsel %vm8924_vm15, %v1651_v37, %v1652_v15  ;;  %vm8941_vm7 = vmmov %vm8932_vm4 }
 0x424   : > { %v1557_v7 = vrot.slane %v1545_v57, 6  ;;  %v1575_v9 = vrot.slane %v5902_v26, 4  ;;  %v3992_v59 = vrot.slane %v3938_v3, 7  ;;  %v4004_v63 = vrot.slane %v3944_v10, 7  ;;  %1660 = vrot.lane.b32.xlu2 %v1653_v14, %s4638_s15 }
 0x425   : > { %v4238_v51 = vrot.slane %v4202_v1, 2  ;;  %v3037_v40 = vsel %vm1307_vm2, %v3032_v12, %v3036_v52  ;;  %v1532_v54 = vsel %vm1307_vm2, %v1530_v45, %v1531_v47  ;;  %v1579_v16 = vrot.slane %v1545_v57, 4 }
 0x426   : > { %v1558_v29 = vsel %vm8643_vm10, %v1553_v31, %v1557_v7  ;;  %v1529_v2 = vsel %vm1307_vm2, %v1527_v32, %v1528_v19  ;;  %v3993_v15 = vsel %vm8644_vm5, %v5940_v0, %v3992_v59  ;;  %v4005_v1 = vsel %vm8644_vm5, %v3992_v59, %v4004_v63 }
 0x427   : > { %v6049_v24 = vadd.f32 %v3037_v40, %v2981_v55  ;;  %v1543_v37 = vsel %vm8643_vm10, %v1517_v13, %v1529_v2  ;;  %v4040_v45 = vsel %vm5458_vm9, %v5830_v56, %v3993_v15  ;;  %v4046_v21 = vsel %vm5458_vm9, %v5871_v6, %v4005_v1  ;;  %vm8944_vm9 = vmmov %vm8932_vm4 }
 0x428   : > { %v1580_v19 = vsel %vm1442_vm3, %v1575_v9, %v1579_v16  ;;  %v8925_v0 = vmov %v8923_v23  ;;  %v4076_v23 = vrot.slane %v4040_v45, 7  ;;  %v4088_v55 = vrot.slane %v4046_v21, 7 }
 0x429   : > { %v1597_v32 = vsub.f32 %v8925_v0, %v1579_v16  ;;  %v1595_v34 = vsub.f32 %v1545_v57, %v1580_v19  ;;  %v1551_v46 = vrot.slane %v1543_v37, 6  ;;  %v1571_v62 = vsub.f32 %v1545_v57, %v1558_v29 }
 0x42a   : > { %v1573_v13 = vrot.slane %v1543_v37, 4  ;;  %v6066_v7 = vsel %vm1307_vm2, %v1531_v47, %v1535_v17  ;;  %v4077_v33 = vsel %vm8644_vm5, %v5970_v53, %v4076_v23  ;;  %v4089_v3 = vsel %vm8644_vm5, %v4076_v23, %v4088_v55 }
 0x42b   : > { %v1605_v52 = vmul.f32 2.0, %v1597_v32  ;;  %v1603_v10 = vmul.f32 2.0, %v1595_v34  ;;  %v6072_v8 = vsel %vm8643_vm10, %v1518_v36, %v1532_v54  ;;  %v4124_v57 = vsel %vm5488_vm13, %v5830_v56, %v4077_v33 }
 0x42c   : > { %v4130_v14 = vsel %vm5488_vm13, %v5871_v6, %v4089_v3  ;;  %v6085_v53 = vsel %vm1307_vm2, %v1535_v17, %v1520_v58  ;;  %v4160_v47 = vrot.slane %v4124_v57, 7  ;;  %v1554_v40 = vsel %vm8643_vm10, %v1551_v46, %v1553_v31  ;;  %vm8945_vm13 = vmmov %vm8932_vm4 }
 0x42d   : > { %v1625_v59 = vrot.slane %v1605_v52, 1  ;;  %v4172_v63 = vrot.slane %v4130_v14, 7  ;;  %v1621_v36 = vrot.slane %v1603_v10, 1  ;;  %v1576_v54 = vsel %vm1442_vm3, %v1573_v13, %v1575_v9 }
 0x42e   : > { %v1591_v29 = vsub.f32 %v1543_v37, %v1573_v13  ;;  %v1552_v16 = vrot.slane %v6072_v8, 6  ;;  %v1555_v27 = vrot.slane %v6066_v7, 6  ;;  %v4161_v2 = vsel %vm8644_vm5, %v5990_v28, %v4160_v47 }
 0x42f   : > { %v4173_v15 = vsel %vm8644_vm5, %v4160_v47, %v4172_v63  ;;  %v1626_v17 = vsel %vm1307_vm2, %v1621_v36, %v1625_v59  ;;  %v1593_v1 = vsub.f32 %v5902_v26, %v1576_v54  ;;  %v4208_v31 = vsel %vm5528_vm14, %v5830_v56, %v4161_v2 }
 0x430   : > { %v4214_v9 = vsel %vm5528_vm14, %v5871_v6, %v4173_v15  ;;  %v1639_v45 = vadd.f32 %v1626_v17, %v1571_v62  ;;  %v1599_v21 = vmul.f32 2.0, %v1591_v29  ;;  %v4239_v19 = vrot.slane %v4208_v31, 2  ;;  %vm8946_vm14 = vmmov %vm8932_vm4 }
 0x431   : > { %v4256_v28 = vrot.slane %v4214_v9, 2  ;;  %v1567_v0 = vsub.f32 %v1543_v37, %v1551_v46  ;;  %v1601_v32 = vmul.f32 2.0, %v1593_v1  ;;  %v1569_v55 = vsub.f32 %v5902_v26, %v1554_v40 }
 0x432   : > { %v6102_v23 = vmul.f32 0.1, %v1639_v45  ;;  %v1615_v34 = vrot.slane %v1599_v21, 1  ;;  %v1559_v52 = vrot.slane %v6085_v53, 6  ;;  %vm8926_vm0 = vcmask 1045504  }
 0x433   : > { %v4240_v56 = vsel %vm8926_vm0, %v4238_v51, %v4239_v19  ;;  %vm8927_vm1 = vmmov %vm8926_vm0  ;;  %4447 = vst [vmem:[%s5749_s8 + $0xf0] sm:$0x1f] %v4256_v28  ;;  %v1616_v6 = vrot.slane %v1601_v32, 1  ;;  %v1574_v62 = vrot.slane %v6072_v8, 4  ;;  %v1556_v46 = vsel %vm8643_vm10, %v1552_v16, %v1555_v27 }
 0x434   : > { %v4257_v60 = vsel %vm8927_vm1, %v4239_v19, %v4256_v28  ;;  %4435 = vst [vmem:[%s5749_s8 + $0x90] sm:$0xff] %v4240_v56  ;;  %v1695_v37 = vrot.slane %v6102_v23, 3  ;;  %v1577_v26 = vrot.slane %v6066_v7, 4  ;;  %v1581_v13 = vrot.slane %v6085_v53, 4 }
 0x435   : > { %4441 = vst [vmem:[%s5749_s8 + $0xc0] sm:$0xff] %v4257_v60  ;;  %v1617_v51 = vsel %vm1307_vm2, %v1615_v34, %v1616_v6  ;;  %v1622_v33 = vsel %vm1307_vm2, %v1616_v6, %v1621_v36  ;;  %v1560_v3 = vsel %vm8643_vm10, %v1555_v27, %v1559_v52  ;;  %v8928_v10 = vrot.slane %v5825_v49, 6 }
 0x436   : > { %v8929_v57 = vrot.slane %v5584_v38, 6  ;;  %1707 = vrot.lane.b32.xlu1 %v1695_v37, %s4639_s25  ;;  %v1635_v59 = vadd.f32 %v1617_v51, %v1567_v0  ;;  %v1637_v47 = vadd.f32 %v1622_v33, %v1569_v55  ;;  %v1578_v63 = vsel %vm1442_vm3, %v1574_v62, %v1577_v26 }
 0x437   : > { %v1582_v40 = vsel %vm1442_vm3, %v1577_v26, %v1581_v13  ;;  %v1594_v36 = vsub.f32 %v6066_v7, %v1578_v63  ;;  %v1598_v29 = vsub.f32 %v1520_v58, %v1581_v13  ;;  %v1570_v17 = vsub.f32 %v6066_v7, %v1556_v46 }
 0x438   : > { %v2967_v14 = vsel %vm8643_vm10, %v8929_v57, %v8928_v10  ;;  %v1596_v54 = vsub.f32 %v6085_v53, %v1582_v40  ;;  %v1641_v2 = vmul.f32 0.1, %v1635_v59  ;;  %v1643_v15 = vmul.f32 0.1, %v1637_v47 }
 0x439   : > { %v2980_v27 = vsub.f32 %v5825_v49, %v2967_v14  ;;  %v3035_v1 = vsel %vm1307_vm2, %v3030_v4, %v3034_v20  ;;  %v1602_v31 = vmul.f32 2.0, %v1594_v36  ;;  %v1606_v45 = vmul.f32 2.0, %v1598_v29 }
 0x43a   : > { %v1604_v9 = vmul.f32 2.0, %v1596_v54  ;;  %v1689_v19 = vrot.slane %v1641_v2, 3  ;;  %v1690_v28 = vrot.slane %v1643_v15, 3  ;;  %v1572_v25 = vsub.f32 %v6085_v53, %v1560_v3 }
 0x43b   : > { %v3048_v21 = vadd.f32 %v3035_v1, %v2980_v27  ;;  %v8930_v49 = vmov %v8929_v57  ;;  %v8931_v58 = vrot.slane %v5472_v61, 6  ;;  %v1619_v0 = vrot.slane %v1602_v31, 1 }
 0x43c   : > { %v1623_v18 = vrot.slane %v1604_v9, 1  ;;  %v1627_v32 = vrot.slane %v1606_v45, 1  ;;  %v1691_v20 = vsel %vm8932_vm4, %v1689_v19, %v1690_v28  ;;  %v8934_v56 = vrot.slane %v5698_v35, 1 }
 0x43d   : > { %v2963_v7 = vsel %vm8643_vm10, %v8931_v58, %v8930_v49  ;;  %v6148_v55 = vmul.f32 0.1, %v3048_v21  ;;  %v8933_v34 = vmov %v8931_v58  ;;  %v8935_v53 = vrot.slane %v5539_v44, 1  ;;  %1699 = vrot.lane.b32.xlu2 %v1691_v20, %s4639_s25 }
 0x43e   : > { %v2976_v52 = vsub.f32 %v5472_v61, %v8933_v34  ;;  %v8936_v6 = vmov %v8934_v56  ;;  %v1624_v26 = vsel %vm1307_vm2, %v1619_v0, %v1623_v18  ;;  %v1628_v13 = vsel %vm1307_vm2, %v1623_v18, %v1627_v32 }
 0x43f   : > { %v3026_v60 = vsel %vm1307_vm2, %v8935_v53, %v8934_v56  ;;  %v3031_v46 = vsel %vm1307_vm2, %v8936_v6, %v3030_v4  ;;  %v3192_v61 = vrot.slane %v6148_v55, 3  ;;  %v2978_v51 = vsub.f32 %v5584_v38, %v2963_v7 }
 0x440   : > { %v1638_v33 = vadd.f32 %v1624_v26, %v1570_v17  ;;  %v1640_v44 = vadd.f32 %v1628_v13, %v1572_v25  ;;  %v3058_v3 = vperm.slane %v6148_v55, 7  ;;  %v3044_v10 = vadd.f32 %v3026_v60, %v2976_v52 }
 0x441   : > { %3204 = vrot.lane.b32.xlu1 %v3192_v61, %s4638_s15  ;;  %v3072_v35 = vrot.slane %v6148_v55, 1  ;;  %v3046_v39 = vadd.f32 %v3031_v46, %v2978_v51  ;;  %v1592_v4 = vsub.f32 %v6072_v8, %v1574_v62  ;;  %v8937_v57 = vrot.slane %v5817_v43, 1 }
 0x442   : > { %v8938_v38 = vrot.slane %v5568_v5, 6  ;;  %v1644_v47 = vmul.f32 0.1, %v1638_v33  ;;  %v1646_v63 = vmul.f32 0.1, %v1640_v44  ;;  %v8939_v29 = vsub.f32 %v5767_v22, %v5793_v41 }
 0x443   : > { %v3033_v14 = vsel %vm1307_vm2, %v8937_v57, %v3032_v12  ;;  %v3050_v40 = vmul.f32 0.1, %v3044_v10  ;;  %v3052_v36 = vmul.f32 0.1, %v3046_v39  ;;  %v1600_v54 = vmul.f32 2.0, %v1592_v4 }
 0x444   : > { %v2977_v59 = vsub.f32 %v5568_v5, %v8938_v38  ;;  %v3047_v27 = vadd.f32 %v3033_v14, %v8939_v29  ;;  %v6185_v62 = vmul.f32 0.1, %v6049_v24  ;;  %v1693_v42 = vrot.slane %v1644_v47, 3 }
 0x445   : > { %v1697_v2 = vrot.slane %v1646_v63, 3  ;;  %v1696_v12 = vsel %vm8940_vm6, %v1690_v28, %v1695_v37  ;;  %v1568_v5 = vsub.f32 %v6072_v8, %v1552_v16  ;;  %v6196_v15 = vsel %vm1307_vm2, %v3072_v35, %v3058_v3 }
 0x446   : > { %v3066_v22 = vrot.slane %v3050_v40, 1  ;;  %v3067_v41 = vrot.slane %v3052_v36, 1  ;;  %v1618_v17 = vrot.slane %v1600_v54, 1  ;;  %v3056_v1 = vperm.slane %v3050_v40, 3  ;;  %1703 = vrot.lane.b32.xlu2 %v1696_v12, %s4639_s25 }
 0x447   : > { %v1698_v24 = vsel %vm8941_vm7, %v1693_v42, %v1697_v2  ;;  %v3186_v31 = vrot.slane %v3050_v40, 3  ;;  %v6199_v9 = vmul.f32 0.1, %v3047_v27  ;;  %v3187_v23 = vrot.slane %v3052_v36, 3 }
 0x448   : > { %1705 = vrot.lane.b32.xlu0 %v1698_v24, %s4639_s25  ;;  %v3068_v8 = vsel %vm1307_vm2, %v3066_v22, %v3067_v41  ;;  %v1620_v16 = vsel %vm1307_vm2, %v1618_v17, %v1619_v0  ;;  %v3074_v37 = vrot.slane %v6185_v62, 1  ;;  %v3194_v19 = vrot.slane %v6185_v62, 3 }
 0x449   : > { %v1636_v45 = vadd.f32 %v1620_v16, %v1568_v5  ;;  %v3070_v21 = vrot.slane %v6199_v9, 1  ;;  %v8942_v28 = vmov %v8937_v57  ;;  %v8943_v25 = vrot.slane %v5646_v48, 1 }
 0x44a   : > { %v3190_v58 = vrot.slane %v6199_v9, 3  ;;  %v6215_v18 = vsel %vm1307_vm2, %v3067_v41, %v3072_v35  ;;  %v3082_v0 = vsel %vm8643_vm10, %v3056_v1, %v3068_v8  ;;  %v3059_v20 = vperm.slane %v6185_v62, 7 }
 0x44b   : > { %v3029_v49 = vsel %vm1307_vm2, %v8943_v25, %v8942_v28  ;;  %v1642_v32 = vmul.f32 0.1, %v1636_v45  ;;  %v3090_v34 = vrot.slane %v3082_v0, 6  ;;  %v3092_v52 = vrot.slane %v6215_v18, 6 }
 0x44c   : > { %v3045_v7 = vadd.f32 %v3029_v49, %v2977_v59  ;;  %v3112_v43 = vrot.slane %v3082_v0, 4  ;;  %v3114_v48 = vrot.slane %v6215_v18, 4  ;;  %v3118_v53 = vrot.slane %v6196_v15, 4 }
 0x44d   : > { %v3188_v60 = vsel %vm8944_vm9, %v3186_v31, %v3187_v23  ;;  %v1692_v6 = vrot.slane %v1642_v32, 3  ;;  %v3193_v46 = vsel %vm8945_vm13, %v3187_v23, %v3192_v61  ;;  %v6225_v26 = vsel %vm1307_vm2, %v3070_v21, %v3074_v37 }
 0x44e   : > { %v3051_v56 = vmul.f32 0.1, %v3045_v7  ;;  %v3195_v13 = vsel %vm8946_vm14, %v3190_v58, %v3194_v19  ;;  %v3093_v44 = vsel %vm8643_vm10, %v3090_v34, %v3092_v52  ;;  %v3115_v35 = vsel %vm1442_vm3, %v3112_v43, %v3114_v48  ;;  %1709 = vrot.lane.b32.xlu2 %v1697_v2, %s4639_s25 }
 0x44f   : > { %v1694_v10 = vsel %vm8947_vm8, %v1692_v6, %v1693_v42  ;;  %v3119_v61 = vsel %vm1442_vm3, %v3114_v48, %v3118_v53  ;;  %v3130_v39 = vsub.f32 %v3082_v0, %v3112_v43  ;;  %v3132_v57 = vsub.f32 %v6215_v18, %v3115_v35 }
 0x450   : > { %v3057_v51 = vperm.slane %v3051_v56, 3  ;;  %v3069_v33 = vrot.slane %v3051_v56, 1  ;;  %3196 = vrot.lane.b32.xlu0 %v3188_v60, %s4638_s15  ;;  %1701 = vrot.lane.b32.xlu1 %v1694_v10, %s4639_s25  ;;  %v3189_v4 = vrot.slane %v3051_v56, 3  ;;  %v3134_v14 = vsub.f32 %v6196_v15, %v3119_v61 }
 0x451   : > { %v3094_v38 = vrot.slane %v6225_v26, 6  ;;  %v3138_v59 = vmul.f32 2.0, %v3130_v39  ;;  %v3085_v63 = vsel %vm1307_vm2, %v3074_v37, %v3059_v20  ;;  %v3116_v40 = vrot.slane %v6225_v26, 4 }
 0x452   : > { %v3071_v47 = vsel %vm1307_vm2, %v3069_v33, %v3070_v21  ;;  %v3140_v36 = vmul.f32 2.0, %v3132_v57  ;;  %v6247_v54 = vmul.f32 2.0, %v3134_v14  ;;  %v3120_v27 = vrot.slane %v3085_v63, 4 }
 0x453   : > { %v3083_v29 = vsel %vm8643_vm10, %v3057_v51, %v3071_v47  ;;  %v3154_v42 = vrot.slane %v3138_v59, 1  ;;  %v3098_v22 = vrot.slane %v3085_v63, 6  ;;  %v3106_v1 = vsub.f32 %v3082_v0, %v3090_v34 }
 0x454   : > { %v3091_v12 = vrot.slane %v3083_v29, 6  ;;  %v3113_v5 = vrot.slane %v3083_v29, 4  ;;  %v3155_v41 = vrot.slane %v3140_v36, 1  ;;  %v3160_v2 = vrot.slane %v6247_v54, 1 }
 0x455   : > { %v3121_v17 = vsel %vm1442_vm3, %v3116_v40, %v3120_v27  ;;  %v3137_v24 = vsub.f32 %v3059_v20, %v3120_v27  ;;  %v3108_v31 = vsub.f32 %v6215_v18, %v3093_v44  ;;  %v3191_v8 = vsel %vm8948_vm11, %v3189_v4, %v3190_v58 }
 0x456   : > { %v3117_v9 = vsel %vm1442_vm3, %v3113_v5, %v3116_v40  ;;  %v3131_v23 = vsub.f32 %v3083_v29, %v3113_v5  ;;  %v3156_v16 = vsel %vm1307_vm2, %v3154_v42, %v3155_v41  ;;  %v3161_v37 = vsel %vm1307_vm2, %v3155_v41, %v3160_v2  ;;  %3200 = vrot.lane.b32.xlu2 %v3193_v46, %s4638_s15  ;;  %vm8949_vm3 = vmmov %vm8932_vm4  ;;  %v8954_v41 = vld [vmem:[#allocation8_spill] sm:$0xff] }
 0x457   : > { %v3133_v45 = vsub.f32 %v6225_v26, %v3117_v9  ;;  %v3174_v21 = vadd.f32 %v3156_v16, %v3106_v1  ;;  %v3176_v28 = vadd.f32 %v3161_v37, %v3108_v31  ;;  %v3135_v25 = vsub.f32 %v3085_v63, %v3121_v17  ;;  %vm8950_vm12 = vmmov %vm8949_vm3  ;;  %v8956_v31 = vld [vmem:[#allocation16_spill] sm:$0xff]  ;;  %v8961_v37 = vld [vmem:[#allocation11_spill] sm:$0xff] }
 0x458   : > { %v3139_v49 = vmul.f32 2.0, %v3131_v23  ;;  %3202 = vrot.lane.b32.xlu0 %v3195_v13, %s4638_s15  ;;  %3198 = vrot.lane.b32.xlu1 %v3191_v8, %s4638_s15  ;;  %v3095_v7 = vsel %vm8643_vm10, %v3091_v12, %v3094_v38  ;;  %v3099_v32 = vsel %vm8643_vm10, %v3094_v38, %v3098_v22  ;;  %v3145_v58 = vmul.f32 2.0, %v3137_v24  ;;  %vm8951_vm15 = vmmov %vm8949_vm3  ;;  %v8955_v24 = vld [vmem:[#allocation10_spill] sm:$0xff] }
 0x459   : > { %v3141_v0 = vmul.f32 2.0, %v3133_v45  ;;  %v3180_v20 = vmul.f32 0.1, %v3174_v21  ;;  %v3182_v34 = vmul.f32 0.1, %v3176_v28  ;;  %v3143_v56 = vmul.f32 2.0, %v3135_v25  ;;  %vm8952_vm0 = vmmov %vm8949_vm3 }
 0x45a   : > { %v3157_v43 = vrot.slane %v3139_v49, 1  ;;  %v3166_v60 = vrot.slane %v3145_v58, 1  ;;  %v3096_v6 = vrot.slane %v6196_v15, 6  ;;  %v3107_v33 = vsub.f32 %v3083_v29, %v3091_v12  ;;  %vm8962_vm6 = vmmov %vm8952_vm0 }
 0x45b   : > { %v3158_v48 = vrot.slane %v3141_v0, 1  ;;  %v3226_v51 = vrot.slane %v3180_v20, 3  ;;  %v3227_v13 = vrot.slane %v3182_v34, 3  ;;  %v3162_v44 = vrot.slane %v3143_v56, 1  ;;  %v8969_v56 = vld [vmem:[#allocation12_spill] sm:$0xff]  ;;  %vm8979_vm11 = vmmov %vm8952_vm0 }
 0x45c   : > { %v3109_v10 = vsub.f32 %v6225_v26, %v3095_v7  ;;  %v3111_v61 = vsub.f32 %v3085_v63, %v3099_v32  ;;  %v3136_v46 = vsub.f32 %v3058_v3, %v3118_v53  ;;  %v3097_v59 = vsel %vm8643_vm10, %v3092_v52, %v3096_v6 }
 0x45d   : > { %v3159_v35 = vsel %vm1307_vm2, %v3157_v43, %v3158_v48  ;;  %v3163_v39 = vsel %vm1307_vm2, %v3158_v48, %v3162_v44  ;;  %v3167_v57 = vsel %vm1307_vm2, %v3162_v44, %v3166_v60  ;;  %v3228_v47 = vsel %vm8949_vm3, %v3226_v51, %v3227_v13 }
 0x45e   : > { %v3175_v4 = vadd.f32 %v3159_v35, %v3107_v33  ;;  %v3177_v14 = vadd.f32 %v3163_v39, %v3109_v10  ;;  %v3179_v38 = vadd.f32 %v3167_v57, %v3111_v61  ;;  %v3144_v26 = vmul.f32 2.0, %v3136_v46  ;;  %3206 = vrot.lane.b32.xlu2 %v3194_v19, %s4638_s15  ;;  %v8953_v19 = vld [vmem:[#allocation9_spill] sm:$0xff] }
 0x45f   : > { %v3110_v36 = vsub.f32 %v6196_v15, %v3097_v59  ;;  %v1837_v22 = vperm.slane %v8953_v19, 1  ;;  %v1869_v1 = vperm.slane %v8955_v24, 1  ;;  %v8957_v23 = vmov 0 }
 0x460   : > { %v3181_v63 = vmul.f32 0.1, %v3175_v4  ;;  %3236 = vrot.lane.b32.xlu0 %v3228_v47, %s4639_s25  ;;  %v3183_v40 = vmul.f32 0.1, %v3177_v14  ;;  %v3185_v55 = vmul.f32 0.1, %v3179_v38  ;;  %v6289_v15 = vpop.permute.xlu2 %1666 }
 0x461   : > { %v3164_v3 = vrot.slane %v3144_v26, 1  ;;  %vm6297_vm1 = vcmp.eq.s32.totalorder %v1837_v22, 1  ;;  %v8959_v16 = vmov 0  ;;  %v1968_v45 = vperm.slane %v8961_v37, 1  ;;  %v8980_v4 = vld [vmem:[#allocation13_spill] sm:$0xff] }
 0x462   : > { %v3229_v53 = vrot.slane %v3181_v63, 3  ;;  %v3230_v54 = vrot.slane %v3183_v40, 3  ;;  %v3234_v52 = vrot.slane %v3185_v55, 3  ;;  %v8958_v23 = vsel %vm6297_vm1, 4294967295, %v8957_v23  ;;  %v8987_v55 = vld [vmem:[#allocation20_spill] sm:$0xff] }
 0x463   : > { %v3165_v18 = vsel %vm1307_vm2, %v3160_v2, %v3164_v3  ;;  %v1805_v2 = vperm.slane %v8954_v41, 1  ;;  %vm8642_vm2 = vcmask 752640   ;;  %vm6311_vm7 = vcmp.eq.s32.totalorder %v1869_v1, 1 }
 0x464   : > { %v3178_v29 = vadd.f32 %v3165_v18, %v3110_v36  ;;  %v3231_v27 = vsel %vm8950_vm12, %v3229_v53, %v3230_v54  ;;  %v3235_v12 = vsel %vm8951_vm15, %v3230_v54, %v3234_v52  ;;  %v8963_v25 = vmov 0  ;;  %v8988_v53 = vld [vmem:[#allocation14_spill] sm:$0xff]  ;;  %v8989_v54 = vld [vmem:[#allocation15_spill] sm:$0xff] }
 0x465   : > { %3238 = vrot.lane.b32.xlu1 %v3231_v27, %s4639_s25  ;;  %vm6301_vm4 = vcmp.eq.s32.totalorder %v1805_v2, 1  ;;  %v8964_v25 = vsel %vm6311_vm7, 4294967295, %v8963_v25  ;;  %vm6321_vm9 = vcmp.eq.s32.totalorder %v1968_v45, 1  ;;  %v8966_v0 = vmov 0 }
 0x466   : > { %v3184_v42 = vmul.f32 0.1, %v3178_v29  ;;  %v8960_v16 = vsel %vm6301_vm4, 4294967295, %v8959_v16  ;;  %8965 = vst [vmem:[#allocation8_spill] sm:$0xff] %v8964_v25  ;;  %v8967_v0 = vsel %vm6321_vm9, 4294967295, %v8966_v0  ;;  %v1806_v58 = vperm.slane %v8954_v41, 2 }
 0x467   : > { %8968 = vst [vmem:[#allocation16_spill] sm:$0xff] %v8967_v0  ;;  %v1838_v34 = vperm.slane %v8953_v19, 2  ;;  %v2066_v43 = vperm.slane %v8969_v56, 1  ;;  %v8970_v6 = vmov 0  ;;  %v8976_v10 = vmov 0 }
 0x468   : > { %v3232_v5 = vrot.slane %v3184_v42, 3  ;;  %3242 = vrot.lane.b32.xlu0 %v3235_v12, %s4639_s25  ;;  %vm6343_vm13 = vcmp.eq.s32.totalorder %v1806_v58, 1  ;;  %v1870_v46 = vperm.slane %v8955_v24, 2  ;;  %v2164_v57 = vperm.slane %v8980_v4, 1 }
 0x469   : > { %v8971_v6 = vsel %vm6343_vm13, 4294967295, %v8970_v6  ;;  %vm6350_vm14 = vcmp.eq.s32.totalorder %v1838_v34, 1  ;;  %vm6356_vm8 = vcmp.eq.s32.totalorder %v2066_v43, 1  ;;  %v8981_v59 = vmov 0 }
 0x46a   : > { %v3233_v62 = vsel %vm8952_vm0, %v3227_v13, %v3232_v5  ;;  %8972 = vst [vmem:[#allocation22_spill] sm:$0xff] %v8971_v6  ;;  %v8973_v13 = vmov 0  ;;  %v8977_v10 = vsel %vm6356_vm8, 4294967295, %v8976_v10  ;;  %vm6383_vm3 = vcmp.eq.s32.totalorder %v1870_v46, 1 }
 0x46b   : > { %3240 = vrot.lane.b32.xlu2 %v3233_v62, %s4639_s25  ;;  %v8974_v13 = vsel %vm6350_vm14, 4294967295, %v8973_v13  ;;  %8978 = vst [vmem:[#allocation24_spill] sm:$0xff] %v8977_v10  ;;  %v8982_v59 = vsel %vm6383_vm3, 4294967295, %v8981_v59  ;;  %vm6388_vm12 = vcmp.eq.s32.totalorder %v2164_v57, 1  ;;  %v8984_v47 = vmov 0  ;;  %v8992_v62 = vld [vmem:[#allocation17_spill] sm:$0xff] }
 0x46c   : > { %8975 = vst [vmem:[#allocation23_spill] sm:$0xff] %v8974_v13  ;;  %v8985_v47 = vsel %vm6388_vm12, 4294967295, %v8984_v47  ;;  %v1969_v63 = vperm.slane %v8961_v37, 2  ;;  %v1726_v3 = vsel %vm8642_vm2, %v8987_v55, %v6289_v15  ;;  %v2274_v36 = vperm.slane %v8988_v53, 1 }
 0x46d   : > { %3244 = vrot.lane.b32.xlu1 %v3232_v5, %s4639_s25  ;;  %8983 = vst [vmem:[#allocation13_spill] sm:$0xff] %v8982_v59  ;;  %v2402_v18 = vperm.slane %v8989_v54, 1  ;;  %v1756_v27 = vrot.slane %v1726_v3, 3  ;;  %v8990_v42 = vmov 0  ;;  %v8993_v2 = vmov 0 }
 0x46e   : > { %8986 = vst [vmem:[#allocation25_spill] sm:$0xff] %v8985_v47  ;;  %vm6413_vm15 = vcmp.eq.s32.totalorder %v1969_v63, 1  ;;  %vm6423_vm0 = vcmp.eq.s32.totalorder %v2274_v36, 1  ;;  %v1829_v1 = vsel %vm6301_vm4, %v1726_v3, 0.0  ;;  %v2165_v58 = vperm.slane %v8980_v4, 2 }
 0x46f   : > { %v8991_v42 = vsel %vm6413_vm15, 4294967295, %v8990_v42  ;;  %v8994_v2 = vsel %vm6423_vm0, 4294967295, %v8993_v2  ;;  %v1807_v34 = vperm.slane %v8954_v41, 3  ;;  %v1839_v43 = vperm.slane %v8953_v19, 3 }
 0x470   : > { %8995 = vst [vmem:[#allocation20_spill] sm:$0xff] %v8994_v2 }
 0x472   : > { %v1659_v17 = vpop.permute.xlu2 %1658 }
 0x473   : > { %3246 = vrot.lane.b32.xlu2 %v3234_v52, %s4639_s25  ;;  %v1724_v9 = vsel %vm8642_vm2, %v8956_v31, %v1659_v17  ;;  %v2067_v31 = vperm.slane %v8969_v56, 2 }
 0x474   : > { %v1737_v8 = vrot.slane %v1724_v9, 3  ;;  %v1817_v28 = vsel %vm6301_vm4, %v1724_v9, 0.0 }
 0x475   : > { %vm6469_vm5 = vcmp.eq.s32.totalorder %v2067_v31, 1 }
 0x476   : > { %v6307_v21 = vsel %vm8962_vm6, 0.0, %v1737_v8  ;;  %vm6427_vm6 = vcmp.eq.s32.totalorder %v2402_v18, 1 }
 0x477   : > { %v6318_v49 = vsel %vm6297_vm1, %v6307_v21, %v1817_v28  ;;  %v6442_v28 = vsel %vm8643_vm10, %v1756_v27, 0.0  ;;  %vm8653_vm10 = vcmask 457728  }
 0x478   : > { %v1900_v7 = vrot.slane %v6318_v49, 7 }
 0x47a   : > { %v6330_v32 = vsel %vm6311_vm7, %v6307_v21, %v1900_v7  ;;  %v6417_v12 = vpop.permute.xlu0 %1662 }
 0x47b   : > { %v1998_v20 = vrot.slane %v6330_v32, 7  ;;  %v1725_v22 = vsel %vm8642_vm2, %v8992_v62, %v6417_v12  ;;  %v9015_v32 = vmov 0 }
 0x47c   : > { %v1744_v45 = vrot.slane %v1725_v22, 3  ;;  %v1823_v63 = vsel %vm6301_vm4, %v1725_v22, 0.0 }
 0x47d   : > { %v6341_v48 = vsel %vm6321_vm9, %v6307_v21, %v1998_v20 }
 0x47e   : > { %v1661_v60 = vpop.permute.xlu2 %1660  ;;  %v8661_v44 = vrot.slane %v6341_v48, 7  ;;  %v6455_v46 = vsel %vm8979_vm11, %v1737_v8, %v1744_v45  ;;  %v8999_v8 = vmov 0 }
 0x47f   : > { %v6348_v51 = vsel %vm8642_vm2, %v1659_v17, %v1661_v60  ;;  %v8996_v17 = vmov 0  ;;  %vm8998_vm2 = vmmov %vm8979_vm11  ;;  %v1855_v3 = vsel %vm6297_vm1, %v6455_v46, %v1823_v63  ;;  %v9000_v8 = vsel %vm6469_vm5, 4294967295, %v8999_v8 }
 0x480   : > { %v8659_v33 = vrot.slane %v6348_v51, 3  ;;  %v1818_v61 = vsel %vm6343_vm13, %v6348_v51, 0.0  ;;  %v6380_v14 = vsel %vm6356_vm8, %v6307_v21, %v8661_v44  ;;  %v8997_v17 = vsel %vm6427_vm6, 4294967295, %v8996_v17 }
 0x481   : > { %v8660_v26 = vrot.slane %v6380_v14, 7  ;;  %v6458_v57 = vsel %vm8998_vm2, %v1744_v45, %v1756_v27  ;;  %v1907_v27 = vrot.slane %v1855_v3, 7  ;;  %vm6476_vm2 = vcmp.eq.s32.totalorder %v1807_v34, 1 }
 0x482   : > { %v6363_v35 = vsel %vm8979_vm11, 0.0, %v8659_v33  ;;  %v1861_v36 = vsel %vm6297_vm1, %v6458_v57, %v1829_v1  ;;  %v1871_v63 = vperm.slane %v8955_v24, 3  ;;  %vm6483_vm11 = vcmp.eq.s32.totalorder %v1839_v43, 1  ;;  %v9018_v33 = vld [vmem:[#allocation18_spill] sm:$0xff] }
 0x483   : > { %v6372_v39 = vsel %vm6350_vm14, %v6363_v35, %v1818_v61  ;;  %v6410_v52 = vsel %vm6388_vm12, %v6307_v21, %v8660_v26  ;;  %v1919_v62 = vrot.slane %v1861_v36, 7  ;;  %v9004_v1 = vmov 0 }
 0x484   : > { %v8646_v38 = vrot.slane %v6372_v39, 7  ;;  %v8652_v5 = vrot.slane %v6410_v52, 6  ;;  %v9005_v1 = vsel %vm6483_vm11, 4294967295, %v9004_v1  ;;  %vm9006_vm1 = vcmask 1040384  }
 0x485   : > { %v1908_v3 = vsel %vm9006_vm1, %v1900_v7, %v1907_v27  ;;  %vm9007_vm4 = vmmov %vm9006_vm1  ;;  %vm6511_vm1 = vcmp.eq.s32.totalorder %v2165_v58, 1 }
 0x486   : > { %v6398_v40 = vsel %vm6383_vm3, %v6363_v35, %v8646_v38  ;;  %v6452_v61 = vsel %vm6423_vm0, %v6307_v21, %v8652_v5  ;;  %v1920_v34 = vsel %vm9007_vm4, %v1907_v27, %v1919_v62  ;;  %v9008_v27 = vmov 0 }
 0x487   : > { %v8645_v29 = vrot.slane %v6398_v40, 7  ;;  %v8658_v22 = vrot.slane %v6452_v61, 7  ;;  %v1960_v49 = vsel %vm6311_vm7, %v6458_v57, %v1920_v34  ;;  %v9009_v27 = vsel %vm6511_vm1, 4294967295, %v9008_v27 }
 0x488   : > { %v1970_v62 = vperm.slane %v8961_v37, 3  ;;  %v2017_v45 = vrot.slane %v1960_v49, 7  ;;  %v2068_v5 = vperm.slane %v8969_v56, 3  ;;  %vm9010_vm4 = vcmask 1044480  }
 0x489   : > { %v6439_v9 = vsel %vm6413_vm15, %v6363_v35, %v8645_v29  ;;  %v9001_v29 = vmov 0  ;;  %v6509_v7 = vpop.permute.xlu1 %1668  ;;  %v9050_v2 = vrot.slane %v6452_v61, 7  ;;  %v9054_v61 = vrot.slane %v6372_v39, 7 }
 0x48a   : > { %v8651_v55 = vrot.slane %v6439_v9, 7  ;;  %v9002_v29 = vsel %vm6476_vm2, 4294967295, %v9001_v29 }
 0x48c   : > { %v6500_v36 = vsel %vm6469_vm5, %v6363_v35, %v8651_v55  ;;  %vm6540_vm5 = vcmp.eq.s32.totalorder %v1871_v63, 1  ;;  %v9022_v63 = vld [vmem:[#allocation19_spill] sm:$0xff] }
 0x48d   : > { %v8664_v18 = vrot.slane %v6500_v36, 7 }
 0x497   : > { %v6481_v38 = vpop.permute.xlu2 %1699 }
 0x498   : > { %9003 = vst [vmem:[#allocation14_spill] sm:$0xff] %v6481_v38  ;;  %v6489_v31 = vsel %vm8653_vm10, %v1661_v60, %v6481_v38  ;;  %v1954_v60 = vsel %vm6311_vm7, %v6455_v46, %v1908_v3  ;;  %v6521_v3 = vsel %vm6427_vm6, %v6307_v21, %v8658_v22  ;;  %vm9011_vm10 = vcmask 1040384   ;;  %v9023_v38 = vld [vmem:[#allocation21_spill] sm:$0xff] }
 0x499   : > { %v1739_v43 = vrot.slane %v6489_v31, 3  ;;  %v2005_v55 = vrot.slane %v1954_v60, 7  ;;  %v1819_v58 = vsel %vm6476_vm2, %v6489_v31, 0.0  ;;  %vm9012_vm7 = vmmov %vm9011_vm10  ;;  %v9013_v22 = vmov 0 }
 0x49a   : > { %v9014_v22 = vsel %vm6540_vm5, 4294967295, %v9013_v22  ;;  %v2744_v56 = vperm.slane %v9023_v38, 1 }
 0x49b   : > { %v6525_v34 = vsel %vm9010_vm4, 0.0, %v1739_v43  ;;  %v2006_v21 = vsel %vm9011_vm10, %v1998_v20, %v2005_v55  ;;  %v2018_v49 = vsel %vm9012_vm7, %v2005_v55, %v2017_v45  ;;  %vm6551_vm4 = vcmp.eq.s32.totalorder %v1970_v62, 1  ;;  %vm9021_vm10 = vmmov %vm9012_vm7 }
 0x49c   : > { %v6534_v60 = vsel %vm6483_vm11, %v6525_v34, %v1819_v58  ;;  %v2052_v31 = vsel %vm6321_vm9, %v6455_v46, %v2006_v21  ;;  %v2058_v58 = vsel %vm6321_vm9, %v6458_v57, %v2018_v49  ;;  %v9016_v32 = vsel %vm6551_vm4, 4294967295, %v9015_v32 }
 0x49d   : > { %9017 = vst [vmem:[#allocation15_spill] sm:$0xff] %v9016_v32  ;;  %v2103_v55 = vrot.slane %v2052_v31, 7  ;;  %v2115_v45 = vrot.slane %v2058_v58, 7  ;;  %v2530_v21 = vperm.slane %v9018_v33, 1  ;;  %v6565_v62 = vsel %vm6511_vm1, %v6363_v35, %v8664_v18 }
 0x49e   : > { %v9019_v49 = vrot.slane %v6534_v60, 7  ;;  %v9020_v58 = vrot.slane %v6341_v48, 7  ;;  %v2646_v20 = vperm.slane %v9022_v63, 1  ;;  %vm9026_vm9 = vcmask 457728  }
 0x49f   : > { %v2116_v26 = vsel %vm9012_vm7, %v2103_v55, %v2115_v45  ;;  %v9060_v39 = vrot.slane %v6534_v60, 7 }
 0x4a0   : > { %v6572_v31 = vsel %vm6540_vm5, %v6525_v34, %v9019_v49  ;;  %v2104_v44 = vsel %vm9021_vm10, %v9020_v58, %v2103_v55  ;;  %v2156_v37 = vsel %vm6356_vm8, %v6458_v57, %v2116_v26  ;;  %v1665_v49 = vpop.permute.xlu1 %1664  ;;  %vm9024_vm10 = vcmask 752640   ;;  %v6591_v55 = vpop.permute.xlu2 %1703 }
 0x4a1   : > { %v2150_v18 = vsel %vm6356_vm8, %v6455_v46, %v2104_v44  ;;  %v2213_v19 = vrot.slane %v2156_v37, 7  ;;  %v6589_v48 = vsel %vm9024_vm10, %v6289_v15, %v6509_v7  ;;  %vm9025_vm7 = vmmov %vm9024_vm10  ;;  %v6599_v26 = vsel %vm9026_vm9, %v1665_v49, %v6591_v55 }
 0x4a2   : > { %v2201_v24 = vrot.slane %v2150_v18, 7  ;;  %v1672_v45 = vsel %vm9025_vm7, %v6417_v12, %v1665_v49  ;;  %vm6601_vm8 = vcmp.eq.s32.totalorder %v2068_v5, 1  ;;  %v9027_v37 = vmov 0 }
 0x4a3   : > { %v1746_v18 = vrot.slane %v1672_v45, 3  ;;  %v9028_v37 = vsel %vm6601_vm8, 4294967295, %v9027_v37  ;;  %v9030_v15 = vrot.slane %v6380_v14, 7  ;;  %vm9031_vm10 = vcmask 1040384  }
 0x4a4   : > { %9029 = vst [vmem:[#allocation17_spill] sm:$0xff] %v9028_v37  ;;  %vm9032_vm1 = vmmov %vm9031_vm10  ;;  %v2266_v12 = vsel %vm6388_vm12, %v6442_v28, %v2213_v19  ;;  %v8686_v14 = vrot.slane %v6589_v48, 3  ;;  %vm6620_vm9 = vcmp.eq.s32.totalorder %v2530_v21, 1 }
 0x4a5   : > { %v2202_v10 = vsel %vm9031_vm10, %v9030_v15, %v2201_v24  ;;  %v2214_v0 = vsel %vm9032_vm1, %v2201_v24, %v2213_v19  ;;  %v2341_v44 = vrot.slane %v2266_v12, 6  ;;  %v9033_v15 = vmov 0 }
 0x4a6   : > { %v2254_v49 = vsel %vm6388_vm12, %v6455_v46, %v2202_v10  ;;  %v2260_v5 = vsel %vm6388_vm12, %v6458_v57, %v2214_v0  ;;  %v9034_v15 = vsel %vm6620_vm9, 4294967295, %v9033_v15  ;;  %v9035_v19 = vrot.slane %v6348_v51, 3 }
 0x4a7   : > { %v2317_v24 = vrot.slane %v2254_v49, 6  ;;  %v2329_v25 = vrot.slane %v2260_v5, 6  ;;  %vm9036_vm1 = vcmask 1044480   ;;  %v9037_v10 = vrot.slane %v6572_v31, 7 }
 0x4a8   : > { %v6627_v58 = vsel %vm9036_vm1, %v9035_v19, %v1746_v18  ;;  %v9038_v12 = vrot.slane %v6599_v26, 3  ;;  %vm9039_vm7 = vmmov %vm9036_vm1  ;;  %v1824_v51 = vsel %vm6343_vm13, %v1672_v45, 0.0  ;;  %v9041_v5 = vperm.slane %v8988_v53, 2 }
 0x4a9   : > { %v6634_v0 = vsel %vm6551_vm4, %v6525_v34, %v9037_v10  ;;  %vm9040_vm10 = vmmov %vm9036_vm1  ;;  %v9042_v19 = vmov 0  ;;  %v9044_v10 = vrot.slane %v6410_v52, 6  ;;  %vm9045_vm12 = vcmask 1041408  }
 0x4aa   : > { %v6639_v21 = vsel %vm9039_vm7, %v1739_v43, %v9038_v12  ;;  %v6644_v49 = vsel %vm9040_vm10, %v1746_v18, %v8686_v14  ;;  %vm6650_vm1 = vcmp.eq.s32.totalorder %v9041_v5, 1  ;;  %vm9046_vm7 = vmmov %vm9045_vm12  ;;  %v1856_v18 = vsel %vm6350_vm14, %v6627_v58, %v1824_v51 }
 0x4ab   : > { %v9043_v19 = vsel %vm6650_vm1, 4294967295, %v9042_v19  ;;  %v2318_v47 = vsel %vm9045_vm12, %v9044_v10, %v2317_v24  ;;  %v2330_v43 = vsel %vm9046_vm7, %v2317_v24, %v2329_v25  ;;  %vm9047_vm4 = vmmov %vm9046_vm7  ;;  %vm6662_vm10 = vcmp.eq.s32.totalorder %v2646_v20, 1 }
 0x4ac   : > { %v2342_v12 = vsel %vm9047_vm4, %v2329_v25, %v2341_v44  ;;  %v9048_v45 = vmov 0  ;;  %v2382_v5 = vsel %vm6423_vm0, %v6455_v46, %v2318_v47  ;;  %v2388_v52 = vsel %vm6423_vm0, %v6458_v57, %v2330_v43 }
 0x4ad   : > { %v9049_v45 = vsel %vm6662_vm10, 4294967295, %v9048_v45  ;;  %v2394_v25 = vsel %vm6423_vm0, %v6442_v28, %v2342_v12  ;;  %v1825_v44 = vsel %vm6476_vm2, %v6599_v26, 0.0  ;;  %v2445_v20 = vrot.slane %v2382_v5, 7 }
 0x4ae   : > { %v2457_v24 = vrot.slane %v2388_v52, 7  ;;  %v2469_v51 = vrot.slane %v2394_v25, 7  ;;  %v6681_v10 = vsel %vm6483_vm11, %v6639_v21, %v1825_v44  ;;  %v1830_v43 = vsel %vm6343_vm13, %v6589_v48, 0.0 }
 0x4af   : > { %v1909_v14 = vrot.slane %v1856_v18, 7  ;;  %vm9051_vm12 = vcmask 1040384   ;;  %v1862_v44 = vsel %vm6350_vm14, %v6644_v49, %v1830_v43 }
 0x4b0   : > { %v2446_v5 = vsel %vm9051_vm12, %v9050_v2, %v2445_v20  ;;  %vm9052_vm4 = vmmov %vm9051_vm12 }
 0x4b1   : > { %v2458_v52 = vsel %vm9052_vm4, %v2445_v20, %v2457_v24  ;;  %vm9053_vm7 = vmmov %vm9052_vm4  ;;  %v2510_v47 = vsel %vm6427_vm6, %v6455_v46, %v2446_v5  ;;  %v9058_v5 = vrot.slane %v6634_v0, 7 }
 0x4b2   : > { %v2470_v25 = vsel %vm9053_vm7, %v2457_v24, %v2469_v51  ;;  %v2516_v18 = vsel %vm6427_vm6, %v6458_v57, %v2458_v52  ;;  %vm9055_vm12 = vmmov %vm9052_vm4  ;;  %vm6708_vm4 = vcmp.eq.s32.totalorder %v2744_v56, 1  ;;  %v9056_v24 = vmov 0 }
 0x4b3   : > { %v2522_v2 = vsel %vm6427_vm6, %v6442_v28, %v2470_v25  ;;  %v1910_v20 = vsel %vm9055_vm12, %v9054_v61, %v1909_v14  ;;  %v9057_v24 = vsel %vm6708_vm4, 4294967295, %v9056_v24  ;;  %v2569_v51 = vrot.slane %v2510_v47, 7  ;;  %vm9066_vm14 = vmmov %vm9053_vm7 }
 0x4b4   : > { %v2585_v43 = vrot.slane %v2516_v18, 7  ;;  %v2597_v12 = vrot.slane %v2522_v2, 7  ;;  %v6717_v52 = vsel %vm6601_vm8, %v6525_v34, %v9058_v5  ;;  %v9059_v25 = vrot.slane %v6681_v10, 7  ;;  %vm9067_vm13 = vmmov %vm9053_vm7 }
 0x4b5   : > { %v1921_v56 = vrot.slane %v1862_v44, 7  ;;  %v1955_v47 = vsel %vm6383_vm3, %v6627_v58, %v1910_v20  ;;  %v9061_v18 = vperm.slane %v8980_v4, 3  ;;  %v9062_v2 = vmov 0  ;;  %vm9068_vm6 = vmmov %vm9053_vm7 }
 0x4b6   : > { %v1912_v61 = vsel %vm9053_vm7, %v9060_v39, %v9059_v25  ;;  %v9065_v5 = vrot.slane %v6521_v3, 7  ;;  %v2586_v6 = vsel %vm9067_vm13, %v2569_v51, %v2585_v43  ;;  %v2598_v60 = vsel %vm9068_vm6, %v2585_v43, %v2597_v12  ;;  %vm9074_vm7 = vmmov %vm9068_vm6 }
 0x4b7   : > { %vm6729_vm12 = vcmp.eq.s32.totalorder %v9061_v18, 1  ;;  %v1956_v44 = vsel %vm6540_vm5, %v6639_v21, %v1912_v61  ;;  %v2632_v25 = vsel %vm6620_vm9, %v6458_v57, %v2586_v6  ;;  %v2638_v3 = vsel %vm6620_vm9, %v6442_v28, %v2598_v60 }
 0x4b8   : > { %v9063_v2 = vsel %vm6729_vm12, 4294967295, %v9062_v2  ;;  %v2570_v13 = vsel %vm9066_vm14, %v9065_v5, %v2569_v51  ;;  %vm9069_vm14 = vmmov %vm9068_vm6  ;;  %v2683_v12 = vrot.slane %v2632_v25, 7  ;;  %v2695_v43 = vrot.slane %v2638_v3, 7 }
 0x4b9   : > { %9064 = vst [vmem:[#allocation18_spill] sm:$0xff] %v9063_v2  ;;  %v2626_v20 = vsel %vm6620_vm9, %v6455_v46, %v2570_v13  ;;  %v1922_v51 = vsel %vm9069_vm14, %v1909_v14, %v1921_v56  ;;  %v9070_v18 = vperm.slane %v8989_v54, 2  ;;  %v9071_v13 = vmov 0  ;;  %vm9076_vm14 = vmmov %vm9068_vm6 }
 0x4ba   : > { %v2676_v39 = vrot.slane %v2626_v20, 7  ;;  %v1961_v61 = vsel %vm6383_vm3, %v6644_v49, %v1922_v51  ;;  %v9073_v6 = vrot.slane %v6565_v62, 6  ;;  %v2007_v14 = vrot.slane %v1955_v47, 7 }
 0x4bb   : > { %vm6756_vm13 = vcmp.eq.s32.totalorder %v9070_v18, 1  ;;  %v6767_v56 = vrot.slane %v1956_v44, 7  ;;  %v2019_v60 = vrot.slane %v1961_v61, 7  ;;  %v2196_v20 = vrot.slane %v6717_v52, 7 }
 0x4bc   : > { %v9072_v13 = vsel %vm6756_vm13, 4294967295, %v9071_v13  ;;  %v6765_v5 = vsel %vm6650_vm1, %v6363_v35, %v9073_v6  ;;  %v2684_v25 = vsel %vm9068_vm6, %v2676_v39, %v2683_v12  ;;  %v2696_v3 = vsel %vm9074_vm7, %v2683_v12, %v2695_v43  ;;  %vm9078_vm7 = vmmov %vm9068_vm6 }
 0x4bd   : > { %v2724_v51 = vsel %vm6662_vm10, %v6455_v46, %v2676_v39  ;;  %v2730_v18 = vsel %vm6662_vm10, %v6458_v57, %v2684_v25  ;;  %v2736_v47 = vsel %vm6662_vm10, %v6442_v28, %v2696_v3  ;;  %v9075_v61 = vrot.slane %v6398_v40, 7 }
 0x4be   : > { %v2774_v44 = vrot.slane %v2724_v51, 7  ;;  %v2781_v6 = vrot.slane %v2730_v18, 7  ;;  %v2793_v59 = vrot.slane %v2736_v47, 7  ;;  %v9077_v12 = vrot.slane %v6572_v31, 7 }
 0x4bf   : > { %v2008_v52 = vsel %vm9076_vm14, %v9075_v61, %v2007_v14  ;;  %v2020_v43 = vsel %vm9078_vm7, %v2007_v14, %v2019_v60  ;;  %vm9079_vm14 = vnez %v9016_v32  ;;  %v2439_v51 = vrot.slane %v6765_v5, 7  ;;  %vm9080_vm7 = vmmov %vm9068_vm6 }
 0x4c0   : > { %v2010_v39 = vsel %vm9068_vm6, %v9077_v12, %v6767_v56  ;;  %v2822_v25 = vsel %vm6708_vm4, %v6455_v46, %v2774_v44  ;;  %v2053_v3 = vsel %vm6413_vm15, %v6627_v58, %v2008_v52  ;;  %v2059_v31 = vsel %vm6413_vm15, %v6644_v49, %v2020_v43  ;;  %vm9084_vm15 = vmmov %vm9068_vm6 }
 0x4c1   : > { %v2054_v40 = vsel %vm9079_vm14, %v6639_v21, %v2010_v39  ;;  %v2782_v14 = vsel %vm9068_vm6, %v2774_v44, %v2781_v6  ;;  %v2794_v60 = vsel %vm9080_vm7, %v2781_v6, %v2793_v59  ;;  %v2105_v46 = vrot.slane %v2053_v3, 7  ;;  %vm9083_vm7 = vmmov %vm9068_vm6 }
 0x4c2   : > { %v2828_v18 = vsel %vm6708_vm4, %v6458_v57, %v2782_v14  ;;  %v2834_v47 = vsel %vm6708_vm4, %v6442_v28, %v2794_v60  ;;  %v6810_v61 = vrot.slane %v2054_v40, 7  ;;  %v2117_v52 = vrot.slane %v2059_v31, 7 }
 0x4c3   : > { %v2861_v12 = vrot.slane %v2822_v25, 2  ;;  %v2862_v39 = vrot.slane %v2828_v18, 2  ;;  %v2878_v43 = vrot.slane %v2834_v47, 2  ;;  %v9081_v44 = vrot.slane %v6439_v9, 7 }
 0x4c4   : > { %v2250_v6 = vsel %vm6729_vm12, %v6525_v34, %v2196_v20  ;;  %v9082_v57 = vrot.slane %v6634_v0, 7  ;;  %v2118_v3 = vsel %vm9084_vm15, %v2105_v46, %v2117_v52  ;;  %vm9085_vm3 = vnez %v9000_v8 }
 0x4c5   : > { %v2106_v59 = vsel %vm9068_vm6, %v9081_v44, %v2105_v46  ;;  %vm9086_vm4 = vcmask 1045504   ;;  %2920 = vst [vmem:[%s5749_s8 + $0x68] sm:$0x1f] %v2878_v43  ;;  %v2157_v0 = vsel %vm9085_vm3, %v6644_v49, %v2118_v3  ;;  %v2505_v18 = vsel %vm6756_vm13, %v6363_v35, %v2439_v51 }
 0x4c6   : > { %v2108_v28 = vsel %vm9083_vm7, %v9082_v57, %v6810_v61  ;;  %v2151_v25 = vsel %vm9085_vm3, %v6627_v58, %v2106_v59  ;;  %v2863_v9 = vsel %vm9086_vm4, %v2861_v12, %v2862_v39  ;;  %vm9087_vm10 = vmmov %vm9086_vm4  ;;  %v2215_v46 = vrot.slane %v2157_v0, 7 }
 0x4c7   : > { %v2879_v40 = vsel %vm9087_vm10, %v2862_v39, %v2878_v43  ;;  %v2152_v31 = vsel %vm6601_vm8, %v6639_v21, %v2108_v28  ;;  %2907 = vst [vmem:[%s5749_s8 + $0x8] sm:$0xff] %v2863_v9  ;;  %v2203_v14 = vrot.slane %v2151_v25, 7  ;;  %v9088_v47 = vperm.slane %v8988_v53, 3  ;;  %vm9095_vm4 = vmmov %vm9068_vm6 }
 0x4c8   : > { %v6836_v60 = vrot.slane %v2152_v31, 7  ;;  %v9089_v52 = vmov 0  ;;  %v2312_v12 = vrot.slane %v2250_v6, 6  ;;  %2914 = vst [vmem:[%s5749_s8 + $0x38] sm:$0xff] %v2879_v40  ;;  %v9092_v39 = vrot.slane %v6589_v48, 3  ;;  %vm9096_vm6 = vmmov %vm9095_vm4  ;;  %v1708_v6 = vpop.permute.xlu1 %1707 }
 0x4c9   : > { %vm6845_vm15 = vcmp.eq.s32.totalorder %v9088_v47, 1  ;;  %vm9093_vm10 = vcmask 1041408   ;;  %v9094_v44 = vrot.slane %v6500_v36, 7  ;;  %v2216_v57 = vsel %vm9096_vm6, %v2203_v14, %v2215_v46  ;;  %vm9098_vm3 = vmmov %vm9095_vm4 }
 0x4ca   : > { %v9090_v52 = vsel %vm6845_vm15, 4294967295, %v9089_v52  ;;  %v6853_v43 = vsel %vm9093_vm10, %v9092_v39, 0.0  ;;  %vm9097_vm7 = vnez %v9009_v27  ;;  %v2206_v28 = vsel %vm9098_vm3, %v2196_v20, %v6836_v60  ;;  %v6876_v20 = vpop.permute.xlu2 %1709 }
 0x4cb   : > { %9091 = vst [vmem:[#allocation19_spill] sm:$0xff] %v9090_v52  ;;  %v2204_v59 = vsel %vm9095_vm4, %v9094_v44, %v2203_v14  ;;  %v2267_v35 = vsel %vm9097_vm7, %v6853_v43, %v2215_v46  ;;  %v9099_v3 = vperm.slane %v8989_v54, 3  ;;  %v9100_v48 = vmov 0  ;;  %vm9105_vm4 = vmmov %vm9093_vm10 }
 0x4cc   : > { %v2255_v36 = vsel %vm9097_vm7, %v6627_v58, %v2204_v59  ;;  %v2261_v25 = vsel %vm9097_vm7, %v6644_v49, %v2216_v57  ;;  %v2343_v9 = vrot.slane %v2267_v35, 6  ;;  %v2571_v40 = vrot.slane %v2505_v18, 7  ;;  %vm9106_vm6 = vmmov %vm9105_vm4 }
 0x4cd   : > { %vm6866_vm9 = vcmp.eq.s32.totalorder %v9099_v3, 1  ;;  %v2319_v31 = vrot.slane %v2255_v36, 6  ;;  %v2331_v0 = vrot.slane %v2261_v25, 6  ;;  %v2256_v14 = vsel %vm6729_vm12, %v6639_v21, %v2206_v28 }
 0x4ce   : > { %v9101_v48 = vsel %vm6866_vm9, 4294967295, %v9100_v48  ;;  %v2378_v46 = vsel %vm6845_vm15, %v6525_v34, %v2312_v12  ;;  %v2531_v47 = vperm.slane %v9018_v33, 2  ;;  %v6885_v39 = vrot.slane %v2256_v14, 6 }
 0x4cf   : > { %9102 = vst [vmem:[#allocation21_spill] sm:$0xff] %v9101_v48  ;;  %vm9103_vm3 = vcmask 457728   ;;  %v9104_v18 = vrot.slane %v6565_v62, 6  ;;  %v2332_v57 = vsel %vm9105_vm4, %v2319_v31, %v2331_v0  ;;  %v2344_v35 = vsel %vm9106_vm6, %v2331_v0, %v2343_v9 }
 0x4d0   : > { %v6889_v44 = vsel %vm9103_vm3, %v1708_v6, %v6876_v20  ;;  %vm9107_vm7 = vmmov %vm9103_vm3  ;;  %v2389_v36 = vsel %vm6650_vm1, %v6644_v49, %v2332_v57  ;;  %v2395_v62 = vsel %vm6650_vm1, %v6853_v43, %v2344_v35  ;;  %v2647_v14 = vperm.slane %v9022_v63, 2 }
 0x4d1   : > { %v2320_v59 = vsel %vm9093_vm10, %v9104_v18, %v2319_v31  ;;  %v6898_v28 = vsel %vm9107_vm7, %v6509_v7, %v1708_v6  ;;  %vm9108_vm3 = vmmov %vm9105_vm4  ;;  %v2459_v31 = vrot.slane %v2389_v36, 7  ;;  %v2471_v0 = vrot.slane %v2395_v62, 7 }
 0x4d2   : > { %v2383_v3 = vsel %vm6650_vm1, %v6627_v58, %v2320_v59  ;;  %v2322_v25 = vsel %vm9108_vm3, %v2312_v12, %v6885_v39  ;;  %v2440_v6 = vrot.slane %v2378_v46, 7  ;;  %v8715_v59 = vrot.slane %v6898_v28, 3 }
 0x4d3   : > { %v2447_v9 = vrot.slane %v2383_v3, 7  ;;  %v2384_v7 = vsel %vm6845_vm15, %v6639_v21, %v2322_v25  ;;  %v2745_v57 = vperm.slane %v9023_v38, 2  ;;  %vm9109_vm7 = vcmask 1040384  }
 0x4d4   : > { %v6915_v18 = vrot.slane %v2384_v7, 7  ;;  %vm9110_vm10 = vmmov %vm9109_vm7  ;;  %vm6924_vm6 = vcmp.eq.s32.totalorder %v2531_v47, 1  ;;  %v9112_v36 = vmov 0  ;;  %v9119_v7 = vrot.slane %v6599_v26, 3 }
 0x4d5   : > { %v2448_v12 = vsel %vm9109_vm7, %v2439_v51, %v2447_v9  ;;  %v2460_v35 = vsel %vm9110_vm10, %v2447_v9, %v2459_v31  ;;  %vm9111_vm4 = vmmov %vm9109_vm7  ;;  %v9113_v36 = vsel %vm6924_vm6, 4294967295, %v9112_v36  ;;  %vm6942_vm7 = vcmp.eq.s32.totalorder %v2647_v14, 1  ;;  %v6962_v14 = vpop.permute.xlu0 %1705 }
 0x4d6   : > { %v2472_v3 = vsel %vm9111_vm4, %v2459_v31, %v2471_v0  ;;  %9114 = vst [vmem:[#allocation26_spill] sm:$0xff] %v9113_v36  ;;  %v2511_v46 = vsel %vm6756_vm13, %v6627_v58, %v2448_v12  ;;  %v2517_v62 = vsel %vm6756_vm13, %v6644_v49, %v2460_v35  ;;  %vm9115_vm3 = vmmov %vm9111_vm4  ;;  %v2506_v31 = vsel %vm6866_vm9, %v6525_v34, %v2440_v6 }
 0x4d7   : > { %v2523_v5 = vsel %vm6756_vm13, %v6853_v43, %v2472_v3  ;;  %v2572_v51 = vrot.slane %v2511_v46, 7  ;;  %v2587_v25 = vrot.slane %v2517_v62, 7  ;;  %v2450_v47 = vsel %vm9115_vm3, %v2440_v6, %v6915_v18  ;;  %vm9121_vm4 = vmmov %vm9115_vm3 }
 0x4d8   : > { %v2599_v9 = vrot.slane %v2523_v5, 7  ;;  %v9116_v0 = vmov 0  ;;  %vm9120_vm10 = vcmask 1044480   ;;  %v1831_v35 = vsel %vm6476_vm2, %v6898_v28, 0.0  ;;  %vm9122_vm13 = vmmov %vm9115_vm3 }
 0x4d9   : > { %v9117_v0 = vsel %vm6942_vm7, 4294967295, %v9116_v0  ;;  %v6951_v12 = vsel %vm9120_vm10, %v9119_v7, %v8715_v59  ;;  %v2573_v3 = vsel %vm9121_vm4, %v2571_v40, %v2572_v51  ;;  %v2588_v46 = vsel %vm9115_vm3, %v2572_v51, %v2587_v25  ;;  %vm9127_vm4 = vmmov %vm9115_vm3 }
 0x4da   : > { %9118 = vst [vmem:[#allocation27_spill] sm:$0xff] %v9117_v0  ;;  %v2600_v34 = vsel %vm9122_vm13, %v2587_v25, %v2599_v9  ;;  %v1863_v6 = vsel %vm6483_vm11, %v6951_v12, %v1831_v35  ;;  %v2627_v26 = vsel %vm6924_vm6, %v6627_v58, %v2573_v3  ;;  %v2633_v62 = vsel %vm6924_vm6, %v6644_v49, %v2588_v46 }
 0x4db   : > { %v2639_v40 = vsel %vm6924_vm6, %v6853_v43, %v2600_v34  ;;  %v2512_v5 = vsel %vm6866_vm9, %v6639_v21, %v2450_v47  ;;  %vm6976_vm13 = vcmp.eq.s32.totalorder %v2745_v57, 1  ;;  %v9123_v51 = vmov 0 }
 0x4dc   : > { %v9124_v51 = vsel %vm6976_vm13, 4294967295, %v9123_v51  ;;  %v2677_v25 = vrot.slane %v2627_v26, 7  ;;  %v2685_v9 = vrot.slane %v2633_v62, 7  ;;  %v2697_v7 = vrot.slane %v2639_v40, 7 }
 0x4dd   : > { %9125 = vst [vmem:[#allocation28_spill] sm:$0xff] %v9124_v51  ;;  %v2574_v35 = vrot.slane %v2506_v31, 7  ;;  %v2532_v3 = vperm.slane %v9018_v33, 3  ;;  %v1923_v59 = vrot.slane %v1863_v6, 7  ;;  %vm9126_vm10 = vcmask 457728  }
 0x4de   : > { %v6984_v46 = vsel %vm9126_vm10, %v6591_v55, %v6962_v14  ;;  %v2686_v34 = vsel %vm9127_vm4, %v2677_v25, %v2685_v9  ;;  %v2698_v47 = vsel %vm9115_vm3, %v2685_v9, %v2697_v7  ;;  %v2725_v57 = vsel %vm6942_vm7, %v6627_v58, %v2677_v25  ;;  %vm9129_vm10 = vmmov %vm9115_vm3  ;;  %v7004_v25 = vpop.permute.xlu2 %3200 }
 0x4df   : > { %v6991_v26 = vrot.slane %v2512_v5, 7  ;;  %v2731_v31 = vsel %vm6942_vm7, %v6644_v49, %v2686_v34  ;;  %v2737_v6 = vsel %vm6942_vm7, %v6853_v43, %v2698_v47  ;;  %v2775_v55 = vrot.slane %v2725_v57, 7  ;;  %vm9133_vm7 = vmmov %vm9115_vm3 }
 0x4e0   : > { %v1809_v62 = vperm.slane %v8954_v41, 5  ;;  %v2783_v40 = vrot.slane %v2731_v31, 7  ;;  %v2795_v36 = vrot.slane %v2737_v6, 7  ;;  %v2648_v9 = vperm.slane %v9022_v63, 3 }
 0x4e1   : > { %v9128_v7 = vrot.slane %v6681_v10, 7  ;;  %v2823_v34 = vsel %vm6976_vm13, %v6627_v58, %v2775_v55  ;;  %vm7009_vm4 = vcmp.eq.s32.totalorder %v2532_v3, 1  ;;  %v9130_v0 = vmov 0  ;;  %v7022_v58 = vpop.permute.xlu1 %3204 }
 0x4e2   : > { %v9131_v0 = vsel %vm7009_vm4, 4294967295, %v9130_v0  ;;  %v8729_v57 = vrot.slane %v6984_v46, 3  ;;  %v2784_v10 = vsel %vm9115_vm3, %v2775_v55, %v2783_v40  ;;  %v8730_v6 = vrot.slane %v6889_v44, 3 }
 0x4e3   : > { %v1924_v5 = vsel %vm9129_vm10, %v9128_v7, %v1923_v59  ;;  %9132 = vst [vmem:[#allocation29_spill] sm:$0xff] %v9131_v0  ;;  %v2796_v59 = vsel %vm9133_vm7, %v2783_v40, %v2795_v36  ;;  %vm9134_vm10 = vmmov %vm9115_vm3  ;;  %v2829_v3 = vsel %vm6976_vm13, %v6644_v49, %v2784_v10  ;;  %vm9135_vm7 = vcmask 752640  }
 0x4e4   : > { %v1962_v47 = vsel %vm6540_vm5, %v6951_v12, %v1924_v5  ;;  %v2576_v31 = vsel %vm9134_vm10, %v2574_v35, %v6991_v26  ;;  %v2835_v7 = vsel %vm6976_vm13, %v6853_v43, %v2796_v59  ;;  %v3261_v36 = vsel %vm9135_vm7, %v5713_v30, %v7004_v25 }
 0x4e5   : > { %v2021_v55 = vrot.slane %v1962_v47, 7  ;;  %v2864_v35 = vrot.slane %v2823_v34, 2  ;;  %v2865_v40 = vrot.slane %v2829_v3, 2  ;;  %v2880_v5 = vrot.slane %v2835_v7, 2  ;;  %v7050_v34 = vpop.permute.xlu0 %3196 }
 0x4e6   : > { %vm9136_vm3 = vcmask 1044480   ;;  %v2628_v43 = vsel %vm7009_vm4, %v6639_v21, %v2576_v31  ;;  %v7048_v30 = vsel %vm9135_vm7, %v5937_v50, %v7022_v58  ;;  %vm9138_vm13 = vcmask 1045504  }
 0x4e7   : > { %v7038_v49 = vsel %vm9136_vm3, %v8729_v57, %v8730_v6  ;;  %v2022_v47 = vsel %vm9134_vm10, %v6767_v56, %v2021_v55  ;;  %v2866_v10 = vsel %vm9138_vm13, %v2864_v35, %v2865_v40  ;;  %vm9139_vm6 = vmmov %vm9138_vm13  ;;  %2921 = vst [vmem:[%s5749_s8 + $0x70] sm:$0x1f] %v2880_v5  ;;  %v8732_v3 = vrot.slane %v6876_v20, 3 }
 0x4e8   : > { %9137 = vst [vmem:[#allocation30_spill] sm:$0xff] %v7038_v49  ;;  %v2881_v59 = vsel %vm9139_vm6, %v2865_v40, %v2880_v5  ;;  %v2060_v31 = vsel %vm9079_vm14, %v6951_v12, %v2022_v47  ;;  %vm7060_vm3 = vcmp.eq.s32.totalorder %v1809_v62, 1  ;;  %v3280_v7 = vrot.slane %v3261_v36, 3  ;;  %vm9145_vm6 = vmmov %vm9135_vm7 }
 0x4e9   : > { %2908 = vst [vmem:[%s5749_s8 + $0x10] sm:$0xff] %v2866_v10  ;;  %v2119_v50 = vrot.slane %v2060_v31, 7  ;;  %v8731_v55 = vrot.slane %v7048_v30, 3  ;;  %vm7066_vm13 = vcmp.eq.s32.totalorder %v2648_v9, 1  ;;  %v9142_v35 = vmov 0 }
 0x4ea   : > { %2915 = vst [vmem:[%s5749_s8 + $0x40] sm:$0xff] %v2881_v59  ;;  %v9143_v35 = vsel %vm7066_vm13, 4294967295, %v9142_v35  ;;  %v7070_v40 = vrot.slane %v2628_v43, 7  ;;  %v2746_v5 = vperm.slane %v9023_v38, 3  ;;  %v3260_v62 = vsel %vm9145_vm6, %v5496_v11, %v7050_v34 }
 0x4eb   : > { %9144 = vst [vmem:[#allocation31_spill] sm:$0xff] %v9143_v35  ;;  %v2120_v47 = vsel %vm9134_vm10, %v6810_v61, %v2119_v50  ;;  %vm9146_vm7 = vcmask 1044480   ;;  %vm9147_vm14 = vnez %v8960_v16  ;;  %v3273_v43 = vrot.slane %v3260_v62, 3 }
 0x4ec   : > { %v7081_v10 = vsel %vm9146_vm7, %v3280_v7, %v8731_v55  ;;  %v3351_v9 = vsel %vm9147_vm14, %v7048_v30, 0.0  ;;  %v9148_v59 = vrot.slane %v6898_v28, 3  ;;  %vm9149_vm5 = vcmask 1041408   ;;  %vm9151_vm10 = vmmov %vm9146_vm7 }
 0x4ed   : > { %v2158_v11 = vsel %vm6601_vm8, %v6951_v12, %v2120_v47  ;;  %v3345_v61 = vsel %vm9147_vm14, %v3261_v36, 0.0  ;;  %vm9150_vm6 = vnez %v8958_v23  ;;  %v7100_v6 = vsel %vm9151_vm10, %v3273_v43, %v3280_v7 }
 0x4ee   : > { %v7089_v31 = vsel %vm9149_vm5, %v9148_v59, 0.0  ;;  %v3369_v50 = vsel %vm9150_vm6, %v7081_v10, %v3351_v9  ;;  %v2217_v57 = vrot.slane %v2158_v11, 7  ;;  %v7103_v28 = vsel %vm9146_vm7, 0.0, %v3273_v43 }
 0x4ef   : > { %v3339_v59 = vsel %vm9147_vm14, %v3260_v62, 0.0  ;;  %v2726_v47 = vsel %vm7066_vm13, %v6639_v21, %v7070_v40  ;;  %v3412_v36 = vrot.slane %v3369_v50, 7  ;;  %v3363_v7 = vsel %vm9150_vm6, %v7100_v6, %v3345_v61 }
 0x4f0   : > { %v3357_v9 = vsel %vm9150_vm6, %v7103_v28, %v3339_v59  ;;  %vm9152_vm5 = vcmask 1040384   ;;  %v2268_v16 = vsel %vm6729_vm12, %v7089_v31, %v2217_v57  ;;  %v3400_v11 = vrot.slane %v3363_v7, 7 }
 0x4f1   : > { %v2218_v43 = vsel %vm9152_vm5, %v6836_v60, %v2217_v57  ;;  %v3393_v62 = vrot.slane %v3357_v9, 7  ;;  %vm9153_vm14 = vcmask 1041408   ;;  %vm7127_vm10 = vcmp.eq.s32.totalorder %v2746_v5, 1  ;;  %vm9157_vm6 = vmmov %vm9152_vm5  ;;  %v9159_v9 = vld [vmem:[#allocation8_spill] sm:$0xff] }
 0x4f2   : > { %v7125_v50 = vsel %vm9153_vm14, %v8732_v3, 0.0  ;;  %v9154_v59 = vmov 0  ;;  %v2262_v23 = vsel %vm6729_vm12, %v6951_v12, %v2218_v43  ;;  %v2345_v60 = vrot.slane %v2268_v16, 6  ;;  %vm9158_vm7 = vmmov %vm9152_vm5 }
 0x4f3   : > { %v9155_v59 = vsel %vm7127_vm10, 4294967295, %v9154_v59  ;;  %v2333_v61 = vrot.slane %v2262_v23, 6  ;;  %v3401_v55 = vsel %vm9157_vm6, %v3393_v62, %v3400_v11  ;;  %v3413_v57 = vsel %vm9158_vm7, %v3400_v11, %v3412_v36  ;;  %vm9161_vm6 = vmmov %vm9153_vm14 }
 0x4f4   : > { %9156 = vst [vmem:[#allocation32_spill] sm:$0xff] %v9155_v59  ;;  %vm9160_vm5 = vnez %v9159_v9  ;;  %v7139_v3 = vrot.slane %v2726_v47, 7  ;;  %vm9231_vm8 = vcmask 1044480  }
 0x4f5   : > { %v3441_v7 = vsel %vm9160_vm5, %v7103_v28, %v3393_v62  ;;  %v3447_v5 = vsel %vm9160_vm5, %v7100_v6, %v3401_v55  ;;  %v3453_v43 = vsel %vm9160_vm5, %v7081_v10, %v3413_v57  ;;  %v2334_v23 = vsel %vm9153_vm14, %v6885_v39, %v2333_v61  ;;  %v9162_v57 = vld [vmem:[#allocation16_spill] sm:$0xff]  ;;  %vm9232_vm1 = vmmov %vm9231_vm8 }
 0x4f6   : > { %v3477_v16 = vrot.slane %v3441_v7, 7  ;;  %v2346_v36 = vsel %vm9161_vm6, %v2333_v61, %v2345_v60  ;;  %v3484_v11 = vrot.slane %v3447_v5, 7  ;;  %v3496_v51 = vrot.slane %v3453_v43, 7 }
 0x4f7   : > { %v2390_v55 = vsel %vm6845_vm15, %v6951_v12, %v2334_v23  ;;  %v2396_v62 = vsel %vm6845_vm15, %v7089_v31, %v2346_v36  ;;  %vm9163_vm7 = vnez %v9162_v57  ;;  %vm9164_vm5 = vcmask 1040384   ;;  %v9167_v57 = vld [vmem:[#allocation24_spill] sm:$0xff] }
 0x4f8   : > { %v3525_v39 = vsel %vm9163_vm7, %v7103_v28, %v3477_v16  ;;  %v2461_v9 = vrot.slane %v2390_v55, 7  ;;  %v2473_v60 = vrot.slane %v2396_v62, 7  ;;  %v3485_v61 = vsel %vm9164_vm5, %v3477_v16, %v3484_v11  ;;  %vm9165_vm14 = vmmov %vm9164_vm5 }
 0x4f9   : > { %v3497_v7 = vsel %vm9165_vm14, %v3484_v11, %v3496_v51  ;;  %v2824_v5 = vsel %vm7127_vm10, %v6639_v21, %v7139_v3  ;;  %v3531_v43 = vsel %vm9163_vm7, %v7100_v6, %v3485_v61  ;;  %v3561_v36 = vrot.slane %v3525_v39, 7  ;;  %vm9166_vm6 = vmmov %vm9164_vm5 }
 0x4fa   : > { %v3537_v23 = vsel %vm9163_vm7, %v7081_v10, %v3497_v7  ;;  %v2462_v55 = vsel %vm9166_vm6, %v6915_v18, %v2461_v9  ;;  %v2474_v16 = vsel %vm9164_vm5, %v2461_v9, %v2473_v60  ;;  %v3568_v51 = vrot.slane %v3531_v43, 7  ;;  %vm9169_vm14 = vmmov %vm9164_vm5 }
 0x4fb   : > { %v3580_v11 = vrot.slane %v3537_v23, 7  ;;  %v1808_v62 = vperm.slane %v8954_v41, 4  ;;  %v2518_v21 = vsel %vm6866_vm9, %v6951_v12, %v2462_v55  ;;  %v2524_v61 = vsel %vm6866_vm9, %v7089_v31, %v2474_v16  ;;  %vm9170_vm6 = vmmov %vm9164_vm5 }
 0x4fc   : > { %vm9168_vm7 = vnez %v9167_v57  ;;  %v2589_v7 = vrot.slane %v2518_v21, 7  ;;  %v2601_v18 = vrot.slane %v2524_v61, 7  ;;  %v3569_v9 = vsel %vm9169_vm14, %v3561_v36, %v3568_v51  ;;  %vm9171_vm9 = vmmov %vm9164_vm5  ;;  %v9174_v57 = vld [vmem:[#allocation25_spill] sm:$0xff] }
 0x4fd   : > { %v3609_v39 = vsel %vm9168_vm7, %v7103_v28, %v3561_v36  ;;  %v3581_v60 = vsel %vm9170_vm6, %v3568_v51, %v3580_v11  ;;  %v2867_v43 = vrot.slane %v2824_v5, 2  ;;  %v3615_v41 = vsel %vm9168_vm7, %v7100_v6, %v3569_v9  ;;  %vm9177_vm6 = vmmov %vm9164_vm5 }
 0x4fe   : > { %v3621_v23 = vsel %vm9168_vm7, %v7081_v10, %v3581_v60  ;;  %v3645_v55 = vrot.slane %v3609_v39, 7  ;;  %v2590_v16 = vsel %vm9164_vm5, %v6991_v26, %v2589_v7  ;;  %v2602_v21 = vsel %vm9171_vm9, %v2589_v7, %v2601_v18  ;;  %vm9176_vm9 = vmmov %vm9164_vm5 }
 0x4ff   : > { %v3652_v61 = vrot.slane %v3615_v41, 7  ;;  %v3664_v47 = vrot.slane %v3621_v23, 7  ;;  %v2634_v5 = vsel %vm7009_vm4, %v6951_v12, %v2590_v16  ;;  %v2640_v36 = vsel %vm7009_vm4, %v7089_v31, %v2602_v21 }
 0x500   : > { %v9172_v51 = vrot.slane %v7048_v30, 3  ;;  %vm9173_vm14 = vcmask 1041408   ;;  %vm9175_vm7 = vnez %v9174_v57  ;;  %v2687_v39 = vrot.slane %v2634_v5, 7 }
 0x501   : > { %v3699_v26 = vsel %vm9175_vm7, %v7103_v28, %v3645_v55  ;;  %v2699_v7 = vrot.slane %v2640_v36, 7  ;;  %v3653_v18 = vsel %vm9176_vm9, %v3645_v55, %v3652_v61  ;;  %v3665_v9 = vsel %vm9177_vm6, %v3652_v61, %v3664_v47  ;;  %vm9181_vm9 = vmmov %vm9177_vm6 }
 0x502   : > { %v7207_v11 = vsel %vm9173_vm14, %v9172_v51, 0.0  ;;  %vm7214_vm5 = vcmp.eq.s32.totalorder %v1808_v62, 1  ;;  %v9178_v60 = vmov 0  ;;  %v3705_v30 = vsel %vm9175_vm7, %v7100_v6, %v3653_v18  ;;  %vm9180_vm14 = vmmov %vm9177_vm6 }
 0x503   : > { %v9179_v60 = vsel %vm7214_vm5, 4294967295, %v9178_v60  ;;  %v3711_v41 = vsel %vm9175_vm7, %v7081_v10, %v3665_v9  ;;  %v3717_v23 = vsel %vm9175_vm7, %v7207_v11, %v3664_v47  ;;  %v3747_v16 = vrot.slane %v3699_v26, 6 }
 0x504   : > { %v2688_v55 = vsel %vm9180_vm14, %v7070_v40, %v2687_v39  ;;  %v2700_v62 = vsel %vm9181_vm9, %v2687_v39, %v2699_v7  ;;  %v3754_v21 = vrot.slane %v3705_v30, 6  ;;  %v3766_v61 = vrot.slane %v3711_v41, 6 }
 0x505   : > { %v2732_v5 = vsel %vm7066_vm13, %v6951_v12, %v2688_v55  ;;  %v2738_v36 = vsel %vm7066_vm13, %v7089_v31, %v2700_v62  ;;  %v3778_v51 = vrot.slane %v3717_v23, 6  ;;  %v3813_v47 = vsel %vm6423_vm0, %v7103_v28, %v3747_v16  ;;  %vm9186_vm13 = vmmov %vm9181_vm9  ;;  %v7251_v62 = vpop.permute.xlu2 %3206 }
 0x506   : > { %v2785_v26 = vrot.slane %v2732_v5, 7  ;;  %v2797_v18 = vrot.slane %v2738_v36, 7  ;;  %vm9183_vm7 = vcmask 1041408   ;;  %v3861_v41 = vrot.slane %v3813_v47, 7  ;;  %9187 = vst [vmem:[#allocation8_spill] sm:$0xff] %v7251_v62 }
 0x507   : > { %v3755_v40 = vsel %vm9183_vm7, %v3747_v16, %v3754_v21  ;;  %vm9184_vm6 = vmmov %vm9183_vm7  ;;  %vm9190_vm7 = vcmask 752640   ;;  %vm9229_vm15 = vcmask 1045504  }
 0x508   : > { %v3767_v39 = vsel %vm9184_vm6, %v3754_v21, %v3766_v61  ;;  %vm9185_vm14 = vmmov %vm9184_vm6  ;;  %v3819_v9 = vsel %vm6423_vm0, %v7100_v6, %v3755_v40  ;;  %v2786_v23 = vsel %vm9181_vm9, %v7139_v3, %v2785_v26  ;;  %v2798_v55 = vsel %vm9186_vm13, %v2785_v26, %v2797_v18 }
 0x509   : > { %v3779_v7 = vsel %vm9185_vm14, %v3766_v61, %v3778_v51  ;;  %v3825_v30 = vsel %vm6423_vm0, %v7081_v10, %v3767_v39  ;;  %v3868_v21 = vrot.slane %v3819_v9, 7  ;;  %v2830_v61 = vsel %vm7127_vm10, %v6951_v12, %v2786_v23  ;;  %vm9188_vm13 = vmmov %vm9181_vm9 }
 0x50a   : > { %v3831_v16 = vsel %vm6423_vm0, %v7207_v11, %v3779_v7  ;;  %v2836_v5 = vsel %vm7127_vm10, %v7089_v31, %v2798_v55  ;;  %v3880_v3 = vrot.slane %v3825_v30, 7  ;;  %v2868_v51 = vrot.slane %v2830_v61, 2  ;;  %vm9191_vm6 = vmmov %vm9181_vm9 }
 0x50b   : > { %v3892_v36 = vrot.slane %v3831_v16, 7  ;;  %v2882_v47 = vrot.slane %v2836_v5, 2  ;;  %v3869_v26 = vsel %vm9188_vm13, %v3861_v41, %v3868_v21  ;;  %vm9189_vm0 = vnez %v8997_v17  ;;  %vm9192_vm14 = vmmov %vm9191_vm6 }
 0x50c   : > { %v3927_v57 = vsel %vm9189_vm0, %v7103_v28, %v3861_v41  ;;  %v7269_v18 = vsel %vm9190_vm7, %v7022_v58, %v7251_v62  ;;  %v3881_v12 = vsel %vm9191_vm6, %v3868_v21, %v3880_v3  ;;  %v3933_v40 = vsel %vm9189_vm0, %v7100_v6, %v3869_v26  ;;  %vm9230_vm12 = vmmov %vm9229_vm15 }
 0x50d   : > { %v3893_v31 = vsel %vm9192_vm14, %v3880_v3, %v3892_v36  ;;  %vm9193_vm9 = vcmask 1045504   ;;  %2922 = vst [vmem:[%s5749_s8 + $0x78] sm:$0x1f] %v2882_v47  ;;  %v3939_v28 = vsel %vm9189_vm0, %v7081_v10, %v3881_v12  ;;  %v3977_v9 = vrot.slane %v3927_v57, 7  ;;  %v9201_v57 = vld [vmem:[#allocation9_spill] sm:$0xff] }
 0x50e   : > { %v2869_v39 = vsel %vm9193_vm9, %v2867_v43, %v2868_v51  ;;  %vm9194_vm13 = vmmov %vm9193_vm9  ;;  %v3945_v58 = vsel %vm9189_vm0, %v7207_v11, %v3893_v31  ;;  %v3978_v30 = vrot.slane %v3933_v40, 7  ;;  %v3994_v41 = vrot.slane %v3939_v28, 7 }
 0x50f   : > { %v2883_v7 = vsel %vm9194_vm13, %v2868_v51, %v2882_v47  ;;  %2909 = vst [vmem:[%s5749_s8 + $0x18] sm:$0xff] %v2869_v39  ;;  %v4006_v23 = vrot.slane %v3945_v58, 7  ;;  %v9195_v55 = vrot.slane %v6889_v44, 3  ;;  %vm9196_vm7 = vcmask 1041408   ;;  %vm9197_vm0 = vmmov %vm9191_vm6 }
 0x510   : > { %v1832_v16 = vsel %vm7214_vm5, %v6889_v44, 0.0  ;;  %2916 = vst [vmem:[%s5749_s8 + $0x48] sm:$0xff] %v2883_v7  ;;  %v1752_v21 = vrot.slane %v6962_v14, 3  ;;  %v8743_v61 = vrot.slane %v7269_v18, 3  ;;  %v3979_v5 = vsel %vm9197_vm0, %v3977_v9, %v3978_v30  ;;  %vm9198_vm6 = vmmov %vm9197_vm0 }
 0x511   : > { %v7289_v43 = vsel %vm9196_vm7, %v9195_v55, 0.0  ;;  %v3995_v3 = vsel %vm9198_vm6, %v3978_v30, %v3994_v41  ;;  %vm9199_vm14 = vmmov %vm9197_vm0  ;;  %vm9200_vm9 = vnez %v9034_v15  ;;  %v1840_v12 = vperm.slane %v9201_v57, 4  ;;  %v9204_v30 = vld [vmem:[#allocation10_spill] sm:$0xff] }
 0x512   : > { %v4007_v36 = vsel %vm9199_vm14, %v3994_v41, %v4006_v23  ;;  %v4035_v51 = vsel %vm9200_vm9, %v7100_v6, %v3979_v5  ;;  %v4041_v47 = vsel %vm9200_vm9, %v7081_v10, %v3995_v3  ;;  %v1841_v7 = vperm.slane %v9201_v57, 5  ;;  %v9205_v23 = vld [vmem:[#allocation22_spill] sm:$0xff]  ;;  %vm9207_vm6 = vmmov %vm9197_vm0 }
 0x513   : > { %v4047_v26 = vsel %vm9200_vm9, %v7207_v11, %v4007_v36  ;;  %v4071_v31 = vrot.slane %v4035_v51, 7  ;;  %v4078_v40 = vrot.slane %v4041_v47, 7  ;;  %v9202_v28 = vrot.slane %v6876_v20, 3 }
 0x514   : > { %v4090_v39 = vrot.slane %v4047_v26, 7  ;;  %vm9203_vm13 = vcmask 1044480   ;;  %v1827_v9 = vsel %vm7060_vm3, %v6962_v14, 0.0  ;;  %v1872_v41 = vperm.slane %v9204_v30, 4 }
 0x515   : > { %v7317_v58 = vsel %vm9203_vm13, %v1752_v21, %v9202_v28  ;;  %v1873_v15 = vperm.slane %v9204_v30, 5  ;;  %vm9206_vm7 = vnez %v9205_v23  ;;  %v4079_v5 = vsel %vm9197_vm0, %v4071_v31, %v4078_v40 }
 0x516   : > { %v4091_v3 = vsel %vm9207_vm6, %v4078_v40, %v4090_v39  ;;  %vm9208_vm14 = vnez %v9049_v45  ;;  %vm9209_vm9 = vcmask 1041408   ;;  %vm7343_vm13 = vcmp.eq.s32.totalorder %v1840_v12, 1  ;;  %v9219_v12 = vld [vmem:[#allocation11_spill] sm:$0xff] }
 0x517   : > { %v4119_v36 = vsel %vm9208_vm14, %v7100_v6, %v4071_v31  ;;  %v7335_v14 = vsel %vm9209_vm9, %v8743_v61, 0.0  ;;  %v4125_v51 = vsel %vm9208_vm14, %v7081_v10, %v4079_v5  ;;  %v4131_v47 = vsel %vm9208_vm14, %v7207_v11, %v4091_v3 }
 0x518   : > { %v4155_v26 = vrot.slane %v4119_v36, 7  ;;  %v4162_v57 = vrot.slane %v4125_v51, 7  ;;  %v4174_v40 = vrot.slane %v4131_v47, 7  ;;  %v9210_v39 = vmov 0  ;;  %v9222_v51 = vld [vmem:[#allocation12_spill] sm:$0xff] }
 0x519   : > { %v9211_v39 = vsel %vm7343_vm13, 4294967295, %v9210_v39  ;;  %vm7347_vm0 = vcmp.eq.s32.totalorder %v1841_v7, 1  ;;  %v9212_v31 = vmov 0  ;;  %vm9214_vm6 = vnez %v9057_v24 }
 0x51a   : > { %v9213_v31 = vsel %vm7347_vm0, 4294967295, %v9212_v31  ;;  %v4203_v28 = vsel %vm9214_vm6, %v7100_v6, %v4155_v26  ;;  %vm7354_vm9 = vcmp.eq.s32.totalorder %v1872_v41, 1  ;;  %v9215_v30 = vmov 0  ;;  %v1702_v41 = vpop.permute.xlu1 %1701 }
 0x51b   : > { %v9216_v30 = vsel %vm7354_vm9, 4294967295, %v9215_v30  ;;  %vm7358_vm14 = vcmp.eq.s32.totalorder %v1873_v15, 1  ;;  %v9217_v45 = vmov 0  ;;  %v1971_v5 = vperm.slane %v9219_v12, 4 }
 0x51c   : > { %v9218_v45 = vsel %vm7358_vm14, 4294967295, %v9217_v45  ;;  %v1972_v3 = vperm.slane %v9219_v12, 5  ;;  %vm9220_vm10 = vcmask 1040384   ;;  %v2069_v47 = vperm.slane %v9222_v51, 4 }
 0x51d   : > { %v4163_v7 = vsel %vm9220_vm10, %v4155_v26, %v4162_v57  ;;  %vm9221_vm4 = vmmov %vm9220_vm10  ;;  %v2070_v6 = vperm.slane %v9222_v51, 5  ;;  %v2167_v12 = vperm.slane %v8980_v4, 4  ;;  %v2168_v26 = vperm.slane %v8980_v4, 5 }
 0x51e   : > { %v4175_v36 = vsel %vm9221_vm4, %v4162_v57, %v4174_v40  ;;  %v4209_v15 = vsel %vm9214_vm6, %v7081_v10, %v4163_v7  ;;  %v4241_v57 = vrot.slane %v4203_v28, 2  ;;  %vm7377_vm4 = vcmp.eq.s32.totalorder %v1971_v5, 1 }
 0x51f   : > { %v4215_v55 = vsel %vm9214_vm6, %v7207_v11, %v4175_v36  ;;  %v4242_v40 = vrot.slane %v4209_v15, 2  ;;  %v9223_v17 = vmov 0  ;;  %vm7381_vm10 = vcmp.eq.s32.totalorder %v1972_v3, 1  ;;  %v9227_v11 = vld [vmem:[#allocation14_spill] sm:$0xff] }
 0x520   : > { %v4258_v61 = vrot.slane %v4215_v55, 2  ;;  %v9224_v17 = vsel %vm7377_vm4, 4294967295, %v9223_v17  ;;  %v9225_v10 = vmov 0  ;;  %vm9228_vm6 = vcmask 457728  }
 0x521   : > { %v9226_v10 = vsel %vm7381_vm10, 4294967295, %v9225_v10  ;;  %v1712_v4 = vsel %vm9228_vm6, %v9227_v11, %v1702_v41  ;;  %v1741_v7 = vrot.slane %v1702_v41, 3  ;;  %v1821_v55 = vsel %vm7060_vm3, %v1702_v41, 0.0 }
 0x522   : > { %v4243_v28 = vsel %vm9229_vm15, %v4241_v57, %v4242_v40  ;;  %v4259_v5 = vsel %vm9230_vm12, %v4242_v40, %v4258_v61  ;;  %4448 = vst [vmem:[%s5749_s8 + $0xf8] sm:$0x1f] %v4258_v61  ;;  %v1740_v36 = vrot.slane %v1712_v4, 3  ;;  %v1820_v3 = vsel %vm7214_vm5, %v1712_v4, 0.0 }
 0x523   : > { %4436 = vst [vmem:[%s5749_s8 + $0x98] sm:$0xff] %v4243_v28  ;;  %v7397_v15 = vsel %vm9231_vm8, %v1741_v7, %v1752_v21  ;;  %v7400_v24 = vsel %vm9232_vm1, 0.0, %v1741_v7  ;;  %v1864_v41 = vsel %vm7343_vm13, %v7038_v49, %v1832_v16  ;;  %v9233_v61 = vsel %vm7060_vm3, %v6876_v20, 0.0  ;;  %vm9235_vm8 = vmmov %vm9232_vm1 }
 0x524   : > { %v1865_v21 = vsel %vm7347_vm0, %v7317_v58, %v9233_v61  ;;  %4442 = vst [vmem:[%s5749_s8 + $0xc8] sm:$0xff] %v4259_v5  ;;  %v9234_v57 = vrot.slane %v6984_v46, 3  ;;  %v7423_v44 = vsel %vm9232_vm1, 0.0, %v1740_v36  ;;  %v1853_v16 = vsel %vm7347_vm0, %v7400_v24, %v1821_v55 }
 0x525   : > { %v1859_v20 = vsel %vm7347_vm0, %v7397_v15, %v1827_v9  ;;  %vm7431_vm12 = vcmp.eq.s32.totalorder %v2069_v47, 1  ;;  %v9236_v11 = vmov 0  ;;  %vm7435_vm15 = vcmp.eq.s32.totalorder %v2070_v6, 1 }
 0x526   : > { %v7420_v40 = vsel %vm9235_vm8, %v1740_v36, %v9234_v57  ;;  %v9237_v11 = vsel %vm7431_vm12, 4294967295, %v9236_v11  ;;  %v9239_v4 = vmov 0  ;;  %v1852_v7 = vsel %vm7343_vm13, %v7423_v44, %v1820_v3 }
 0x527   : > { %9238 = vst [vmem:[#allocation16_spill] sm:$0xff] %v9237_v11  ;;  %v9240_v4 = vsel %vm7435_vm15, 4294967295, %v9239_v4  ;;  %v9242_v55 = vsel %vm7214_vm5, %v6984_v46, 0.0  ;;  %v1904_v47 = vrot.slane %v1853_v16, 7  ;;  %v1915_v28 = vrot.slane %v1859_v20, 7 }
 0x528   : > { %9241 = vst [vmem:[#allocation24_spill] sm:$0xff] %v9240_v4  ;;  %v1858_v9 = vsel %vm7343_vm13, %v7420_v40, %v9242_v55  ;;  %v1903_v5 = vrot.slane %v1852_v7, 7  ;;  %v1925_v6 = vrot.slane %v1864_v41, 7  ;;  %v1927_v61 = vrot.slane %v1865_v21, 7 }
 0x529   : > { %v1913_v36 = vrot.slane %v1858_v9, 7  ;;  %v2406_v51 = vperm.slane %v8989_v54, 5  ;;  %vm9243_vm6 = vcmask 1040384   ;;  %v1952_v46 = vsel %vm7358_vm14, %v7400_v24, %v1904_v47 }
 0x52a   : > { %v1916_v3 = vsel %vm9243_vm6, %v1904_v47, %v1915_v28  ;;  %vm9244_vm8 = vmmov %vm9243_vm6  ;;  %v1951_v41 = vsel %vm7354_vm9, %v7423_v44, %v1903_v5  ;;  %v9247_v47 = vmov 0 }
 0x52b   : > { %v1914_v59 = vsel %vm9244_vm8, %v1903_v5, %v1913_v36  ;;  %vm9245_vm1 = vmmov %vm9243_vm6  ;;  %v1958_v20 = vsel %vm7358_vm14, %v7397_v15, %v1916_v3  ;;  %vm7477_vm6 = vcmp.eq.s32.totalorder %v2168_v26, 1  ;;  %v2002_v5 = vrot.slane %v1952_v46, 7 }
 0x52c   : > { %v1926_v55 = vsel %vm9245_vm1, %v1913_v36, %v1925_v6  ;;  %vm9246_vm0 = vmmov %vm9245_vm1  ;;  %v1957_v21 = vsel %vm7354_vm9, %v7420_v40, %v1914_v59  ;;  %v2001_v59 = vrot.slane %v1951_v41, 7  ;;  %v2013_v6 = vrot.slane %v1958_v20, 7 }
 0x52d   : > { %v1928_v16 = vsel %vm9246_vm0, %v1915_v28, %v1927_v61  ;;  %v1963_v7 = vsel %vm7354_vm9, %v7038_v49, %v1926_v55  ;;  %vm7473_vm0 = vcmp.eq.s32.totalorder %v2167_v12, 1  ;;  %v9250_v28 = vmov 0  ;;  %vm9252_vm8 = vmmov %vm9245_vm1 }
 0x52e   : > { %v1964_v9 = vsel %vm7358_vm14, %v7317_v58, %v1928_v16  ;;  %v9248_v47 = vsel %vm7473_vm0, 4294967295, %v9247_v47  ;;  %v9251_v28 = vsel %vm7477_vm6, 4294967295, %v9250_v28  ;;  %v2011_v36 = vrot.slane %v1957_v21, 7  ;;  %vm9253_vm14 = vmmov %vm9245_vm1 }
 0x52f   : > { %9249 = vst [vmem:[#allocation25_spill] sm:$0xff] %v9248_v47  ;;  %v2023_v55 = vrot.slane %v1963_v7, 7  ;;  %v2025_v57 = vrot.slane %v1964_v9, 7  ;;  %v2014_v12 = vsel %vm9245_vm1, %v2002_v5, %v2013_v6  ;;  %v2049_v26 = vsel %vm7377_vm4, %v7423_v44, %v2001_v59  ;;  %vm9254_vm9 = vmmov %vm9245_vm1  ;;  %v7499_v9 = vpop.permute.xlu0 %3202 }
 0x530   : > { %v2012_v16 = vsel %vm9252_vm8, %v2001_v59, %v2011_v36  ;;  %v2050_v46 = vsel %vm7381_vm10, %v7400_v24, %v2002_v5  ;;  %v2056_v7 = vsel %vm7381_vm10, %v7397_v15, %v2014_v12  ;;  %v9260_v12 = vmov 0  ;;  %vm9265_vm13 = vmmov %vm9245_vm1 }
 0x531   : > { %v2024_v41 = vsel %vm9253_vm14, %v2011_v36, %v2023_v55  ;;  %v2026_v21 = vsel %vm9254_vm9, %v2013_v6, %v2025_v57  ;;  %v2055_v20 = vsel %vm7377_vm4, %v7420_v40, %v2012_v16  ;;  %v2099_v36 = vrot.slane %v2049_v26, 7 }
 0x532   : > { %v2061_v59 = vsel %vm7377_vm4, %v7038_v49, %v2024_v41  ;;  %v2062_v5 = vsel %vm7381_vm10, %v7317_v58, %v2026_v21  ;;  %v2100_v57 = vrot.slane %v2050_v46, 7  ;;  %v9255_v6 = vperm.slane %v8988_v53, 4  ;;  %vm9263_vm10 = vmmov %vm9245_vm1 }
 0x533   : > { %v9256_v55 = vmov 0  ;;  %v9259_v16 = vperm.slane %v8988_v53, 5  ;;  %v2109_v3 = vrot.slane %v2055_v20, 7  ;;  %v2111_v41 = vrot.slane %v2056_v7, 7  ;;  %vm9264_vm4 = vmmov %vm9245_vm1 }
 0x534   : > { %vm7509_vm9 = vcmp.eq.s32.totalorder %v9255_v6, 1  ;;  %v2121_v61 = vrot.slane %v2061_v59, 7  ;;  %v2123_v62 = vrot.slane %v2062_v5, 7  ;;  %v2147_v26 = vsel %vm7431_vm12, %v7423_v44, %v2099_v36 }
 0x535   : > { %v9257_v55 = vsel %vm7509_vm9, 4294967295, %v9256_v55  ;;  %vm7515_vm14 = vcmp.eq.s32.totalorder %v9259_v16, 1  ;;  %v2148_v46 = vsel %vm7435_vm15, %v7400_v24, %v2100_v57  ;;  %vm9262_vm8 = vcmask 752640  }
 0x536   : > { %9258 = vst [vmem:[#allocation20_spill] sm:$0xff] %v9257_v55  ;;  %v9261_v12 = vsel %vm7515_vm14, 4294967295, %v9260_v12  ;;  %v7529_v53 = vsel %vm9262_vm8, %v7004_v25, %v7499_v9  ;;  %v2110_v20 = vsel %vm9245_vm1, %v2099_v36, %v2109_v3  ;;  %v2112_v7 = vsel %vm9263_vm10, %v2100_v57, %v2111_v41  ;;  %vm9269_vm10 = vmmov %vm9245_vm1 }
 0x537   : > { %v2122_v59 = vsel %vm9264_vm4, %v2109_v3, %v2121_v61  ;;  %v2124_v5 = vsel %vm9265_vm13, %v2111_v41, %v2123_v62  ;;  %v2153_v6 = vsel %vm7431_vm12, %v7420_v40, %v2110_v20  ;;  %v2154_v16 = vsel %vm7435_vm15, %v7397_v15, %v2112_v7  ;;  %vm9268_vm4 = vmmov %vm9245_vm1 }
 0x538   : > { %v2159_v25 = vsel %vm7431_vm12, %v7038_v49, %v2122_v59  ;;  %v2160_v36 = vsel %vm7435_vm15, %v7317_v58, %v2124_v5  ;;  %v2197_v57 = vrot.slane %v2147_v26, 7  ;;  %v2198_v61 = vrot.slane %v2148_v46, 7  ;;  %vm9270_vm8 = vmmov %vm9245_vm1 }
 0x539   : > { %v2207_v3 = vrot.slane %v2153_v6, 7  ;;  %v2209_v62 = vrot.slane %v2154_v16, 7  ;;  %vm7547_vm13 = vcmp.eq.s32.totalorder %v2406_v51, 1  ;;  %v2219_v20 = vrot.slane %v2159_v25, 7 }
 0x53a   : > { %v2221_v21 = vrot.slane %v2160_v36, 7  ;;  %v2251_v5 = vsel %vm7473_vm0, %v7423_v44, %v2197_v57  ;;  %v2252_v26 = vsel %vm7477_vm6, %v7400_v24, %v2198_v61 }
 0x53b   : > { %v2208_v35 = vsel %vm9268_vm4, %v2197_v57, %v2207_v3  ;;  %v2210_v59 = vsel %vm9269_vm10, %v2198_v61, %v2209_v62  ;;  %v2220_v51 = vsel %vm9270_vm8, %v2207_v3, %v2219_v20  ;;  %v2269_v57 = vsel %vm7473_vm0, %v7289_v43, %v2219_v20  ;;  %v9518_v3 = vld [vmem:[#allocation29_spill] sm:$0xff] }
 0x53c   : > { %v2222_v46 = vsel %vm9245_vm1, %v2209_v62, %v2221_v21  ;;  %v2257_v6 = vsel %vm7473_vm0, %v7420_v40, %v2208_v35  ;;  %v2258_v16 = vsel %vm7477_vm6, %v7397_v15, %v2210_v59  ;;  %v2263_v25 = vsel %vm7473_vm0, %v7038_v49, %v2220_v51 }
 0x53d   : > { %v2264_v36 = vsel %vm7477_vm6, %v7317_v58, %v2222_v46  ;;  %v2270_v35 = vsel %vm7477_vm6, %v7125_v50, %v2221_v21  ;;  %v9271_v61 = vperm.slane %v8989_v54, 4  ;;  %v2313_v62 = vrot.slane %v2251_v5, 6 }
 0x53e   : > { %v2314_v59 = vrot.slane %v2252_v26, 6  ;;  %v2323_v51 = vrot.slane %v2257_v6, 6  ;;  %v2325_v7 = vrot.slane %v2258_v16, 6  ;;  %v2335_v0 = vrot.slane %v2263_v25, 6 }
 0x53f   : > { %vm7582_vm4 = vcmp.eq.s32.totalorder %v9271_v61, 1  ;;  %v2337_v46 = vrot.slane %v2264_v36, 6  ;;  %v2347_v4 = vrot.slane %v2269_v57, 6  ;;  %v2349_v11 = vrot.slane %v2270_v35, 6 }
 0x540   : > { %vm9274_vm10 = vcmask 1041408   ;;  %v7591_v54 = vsel %vm7509_vm9, %v7423_v44, %v2313_v62  ;;  %v2380_v21 = vsel %vm7515_vm14, %v7400_v24, %v2314_v59  ;;  %v9276_v5 = vperm.slane %v9018_v33, 5 }
 0x541   : > { %v2324_v20 = vsel %vm9274_vm10, %v2313_v62, %v2323_v51  ;;  %vm9275_vm8 = vmmov %vm9274_vm10  ;;  %v9277_v26 = vmov 0  ;;  %v7618_v62 = vpop.permute.xlu1 %3198 }
 0x542   : > { %v2326_v47 = vsel %vm9275_vm8, %v2314_v59, %v2325_v7  ;;  %vm7598_vm1 = vcmp.eq.s32.totalorder %v9276_v5, 1  ;;  %vm9280_vm0 = vmmov %vm9275_vm8  ;;  %v2385_v57 = vsel %vm7509_vm9, %v7420_v40, %v2324_v20  ;;  %v9284_v59 = vperm.slane %v9022_v63, 5 }
 0x543   : > { %v9278_v26 = vsel %vm7598_vm1, 4294967295, %v9277_v26  ;;  %v2336_v6 = vsel %vm9280_vm0, %v2323_v51, %v2335_v0  ;;  %vm9281_vm10 = vmmov %vm9280_vm0  ;;  %v2386_v35 = vsel %vm7515_vm14, %v7397_v15, %v2326_v47  ;;  %v2442_v47 = vrot.slane %v2380_v21, 7 }
 0x544   : > { %9279 = vst [vmem:[#allocation9_spill] sm:$0xff] %v9278_v26  ;;  %v2338_v16 = vsel %vm9281_vm10, %v2325_v7, %v2337_v46  ;;  %vm9282_vm8 = vmmov %vm9280_vm0  ;;  %v2391_v61 = vsel %vm7509_vm9, %v7038_v49, %v2336_v6  ;;  %v9285_v51 = vmov 0  ;;  %v2453_v20 = vrot.slane %v2386_v35, 7 }
 0x545   : > { %v2348_v25 = vsel %vm9282_vm8, %v2335_v0, %v2347_v4  ;;  %vm9283_vm6 = vmmov %vm9280_vm0  ;;  %v2392_v7 = vsel %vm7515_vm14, %v7317_v58, %v2338_v16  ;;  %v8791_v4 = vrot.slane %v7591_v54, 7  ;;  %vm7629_vm0 = vcmp.eq.s32.totalorder %v9284_v59, 1 }
 0x546   : > { %v2350_v36 = vsel %vm9283_vm6, %v2337_v46, %v2349_v11  ;;  %v2397_v0 = vsel %vm7509_vm9, %v7289_v43, %v2348_v25  ;;  %v9286_v51 = vsel %vm7629_vm0, 4294967295, %v9285_v51  ;;  %v2451_v46 = vrot.slane %v2385_v57, 7 }
 0x547   : > { %v2398_v11 = vsel %vm7515_vm14, %v7125_v50, %v2350_v36  ;;  %v2463_v5 = vrot.slane %v2391_v61, 7  ;;  %v2465_v6 = vrot.slane %v2392_v7, 7  ;;  %v2475_v16 = vrot.slane %v2397_v0, 7 }
 0x548   : > { %v2477_v55 = vrot.slane %v2398_v11, 7  ;;  %v2508_v25 = vsel %vm7547_vm13, %v7400_v24, %v2442_v47  ;;  %vm9287_vm6 = vcmask 752640   ;;  %vm9288_vm10 = vcmask 1040384  }
 0x549   : > { %v3208_v21 = vsel %vm9287_vm6, %v7050_v34, %v7618_v62  ;;  %v2452_v36 = vsel %vm9288_vm10, %v8791_v4, %v2451_v46  ;;  %vm9289_vm8 = vmmov %vm9288_vm10  ;;  %v9292_v61 = vperm.slane %v9023_v38, 5  ;;  %v9293_v7 = vmov 0 }
 0x54a   : > { %v2454_v59 = vsel %vm9289_vm8, %v2442_v47, %v2453_v20  ;;  %vm9290_vm9 = vmmov %vm9289_vm8  ;;  %v2513_v0 = vsel %vm7582_vm4, %v7420_v40, %v2452_v36  ;;  %v2580_v36 = vrot.slane %v2508_v25, 7  ;;  %v3340_v25 = vsel %vm9206_vm7, %v3208_v21, 0.0 }
 0x54b   : > { %v2464_v57 = vsel %vm9290_vm9, %v2451_v46, %v2463_v5  ;;  %vm9291_vm14 = vmmov %vm9289_vm8  ;;  %vm7647_vm15 = vcmp.eq.s32.totalorder %v9292_v61, 1  ;;  %v2514_v11 = vsel %vm7547_vm13, %v7397_v15, %v2454_v59 }
 0x54c   : > { %v2466_v35 = vsel %vm9291_vm14, %v2453_v20, %v2465_v6  ;;  %v9294_v7 = vsel %vm7647_vm15, 4294967295, %v9293_v7  ;;  %vm9295_vm12 = vmmov %vm9289_vm8  ;;  %v2519_v47 = vsel %vm7582_vm4, %v7038_v49, %v2464_v57  ;;  %v9297_v20 = vrot.slane %v7269_v18, 3 }
 0x54d   : > { %v7652_v24 = vsel %vm9295_vm12, %v2463_v5, %v2475_v16  ;;  %vm9296_vm6 = vmmov %vm9289_vm8  ;;  %v2520_v46 = vsel %vm7547_vm13, %v7317_v58, %v2466_v35  ;;  %v9298_v5 = vrot.slane %v7529_v53, 3  ;;  %vm9299_vm12 = vcmask 1044480  }
 0x54e   : > { %v2478_v34 = vsel %vm9296_vm6, %v2465_v6, %v2477_v55  ;;  %v7677_v16 = vrot.slane %v2513_v0, 7  ;;  %v2581_v59 = vrot.slane %v2514_v11, 7  ;;  %v7679_v57 = vrot.slane %v2519_v47, 7  ;;  %vm9300_vm9 = vmmov %vm9296_vm6  ;;  %v9303_v11 = vld [vmem:[#allocation23_spill] sm:$0xff] }
 0x54f   : > { %v2526_v55 = vsel %vm7547_vm13, %v7125_v50, %v2478_v34  ;;  %v7675_v6 = vsel %vm9299_vm12, %v9298_v5, %v9297_v20  ;;  %v2593_v61 = vrot.slane %v2520_v46, 7  ;;  %v3346_v35 = vsel %vm9206_vm7, %v7529_v53, 0.0  ;;  %vm9301_vm14 = vmmov %vm9296_vm6 }
 0x550   : > { %v2605_v4 = vrot.slane %v2526_v55, 7  ;;  %v3274_v34 = vrot.slane %v3208_v21, 3  ;;  %v2582_v49 = vsel %vm9300_vm9, %v2580_v36, %v2581_v59  ;;  %v7688_v20 = vsel %vm9301_vm14, %v7677_v16, %v7679_v57  ;;  %vm9305_vm8 = vmmov %vm9296_vm6 }
 0x551   : > { %v9302_v0 = vsel %vm9206_vm7, %v7269_v18, 0.0  ;;  %vm9304_vm10 = vnez %v9303_v11  ;;  %v2594_v46 = vsel %vm9305_vm8, %v2581_v59, %v2593_v61  ;;  %v2630_v5 = vsel %vm7598_vm1, %v7397_v15, %v2582_v49  ;;  %vm9307_vm7 = vmmov %vm9299_vm12 }
 0x552   : > { %v3370_v47 = vsel %vm9304_vm10, %v7675_v6, %v9302_v0  ;;  %v2606_v55 = vsel %vm9296_vm6, %v2593_v61, %v2605_v4  ;;  %v9306_v36 = vrot.slane %v7529_v53, 3  ;;  %vm8799_vm9 = vcmask 159744   ;;  %v7715_v4 = vpop.permute.xlu2 %3240  ;;  %vm9308_vm8 = vmmov %vm9296_vm6 }
 0x553   : > { %v2636_v18 = vsel %vm7598_vm1, %v7317_v58, %v2594_v46  ;;  %v2642_v23 = vsel %vm7598_vm1, %v7125_v50, %v2606_v55  ;;  %v2680_v59 = vrot.slane %v2630_v5, 7  ;;  %v7718_v61 = vsel %vm9307_vm7, 0.0, %v3274_v34  ;;  %vm9311_vm7 = vmmov %vm9296_vm6 }
 0x554   : > { %v7707_v21 = vsel %vm9299_vm12, %v3274_v34, %v9306_v36  ;;  %vm8796_vm14 = vcmask 162816   ;;  %v2691_v49 = vrot.slane %v2636_v18, 7  ;;  %v2703_v53 = vrot.slane %v2642_v23, 7 }
 0x555   : > { %v3358_v0 = vsel %vm9304_vm10, %v7718_v61, %v3340_v25  ;;  %v3364_v46 = vsel %vm9304_vm10, %v7707_v21, %v3346_v35  ;;  %v2728_v55 = vsel %vm7629_vm0, %v7397_v15, %v2680_v59  ;;  %v3414_v26 = vrot.slane %v3370_v47, 7  ;;  %vm9310_vm10 = vmmov %vm9296_vm6 }
 0x556   : > { %v3394_v5 = vrot.slane %v3358_v0, 7  ;;  %v3402_v36 = vrot.slane %v3364_v46, 7  ;;  %v2692_v34 = vsel %vm9308_vm8, %v2680_v59, %v2691_v49  ;;  %v2704_v18 = vsel %vm9296_vm6, %v2691_v49, %v2703_v53 }
 0x557   : > { %v2778_v23 = vrot.slane %v2728_v55, 7  ;;  %vm9309_vm12 = vcmask 457728   ;;  %v2734_v35 = vsel %vm7629_vm0, %v7317_v58, %v2692_v34  ;;  %v2740_v11 = vsel %vm7629_vm0, %v7125_v50, %v2704_v18 }
 0x558   : > { %v7734_v25 = vsel %vm9309_vm12, %v7499_v9, %v7715_v4  ;;  %v3403_v47 = vsel %vm9310_vm10, %v3394_v5, %v3402_v36  ;;  %v3415_v59 = vsel %vm9311_vm7, %v3402_v36, %v3414_v26  ;;  %v2789_v0 = vrot.slane %v2734_v35, 7  ;;  %v9312_v9 = vld [vmem:[#allocation13_spill] sm:$0xff]  ;;  %vm9314_vm12 = vmmov %vm9296_vm6 }
 0x559   : > { %v2801_v49 = vrot.slane %v2740_v11, 7  ;;  %v2826_v53 = vsel %vm7647_vm15, %v7397_v15, %v2778_v23  ;;  %vm9313_vm8 = vnez %v9312_v9  ;;  %vm9315_vm10 = vnez %v8991_v42  ;;  %vm9316_vm7 = vmmov %vm9296_vm6 }
 0x55a   : > { %v3442_v46 = vsel %vm9313_vm8, %v7718_v61, %v3394_v5  ;;  %v3448_v34 = vsel %vm9313_vm8, %v7707_v21, %v3403_v47  ;;  %v3454_v26 = vsel %vm9313_vm8, %v7675_v6, %v3415_v59  ;;  %v2790_v18 = vsel %vm9296_vm6, %v2778_v23, %v2789_v0  ;;  %vm9317_vm8 = vmmov %vm9296_vm6 }
 0x55b   : > { %v3478_v36 = vrot.slane %v3442_v46, 7  ;;  %v2802_v35 = vsel %vm9314_vm12, %v2789_v0, %v2801_v49  ;;  %v3486_v15 = vrot.slane %v3448_v34, 7  ;;  %v3498_v11 = vrot.slane %v3454_v26, 7  ;;  %v3237_v46 = vpop.permute.xlu0 %3236 }
 0x55c   : > { %v2832_v5 = vsel %vm7647_vm15, %v7317_v58, %v2790_v18  ;;  %v2838_v47 = vsel %vm7647_vm15, %v7125_v50, %v2802_v35  ;;  %v2873_v55 = vrot.slane %v2826_v53, 2  ;;  %v7770_v58 = vpop.permute.xlu1 %3238  ;;  %v3347_v50 = vsel %vm6476_vm2, %v7734_v25, 0.0 }
 0x55d   : > { %v3526_v59 = vsel %vm9315_vm10, %v7718_v61, %v3478_v36  ;;  %v2874_v23 = vrot.slane %v2832_v5, 2  ;;  %v2886_v9 = vrot.slane %v2838_v47, 2  ;;  %v3487_v0 = vsel %vm9316_vm7, %v3478_v36, %v3486_v15 }
 0x55e   : > { %v3499_v49 = vsel %vm9317_vm8, %v3486_v15, %v3498_v11  ;;  %v3532_v53 = vsel %vm9315_vm10, %v7707_v21, %v3487_v0  ;;  %v3562_v26 = vrot.slane %v3526_v59, 7  ;;  %vm9318_vm6 = vcmask 1045504  }
 0x55f   : > { %v3538_v34 = vsel %vm9315_vm10, %v7675_v6, %v3499_v49  ;;  %v2875_v36 = vsel %vm9318_vm6, %v2873_v55, %v2874_v23  ;;  %vm9319_vm12 = vmmov %vm9318_vm6  ;;  %2925 = vst.msk [vmem:[%s5749_s8 + $0x88] sm:$0x1f] %vm8799_vm9, %v2886_v9  ;;  %v3570_v35 = vrot.slane %v3532_v53, 7  ;;  %vm9320_vm7 = vnez %v9000_v8 }
 0x560   : > { %v2887_v18 = vsel %vm9319_vm12, %v2874_v23, %v2886_v9  ;;  %v3582_v15 = vrot.slane %v3538_v34, 7  ;;  %2912 = vst.msk [vmem:[%s5749_s8 + $0x28] sm:$0xff] %vm8796_vm14, %v2875_v36  ;;  %v3610_v11 = vsel %vm9320_vm7, %v7718_v61, %v3562_v26  ;;  %vm9321_vm8 = vcmask 457728  }
 0x561   : > { %v3263_v5 = vsel %vm9321_vm8, %v7618_v62, %v3237_v46  ;;  %vm9322_vm10 = vmmov %vm9321_vm8  ;;  %v8798_v55 = vrot.slane %v7770_v58, 3  ;;  %2918 = vst.msk [vmem:[%s5749_s8 + $0x58] sm:$0xff] %vm8796_vm14, %v2887_v18  ;;  %vm9323_vm6 = vcmask 1040384   ;;  %v3646_v23 = vrot.slane %v3610_v11, 7 }
 0x562   : > { %v7794_v42 = vsel %vm9322_vm10, %v3237_v46, %v7770_v58  ;;  %v3571_v47 = vsel %vm9323_vm6, %v3562_v26, %v3570_v35  ;;  %vm9324_vm12 = vmmov %vm9323_vm6  ;;  %v3275_v9 = vrot.slane %v3263_v5, 3  ;;  %v3341_v49 = vsel %vm6476_vm2, %v3263_v5, 0.0 }
 0x563   : > { %v3583_v59 = vsel %vm9324_vm12, %v3570_v35, %v3582_v15  ;;  %v3616_v0 = vsel %vm9320_vm7, %v7707_v21, %v3571_v47  ;;  %v8797_v46 = vrot.slane %v7794_v42, 3  ;;  %vm9325_vm8 = vnez %v9009_v27  ;;  %vm9330_vm14 = vmmov %vm9324_vm12 }
 0x564   : > { %v3622_v62 = vsel %vm9320_vm7, %v7675_v6, %v3583_v59  ;;  %v3654_v53 = vrot.slane %v3616_v0, 7  ;;  %v3700_v26 = vsel %vm9325_vm8, %v7718_v61, %v3646_v23  ;;  %v9326_v36 = vrot.slane %v7734_v25, 3 }
 0x565   : > { %v3666_v34 = vrot.slane %v3622_v62, 7  ;;  %vm9327_vm10 = vcmask 1044480   ;;  %v3748_v35 = vrot.slane %v3700_v26, 6  ;;  %v3342_v27 = vsel %vm7214_vm5, %v7794_v42, 0.0 }
 0x566   : > { %v7816_v18 = vsel %vm9327_vm10, %v3275_v9, %v9326_v36  ;;  %vm9328_vm6 = vmmov %vm9327_vm10  ;;  %v3655_v5 = vsel %vm9324_vm12, %v3646_v23, %v3654_v53  ;;  %vm9336_vm12 = vnez %v9072_v13  ;;  %vm9375_vm1 = vcmask 1045504  }
 0x567   : > { %v7819_v8 = vsel %vm9328_vm6, 0.0, %v3275_v9  ;;  %v7824_v15 = vsel %vm6483_vm11, %v7816_v18, %v3347_v50  ;;  %vm9329_vm7 = vmmov %vm9328_vm6  ;;  %v3667_v47 = vsel %vm9330_vm14, %v3654_v53, %v3666_v34  ;;  %v3718_v59 = vsel %vm9325_vm8, %v7335_v14, %v3666_v34 }
 0x568   : > { %v7829_v11 = vsel %vm9329_vm7, 0.0, %v8797_v46  ;;  %v3359_v9 = vsel %vm6483_vm11, %v7819_v8, %v3341_v49  ;;  %v3706_v50 = vsel %vm9325_vm8, %v7707_v21, %v3655_v5  ;;  %v3712_v0 = vsel %vm9325_vm8, %v7675_v6, %v3667_v47  ;;  %vm9332_vm10 = vmmov %vm9328_vm6 }
 0x569   : > { %v3780_v62 = vrot.slane %v3718_v59, 6  ;;  %vm9331_vm14 = vnez %v9043_v19  ;;  %v3756_v53 = vrot.slane %v3706_v50, 6  ;;  %v3768_v26 = vrot.slane %v3712_v0, 6  ;;  %vm9376_vm11 = vmmov %vm9375_vm1 }
 0x56a   : > { %v3814_v23 = vsel %vm9331_vm14, %v7718_v61, %v3748_v35  ;;  %v3395_v36 = vrot.slane %v3359_v9, 7  ;;  %v7852_v49 = vsel %vm9332_vm10, 0.0, %v8798_v55  ;;  %v3343_v5 = vsel %vm7060_vm3, %v7770_v58, 0.0 }
 0x56b   : > { %v3862_v34 = vrot.slane %v3814_v23, 7  ;;  %vm9333_vm8 = vcmask 1041408   ;;  %vm9338_vm10 = vcmask 1040384  }
 0x56c   : > { %v3757_v47 = vsel %vm9333_vm8, %v3748_v35, %v3756_v53  ;;  %vm9334_vm6 = vmmov %vm9333_vm8  ;;  %vm9339_vm8 = vnez %v9014_v22 }
 0x56d   : > { %v3769_v59 = vsel %vm9334_vm6, %v3756_v53, %v3768_v26  ;;  %vm9335_vm7 = vmmov %vm9334_vm6  ;;  %v3928_v50 = vsel %vm9336_vm12, %v7718_v61, %v3862_v34  ;;  %v3820_v0 = vsel %vm9331_vm14, %v7707_v21, %v3757_v47  ;;  %v3443_v47 = vsel %vm9339_vm8, %v7819_v8, %v3395_v36 }
 0x56e   : > { %v3781_v9 = vsel %vm9335_vm7, %v3768_v26, %v3780_v62  ;;  %v3826_v23 = vsel %vm9331_vm14, %v7675_v6, %v3769_v59  ;;  %v3980_v55 = vrot.slane %v3928_v50, 7  ;;  %v3870_v53 = vrot.slane %v3820_v0, 7  ;;  %vm9342_vm7 = vmmov %vm9338_vm10 }
 0x56f   : > { %v3832_v35 = vsel %vm9331_vm14, %v7335_v14, %v3781_v9  ;;  %v3882_v46 = vrot.slane %v3826_v23, 7  ;;  %v9337_v26 = vrot.slane %v7824_v15, 7  ;;  %vm9340_vm6 = vnez %v9211_v39  ;;  %vm9344_vm9 = vmmov %vm9342_vm7 }
 0x570   : > { %v3894_v62 = vrot.slane %v3832_v35, 7  ;;  %v7887_v19 = vsel %vm9340_vm6, %v7829_v11, %v3342_v27  ;;  %vm9341_vm14 = vnez %v9213_v31  ;;  %v3871_v50 = vsel %vm9342_vm7, %v3862_v34, %v3870_v53  ;;  %vm9349_vm15 = vmmov %vm9342_vm7 }
 0x571   : > { %v3405_v61 = vsel %vm9338_vm10, %v3395_v36, %v9337_v26  ;;  %v7892_v9 = vsel %vm9341_vm14, %v7852_v49, %v3343_v5  ;;  %vm9343_vm10 = vmmov %vm9342_vm7  ;;  %v3479_v23 = vrot.slane %v3443_v47, 7  ;;  %v3934_v35 = vsel %vm9336_vm12, %v7707_v21, %v3871_v50 }
 0x572   : > { %v3449_v59 = vsel %vm9339_vm8, %v7816_v18, %v3405_v61  ;;  %v3883_v0 = vsel %vm9343_vm10, %v3870_v53, %v3882_v46  ;;  %v3895_v36 = vsel %vm9344_vm9, %v3882_v46, %v3894_v62  ;;  %v3981_v34 = vrot.slane %v3934_v35, 7  ;;  %vm9347_vm10 = vmmov %vm9342_vm7 }
 0x573   : > { %v3940_v27 = vsel %vm9336_vm12, %v7675_v6, %v3883_v0  ;;  %v3946_v5 = vsel %vm9336_vm12, %v7335_v14, %v3895_v36  ;;  %v7906_v26 = vrot.slane %v3449_v59, 7  ;;  %vm9346_vm9 = vnez %v9016_v32  ;;  %vm9348_vm12 = vmmov %vm9342_vm7 }
 0x574   : > { %v3996_v61 = vrot.slane %v3940_v27, 7  ;;  %v4008_v53 = vrot.slane %v3946_v5, 7  ;;  %v3527_v46 = vsel %vm9346_vm9, %v7819_v8, %v3479_v23  ;;  %v8804_v50 = vrot.slane %v7887_v19, 7  ;;  %v9350_v27 = vld [vmem:[#allocation26_spill] sm:$0xff] }
 0x575   : > { %9345 = vst [vmem:[#allocation10_spill] sm:$0xff] %v7906_v26  ;;  %v3489_v62 = vsel %vm9342_vm7, %v3479_v23, %v7906_v26  ;;  %v3563_v47 = vrot.slane %v3527_v46, 7  ;;  %v3982_v13 = vsel %vm9347_vm10, %v3980_v55, %v3981_v34  ;;  %vm9351_vm8 = vnez %v9350_v27 }
 0x576   : > { %v3997_v59 = vsel %vm9348_vm12, %v3981_v34, %v3996_v61  ;;  %v4009_v36 = vsel %vm9349_vm15, %v3996_v61, %v4008_v53  ;;  %v3533_v35 = vsel %vm9346_vm9, %v7816_v18, %v3489_v62  ;;  %v4036_v5 = vsel %vm9351_vm8, %v7707_v21, %v3982_v13  ;;  %vm9357_vm12 = vmmov %vm9342_vm7 }
 0x577   : > { %v4042_v23 = vsel %vm9351_vm8, %v7675_v6, %v3997_v59  ;;  %v4048_v55 = vsel %vm9351_vm8, %v7335_v14, %v4009_v36  ;;  %v7930_v46 = vrot.slane %v3533_v35, 7  ;;  %v4072_v34 = vrot.slane %v4036_v5, 7  ;;  %vm9358_vm9 = vmmov %vm9342_vm7 }
 0x578   : > { %v4080_v61 = vrot.slane %v4042_v23, 7  ;;  %v4092_v53 = vrot.slane %v4048_v55, 7  ;;  %vm9353_vm15 = vnez %v9028_v37  ;;  %vm9354_vm10 = vnez %v9216_v30  ;;  %v3243_v37 = vpop.permute.xlu0 %3242 }
 0x579   : > { %9352 = vst [vmem:[#allocation22_spill] sm:$0xff] %v7930_v46  ;;  %v3611_v62 = vsel %vm9353_vm15, %v7819_v8, %v3563_v47  ;;  %v3573_v13 = vsel %vm9342_vm7, %v3563_v47, %v7930_v46  ;;  %v7942_v59 = vsel %vm9354_vm10, %v7829_v11, %v8804_v50  ;;  %v9355_v36 = vrot.slane %v7892_v9, 7  ;;  %v9359_v47 = vld [vmem:[#allocation27_spill] sm:$0xff] }
 0x57a   : > { %v3647_v0 = vrot.slane %v3611_v62, 7  ;;  %vm9356_vm8 = vnez %v9218_v45  ;;  %v4081_v27 = vsel %vm9357_vm12, %v4072_v34, %v4080_v61  ;;  %v4093_v5 = vsel %vm9358_vm9, %v4080_v61, %v4092_v53 }
 0x57b   : > { %v7949_v35 = vsel %vm9356_vm8, %v7852_v49, %v9355_v36  ;;  %vm9360_vm7 = vnez %v9359_v47  ;;  %v3617_v55 = vsel %vm9353_vm15, %v7816_v18, %v3573_v13  ;;  %vm9362_vm9 = vnez %v9063_v2  ;;  %v9363_v13 = vld [vmem:[#allocation28_spill] sm:$0xff] }
 0x57c   : > { %v4120_v23 = vsel %vm9360_vm7, %v7707_v21, %v4072_v34  ;;  %v4126_v62 = vsel %vm9360_vm7, %v7675_v6, %v4081_v27  ;;  %v4132_v36 = vsel %vm9360_vm7, %v7335_v14, %v4093_v5  ;;  %v7965_v46 = vrot.slane %v3617_v55, 7 }
 0x57d   : > { %v4156_v50 = vrot.slane %v4120_v23, 7  ;;  %v4164_v61 = vrot.slane %v4126_v62, 7  ;;  %v4176_v53 = vrot.slane %v4132_v36, 7  ;;  %v3701_v34 = vsel %vm9362_vm9, %v7819_v8, %v3647_v0 }
 0x57e   : > { %9361 = vst [vmem:[#allocation11_spill] sm:$0xff] %v7965_v46  ;;  %vm9364_vm12 = vnez %v9363_v13  ;;  %vm9365_vm15 = vcmask 1040384   ;;  %v3749_v47 = vrot.slane %v3701_v34, 6  ;;  %v8815_v5 = vrot.slane %v7949_v35, 7  ;;  %v8000_v13 = vpop.permute.xlu2 %3246 }
 0x57f   : > { %v4204_v32 = vsel %vm9364_vm12, %v7707_v21, %v4156_v50  ;;  %v3657_v27 = vsel %vm9365_vm15, %v3647_v0, %v7965_v46  ;;  %vm9366_vm7 = vmmov %vm9365_vm15  ;;  %vm9371_vm15 = vnez %v9224_v17  ;;  %v9410_v45 = vrot.slane %v7942_v59, 7 }
 0x580   : > { %v4165_v23 = vsel %vm9366_vm7, %v4156_v50, %v4164_v61  ;;  %vm9367_vm0 = vmmov %vm9366_vm7  ;;  %v4244_v62 = vrot.slane %v4204_v32, 2  ;;  %v3707_v36 = vsel %vm9362_vm9, %v7816_v18, %v3657_v27  ;;  %v9370_v27 = vrot.slane %v7942_v59, 7  ;;  %v9485_v17 = vld [vmem:[#allocation22_spill] sm:$0xff] }
 0x581   : > { %v4177_v55 = vsel %vm9367_vm0, %v4164_v61, %v4176_v53  ;;  %v4210_v21 = vsel %vm9364_vm12, %v7675_v6, %v4165_v23  ;;  %v7988_v34 = vrot.slane %v3707_v36, 6  ;;  %vm9369_vm0 = vnez %v9090_v52 }
 0x582   : > { %v4216_v0 = vsel %vm9364_vm12, %v7335_v14, %v4177_v55  ;;  %v3815_v32 = vsel %vm9369_vm0, %v7819_v8, %v3749_v47  ;;  %v4245_v50 = vrot.slane %v4210_v21, 2  ;;  %v7998_v6 = vsel %vm9371_vm15, %v7829_v11, %v9370_v27 }
 0x583   : > { %9368 = vst [vmem:[#allocation12_spill] sm:$0xff] %v7988_v34  ;;  %v4260_v61 = vrot.slane %v4216_v0, 2  ;;  %v3863_v53 = vrot.slane %v3815_v32, 7  ;;  %vm9372_vm12 = vcmask 1041408   ;;  %vm9373_vm7 = vnez %v9226_v10 }
 0x584   : > { %v3759_v14 = vsel %vm9372_vm12, %v3749_v47, %v7988_v34  ;;  %v8009_v23 = vsel %vm9373_vm7, %v7852_v49, %v8815_v5  ;;  %v8816_v55 = vrot.slane %v7998_v6, 7  ;;  %vm9374_vm9 = vcmask 457728  }
 0x585   : > { %v8014_v36 = vsel %vm9374_vm9, %v7715_v4, %v3243_v37  ;;  %v4246_v21 = vsel %vm9375_vm1, %v4244_v62, %v4245_v50  ;;  %v4261_v0 = vsel %vm9376_vm11, %v4245_v50, %v4260_v61  ;;  %4449 = vst [vmem:[%s5749_s8 + $0x100] sm:$0x1f] %v4260_v61  ;;  %v3821_v47 = vsel %vm9369_vm0, %v7816_v18, %v3759_v14  ;;  %v9380_v50 = vld [vmem:[#allocation16_spill] sm:$0xff] }
 0x586   : > { %vm9377_vm12 = vnez %v9101_v48  ;;  %v9378_v27 = vrot.slane %v7591_v54, 7  ;;  %4437 = vst [vmem:[%s5749_s8 + $0xa0] sm:$0xff] %v4246_v21  ;;  %v8031_v5 = vrot.slane %v3821_v47, 7  ;;  %v8820_v62 = vrot.slane %v8009_v23, 7 }
 0x587   : > { %v3929_v32 = vsel %vm9377_vm12, %v7819_v8, %v3863_v53  ;;  %vm9381_vm11 = vnez %v9380_v50  ;;  %4443 = vst [vmem:[%s5749_s8 + $0xd0] sm:$0xff] %v4261_v0  ;;  %v3300_v8 = vrot.slane %v8000_v13, 3  ;;  %v3355_v54 = vsel %vm7060_vm3, %v8000_v13, 0.0 }
 0x588   : > { %v2507_v4 = vsel %vm7582_vm4, %v7423_v44, %v9378_v27  ;;  %9379 = vst [vmem:[#allocation14_spill] sm:$0xff] %v8031_v5  ;;  %v8039_v61 = vsel %vm9381_vm11, %v7829_v11, %v8816_v55  ;;  %v3288_v14 = vrot.slane %v3243_v37, 3  ;;  %vm9382_vm1 = vcmask 1040384   ;;  %v9383_v27 = vld [vmem:[#allocation24_spill] sm:$0xff] }
 0x589   : > { %v3873_v21 = vsel %vm9382_vm1, %v3863_v53, %v8031_v5  ;;  %v3983_v47 = vrot.slane %v3929_v32, 7  ;;  %vm9384_vm9 = vnez %v9383_v27  ;;  %v9385_v34 = vrot.slane %v8014_v36, 3 }
 0x58a   : > { %v8054_v55 = vsel %vm9384_vm9, %v7852_v49, %v8820_v62  ;;  %v3935_v52 = vsel %vm9377_vm12, %v7816_v18, %v3873_v21  ;;  %v9386_v53 = vrot.slane %v7794_v42, 3  ;;  %vm9387_vm1 = vcmask 1044480  }
 0x58b   : > { %v8826_v44 = vrot.slane %v8054_v55, 7  ;;  %v3348_v62 = vsel %vm7214_vm5, %v8014_v36, 0.0  ;;  %v8071_v5 = vrot.slane %v3935_v52, 7  ;;  %v9389_v0 = vrot.slane %v7770_v58, 3  ;;  %vm9390_vm0 = vmmov %vm9387_vm1 }
 0x58c   : > { %v8066_v32 = vsel %vm9387_vm1, %v9386_v53, %v9385_v34  ;;  %vm9391_vm12 = vmmov %vm9390_vm0  ;;  %v3349_v42 = vsel %vm7060_vm3, %v3243_v37, 0.0  ;;  %vm9392_vm1 = vnez %v9251_v28  ;;  %v2577_v56 = vrot.slane %v2507_v4, 7  ;;  %v9397_v4 = vld [vmem:[#allocation25_spill] sm:$0xff] }
 0x58d   : > { %9388 = vst [vmem:[#allocation23_spill] sm:$0xff] %v8071_v5  ;;  %v8076_v48 = vsel %vm9390_vm0, %v9389_v0, %v3288_v14  ;;  %v8079_v21 = vsel %vm9391_vm12, %v3288_v14, %v3300_v8  ;;  %v8088_v34 = vsel %vm9392_vm1, %v7852_v49, %v8826_v44  ;;  %v8093_v52 = vsel %vm9340_vm6, %v8066_v32, %v3348_v62  ;;  %v9394_v44 = vld [vmem:[#allocation29_spill] sm:$0xff] }
 0x58e   : > { %v3367_v58 = vsel %vm9341_vm14, %v8076_v48, %v3349_v42  ;;  %v3373_v37 = vsel %vm9341_vm14, %v8079_v21, %v3355_v54  ;;  %vm9393_vm3 = vcmask 1040384   ;;  %v8833_v0 = vrot.slane %v8088_v34, 6 }
 0x58f   : > { %v3985_v14 = vsel %vm9393_vm3, %v3983_v47, %v8071_v5  ;;  %v8836_v53 = vrot.slane %v8093_v52, 7  ;;  %vm9395_vm0 = vnez %v9394_v44  ;;  %v3408_v2 = vrot.slane %v3367_v58, 7  ;;  %v9406_v5 = vld [vmem:[#allocation31_spill] sm:$0xff] }
 0x590   : > { %v4037_v62 = vsel %vm9395_vm0, %v7816_v18, %v3985_v14  ;;  %v3420_v46 = vrot.slane %v3373_v37, 7  ;;  %v2533_v42 = vperm.slane %v9018_v33, 4  ;;  %v9396_v31 = vrot.slane %v8039_v61, 7  ;;  %vm9401_vm0 = vmmov %vm9393_vm3 }
 0x591   : > { %v8109_v26 = vrot.slane %v4037_v62, 7  ;;  %vm9398_vm14 = vnez %v9397_v4  ;;  %vm9399_vm12 = vnez %v9261_v12  ;;  %v9400_v33 = vrot.slane %v7887_v19, 7  ;;  %vm9404_vm6 = vmmov %vm9401_vm0 }
 0x592   : > { %v8116_v54 = vsel %vm9398_vm14, %v7829_v11, %v9396_v31  ;;  %v8123_v47 = vsel %vm9399_vm12, %v7852_v49, %v8833_v0  ;;  %v2579_v37 = vsel %vm9401_vm0, %v2577_v56, %v7677_v16  ;;  %v9402_v62 = vrot.slane %v7892_v9, 7  ;;  %vm9403_vm14 = vmmov %vm9401_vm0 }
 0x593   : > { %v3407_v58 = vsel %vm9393_vm3, %v9400_v33, %v8836_v53  ;;  %v3865_v14 = vrot.slane %v8123_v47, 7  ;;  %v3421_v44 = vsel %vm9404_vm6, %v3408_v2, %v3420_v46  ;;  %vm9405_vm5 = vcmask 1041408   ;;  %vm9411_vm6 = vmmov %vm9401_vm0 }
 0x594   : > { %v3409_v31 = vsel %vm9403_vm14, %v9402_v62, %v3408_v2  ;;  %v8138_v0 = vsel %vm9405_vm5, %v3300_v8, 0.0  ;;  %vm9407_vm2 = vnez %v9406_v5  ;;  %v3450_v16 = vsel %vm9354_vm10, %v8066_v32, %v3407_v58 }
 0x595   : > { %v4121_v19 = vsel %vm9407_vm2, %v7816_v18, %v8109_v26  ;;  %v3451_v9 = vsel %vm9356_vm8, %v8076_v48, %v3409_v31  ;;  %v3457_v2 = vsel %vm9356_vm8, %v8079_v21, %v3421_v44  ;;  %v8154_v46 = vrot.slane %v3450_v16, 7  ;;  %vm9413_vm8 = vmmov %vm9401_vm0 }
 0x596   : > { %vm8156_vm5 = vcmp.eq.s32.totalorder %v2533_v42, 1  ;;  %v8160_v33 = vrot.slane %v4121_v19, 7  ;;  %v8167_v58 = vsel %vm7547_vm13, %v7852_v49, %v3865_v14  ;;  %v3492_v62 = vrot.slane %v3451_v9, 7 }
 0x597   : > { %v3504_v31 = vrot.slane %v3457_v2, 7  ;;  %v3491_v44 = vsel %vm9411_vm6, %v9410_v45, %v8154_v46  ;;  %v2649_v42 = vperm.slane %v9022_v63, 4  ;;  %v2747_v16 = vperm.slane %v9023_v38, 4  ;;  %v3245_v2 = vpop.permute.xlu1 %3244  ;;  %vm9421_vm6 = vmmov %vm9401_vm0 }
 0x598   : > { %v2525_v19 = vsel %vm7582_vm4, %v7289_v43, %v7652_v24  ;;  %v9412_v53 = vrot.slane %v7949_v35, 7  ;;  %v3534_v59 = vsel %vm9371_vm15, %v8066_v32, %v3491_v44  ;;  %v2629_v63 = vsel %vm8156_vm5, %v7420_v40, %v2579_v37  ;;  %v9414_v44 = vld [vmem:[#allocation30_spill] sm:$0xff]  ;;  %vm9425_vm2 = vmmov %vm9421_vm6 }
 0x599   : > { %v3505_v9 = vsel %vm9401_vm0, %v3492_v62, %v3504_v31  ;;  %v3989_v38 = vrot.slane %v8167_v58, 7  ;;  %v2603_v45 = vrot.slane %v2525_v19, 7  ;;  %v2635_v37 = vsel %vm8156_vm5, %v9414_v44, %v7688_v20 }
 0x59a   : > { %v3493_v49 = vsel %vm9413_vm8, %v9412_v53, %v3492_v62  ;;  %v3541_v35 = vsel %vm9373_vm7, %v8079_v21, %v3505_v9  ;;  %v8196_v53 = vrot.slane %v3534_v59, 7  ;;  %vm8202_vm14 = vcmp.eq.s32.totalorder %v2649_v42, 1  ;;  %vm9422_vm8 = vmmov %vm9401_vm0 }
 0x59b   : > { %v3535_v24 = vsel %vm9373_vm7, %v8076_v48, %v3493_v49  ;;  %v3588_v31 = vrot.slane %v3541_v35, 7  ;;  %vm8206_vm3 = vcmp.eq.s32.totalorder %v2747_v16, 1  ;;  %v2679_v10 = vrot.slane %v2629_v63, 7  ;;  %vm9420_vm7 = vmmov %vm9401_vm0 }
 0x59c   : > { %v3576_v62 = vrot.slane %v3535_v24, 7  ;;  %v2689_v9 = vrot.slane %v2635_v37, 7  ;;  %v9419_v59 = vrot.slane %v8009_v23, 7  ;;  %v2604_v35 = vsel %vm9422_vm8, %v7679_v57, %v2603_v45  ;;  %vm9431_vm8 = vmmov %vm9421_vm6 }
 0x59d   : > { %vm9423_vm0 = vcmask 457728   ;;  %v9424_v42 = vrot.slane %v7998_v6, 7  ;;  %v2641_v57 = vsel %vm8156_vm5, %v7289_v43, %v2604_v35  ;;  %v2727_v6 = vsel %vm8202_vm14, %v7420_v40, %v2679_v10 }
 0x59e   : > { %v3577_v24 = vsel %vm9420_vm7, %v9419_v59, %v3576_v62  ;;  %v3589_v19 = vsel %vm9421_vm6, %v3576_v62, %v3588_v31  ;;  %v8218_v20 = vsel %vm9423_vm0, %v3245_v2, %v8000_v13  ;;  %vm9426_vm7 = vmmov %vm9425_vm2  ;;  %v2701_v45 = vrot.slane %v2641_v57, 7  ;;  %v9427_v59 = vld [vmem:[#allocation8_spill] sm:$0xff] }
 0x59f   : > { %v3575_v16 = vsel %vm9425_vm2, %v9424_v42, %v8196_v53  ;;  %v3619_v23 = vsel %vm9384_vm9, %v8076_v48, %v3577_v24  ;;  %v3625_v63 = vsel %vm9384_vm9, %v8079_v21, %v3589_v19  ;;  %v2690_v31 = vsel %vm9426_vm7, %v2679_v10, %v2689_v9  ;;  %vm9428_vm2 = vmmov %vm9423_vm0 }
 0x5a0   : > { %v3660_v62 = vrot.slane %v3619_v23, 7  ;;  %v3672_v13 = vrot.slane %v3625_v63, 7  ;;  %v2733_v37 = vsel %vm8202_vm14, %v9414_v44, %v2690_v31  ;;  %v8242_v27 = vsel %vm9428_vm2, %v9427_v59, %v3245_v2  ;;  %vm9430_vm9 = vmmov %vm9421_vm6 }
 0x5a1   : > { %v3298_v24 = vrot.slane %v8218_v20, 3  ;;  %v9429_v19 = vrot.slane %v8054_v55, 7  ;;  %v2702_v23 = vsel %vm9431_vm8, %v2689_v9, %v2701_v45  ;;  %v2777_v59 = vrot.slane %v2727_v6, 7  ;;  %vm9441_vm8 = vmmov %vm9421_vm6 }
 0x5a2   : > { %v3673_v42 = vsel %vm9421_vm6, %v3660_v62, %v3672_v13  ;;  %v3721_v10 = vsel %vm9392_vm1, %v8138_v0, %v3672_v13  ;;  %v2739_v55 = vsel %vm8202_vm14, %v7289_v43, %v2702_v23  ;;  %v3618_v9 = vsel %vm9381_vm11, %v8066_v32, %v3575_v16 }
 0x5a3   : > { %v3661_v35 = vsel %vm9430_vm9, %v9429_v19, %v3660_v62  ;;  %v3715_v2 = vsel %vm9392_vm1, %v8079_v21, %v3673_v42  ;;  %v3786_v57 = vrot.slane %v3721_v10, 6  ;;  %v2787_v19 = vrot.slane %v2733_v37, 7  ;;  %vm9438_vm9 = vmmov %vm9421_vm6 }
 0x5a4   : > { %v3709_v63 = vsel %vm9392_vm1, %v8076_v48, %v3661_v35  ;;  %v3774_v31 = vrot.slane %v3715_v2, 6  ;;  %v2799_v13 = vrot.slane %v2739_v55, 7  ;;  %v3296_v45 = vrot.slane %v8242_v27, 3 }
 0x5a5   : > { %v3762_v62 = vrot.slane %v3709_v63, 6  ;;  %v9432_v28 = vrot.slane %v8014_v36, 3  ;;  %vm9433_vm1 = vcmask 1044480   ;;  %v9434_v42 = vrot.slane %v8088_v34, 6 }
 0x5a6   : > { %vm9435_vm0 = vcmask 1041408   ;;  %v2788_v16 = vsel %vm9438_vm9, %v2777_v59, %v2787_v19  ;;  %v2800_v63 = vsel %vm9421_vm6, %v2787_v19, %v2799_v13  ;;  %v9439_v12 = vrot.slane %v7734_v25, 3 }
 0x5a7   : > { %v8271_v35 = vsel %vm9433_vm1, %v9432_v28, %v3298_v24  ;;  %v3763_v10 = vsel %vm9435_vm0, %v9434_v42, %v3762_v62  ;;  %vm9436_vm7 = vmmov %vm9435_vm0  ;;  %v2837_v28 = vsel %vm8206_vm3, %v7289_v43, %v2800_v63  ;;  %vm9446_vm9 = vnez %v9002_v29  ;;  %v9452_v29 = vld [vmem:[#allocation9_spill] sm:$0xff] }
 0x5a8   : > { %v3775_v6 = vsel %vm9436_vm7, %v3762_v62, %v3774_v31  ;;  %vm9437_vm2 = vmmov %vm9435_vm0  ;;  %v3823_v23 = vsel %vm9399_vm12, %v8076_v48, %v3763_v10  ;;  %v2884_v10 = vrot.slane %v2837_v28, 2  ;;  %vm9444_vm7 = vcmask 1045504  }
 0x5a9   : > { %v3787_v37 = vsel %vm9437_vm2, %v3774_v31, %v3786_v57  ;;  %v3829_v36 = vsel %vm9399_vm12, %v8079_v21, %v3775_v6  ;;  %v3876_v2 = vrot.slane %v3823_v23, 7  ;;  %v2825_v57 = vsel %vm8206_vm3, %v7420_v40, %v2777_v59  ;;  %vm9445_vm2 = vmmov %vm9444_vm7 }
 0x5aa   : > { %v3835_v34 = vsel %vm9399_vm12, %v8138_v0, %v3787_v37  ;;  %v3888_v55 = vrot.slane %v3829_v36, 7  ;;  %v2831_v31 = vsel %vm8206_vm3, %v9414_v44, %v2788_v16  ;;  %v2870_v42 = vrot.slane %v2825_v57, 2  ;;  %vm9440_vm12 = vmmov %vm9433_vm1  ;;  %2923 = vst [vmem:[%s5749_s8 + $0x80] sm:$0x1f] %v2884_v10 }
 0x5ab   : > { %v3900_v62 = vrot.slane %v3835_v34, 7  ;;  %v8303_v19 = vsel %vm9440_vm12, %v9439_v12, %v3296_v45  ;;  %v3877_v40 = vsel %vm9441_vm8, %v3865_v14, %v3876_v2  ;;  %vm9442_vm1 = vmmov %vm9421_vm6  ;;  %v2871_v13 = vrot.slane %v2831_v31, 2  ;;  %v9456_v12 = vld [vmem:[#allocation20_spill] sm:$0xff] }
 0x5ac   : > { %v3889_v59 = vsel %vm9442_vm1, %v3876_v2, %v3888_v55  ;;  %vm9443_vm0 = vmmov %vm9442_vm1  ;;  %v3937_v43 = vsel %vm7547_vm13, %v8076_v48, %v3877_v40  ;;  %v8320_v23 = vrot.slane %v3618_v9, 7  ;;  %v3353_v34 = vsel %vm9446_vm9, %v8242_v27, 0.0  ;;  %v9496_v27 = vld [vmem:[#allocation18_spill] sm:$0xff] }
 0x5ad   : > { %v3901_v44 = vsel %vm9443_vm0, %v3888_v55, %v3900_v62  ;;  %v3943_v25 = vsel %vm7547_vm13, %v8079_v21, %v3889_v59  ;;  %v3990_v14 = vrot.slane %v3937_v43, 7  ;;  %v2872_v16 = vsel %vm9444_vm7, %v2870_v42, %v2871_v13  ;;  %vm9449_vm12 = vmmov %vm9443_vm0 }
 0x5ae   : > { %v3949_v47 = vsel %vm7547_vm13, %v8138_v0, %v3901_v44  ;;  %v4002_v6 = vrot.slane %v3943_v25, 7  ;;  %v2885_v36 = vsel %vm9445_vm2, %v2871_v13, %v2884_v10  ;;  %2910 = vst [vmem:[%s5749_s8 + $0x20] sm:$0xff] %v2872_v16  ;;  %vm9447_vm6 = vnez %v9179_v60  ;;  %vm9448_vm13 = vmmov %vm9443_vm0 }
 0x5af   : > { %v4014_v37 = vrot.slane %v3949_v47, 7  ;;  %v3354_v41 = vsel %vm9447_vm6, %v8218_v20, 0.0  ;;  %v3991_v63 = vsel %vm9448_vm13, %v3989_v38, %v3990_v14  ;;  %vm9450_vm8 = vmmov %vm9443_vm0  ;;  %2917 = vst [vmem:[%s5749_s8 + $0x50] sm:$0xff] %v2885_v36  ;;  %vm9451_vm1 = vnez %v9005_v1 }
 0x5b0   : > { %v4003_v2 = vsel %vm9449_vm12, %v3990_v14, %v4002_v6  ;;  %v3371_v55 = vsel %vm9451_vm1, %v8303_v19, %v3353_v34  ;;  %vm9453_vm0 = vnez %v9452_v29  ;;  %vm9454_vm7 = vnez %v9211_v39  ;;  %vm9459_vm9 = vmmov %vm9450_vm8  ;;  %v9460_v39 = vld [vmem:[#allocation32_spill] sm:$0xff] }
 0x5b1   : > { %v4015_v9 = vsel %vm9450_vm8, %v4002_v6, %v4014_v37  ;;  %v4039_v62 = vsel %vm9453_vm0, %v8076_v48, %v3991_v63  ;;  %v4045_v60 = vsel %vm9453_vm0, %v8079_v21, %v4003_v2  ;;  %v3372_v38 = vsel %vm9454_vm7, %v8271_v35, %v3354_v41  ;;  %vm9462_vm13 = vmmov %vm9450_vm8 }
 0x5b2   : > { %v4051_v58 = vsel %vm9453_vm0, %v8138_v0, %v4015_v9  ;;  %v4075_v57 = vrot.slane %v4039_v62, 7  ;;  %v4086_v1 = vrot.slane %v4045_v60, 7  ;;  %v3416_v28 = vrot.slane %v3371_v55, 7  ;;  %vm9463_vm12 = vmmov %vm9450_vm8 }
 0x5b3   : > { %v4098_v31 = vrot.slane %v4051_v58, 7  ;;  %v9455_v42 = vrot.slane %v8116_v54, 6  ;;  %vm9457_vm2 = vnez %v9456_v12  ;;  %v3418_v59 = vrot.slane %v3372_v38, 7  ;;  %vm9466_vm1 = vmmov %vm9459_vm9  ;;  %v9474_v58 = vld [vmem:[#allocation10_spill] sm:$0xff] }
 0x5b4   : > { %v9458_v44 = vrot.slane %v8039_v61, 7  ;;  %vm9461_vm6 = vnez %v9460_v39  ;;  %v4087_v25 = vsel %vm9462_vm13, %v4075_v57, %v4086_v1  ;;  %vm9464_vm8 = vnez %v9286_v51  ;;  %vm9468_vm0 = vmmov %vm9466_vm1 }
 0x5b5   : > { %v3816_v40 = vsel %vm9457_vm2, %v7829_v11, %v9455_v42  ;;  %v4205_v43 = vsel %vm9461_vm6, %v7816_v18, %v8160_v33  ;;  %v4099_v47 = vsel %vm9463_vm12, %v4086_v1, %v4098_v31  ;;  %v4123_v10 = vsel %vm9464_vm8, %v8076_v48, %v4075_v57  ;;  %vm9472_vm12 = vmmov %vm9468_vm0 }
 0x5b6   : > { %v3659_v13 = vsel %vm9459_vm9, %v9458_v44, %v8320_v23  ;;  %v9465_v14 = vrot.slane %v7824_v15, 7  ;;  %v4129_v61 = vsel %vm9464_vm8, %v8079_v21, %v4087_v25  ;;  %v4135_v37 = vsel %vm9464_vm8, %v8138_v0, %v4099_v47  ;;  %vm9473_vm8 = vmmov %vm9468_vm0 }
 0x5b7   : > { %v4159_v16 = vrot.slane %v4123_v10, 7  ;;  %v9467_v36 = vrot.slane %v8093_v52, 7  ;;  %v4170_v41 = vrot.slane %v4129_v61, 7  ;;  %v4182_v63 = vrot.slane %v4135_v37, 7 }
 0x5b8   : > { %v3417_v6 = vsel %vm9466_vm1, %v9465_v14, %v3416_v28  ;;  %vm9469_vm7 = vnez %v9014_v22  ;;  %vm9470_vm9 = vnez %v9294_v7  ;;  %vm9471_vm13 = vnez %v9397_v4  ;;  %vm9476_vm1 = vmmov %vm9468_vm0  ;;  %v9477_v28 = vld [vmem:[#allocation15_spill] sm:$0xff] }
 0x5b9   : > { %v3419_v34 = vsel %vm9468_vm0, %v9467_v36, %v3418_v59  ;;  %v3455_v15 = vsel %vm9469_vm7, %v8303_v19, %v3417_v6  ;;  %v4207_v51 = vsel %vm9470_vm9, %v8076_v48, %v4159_v16  ;;  %v3708_v52 = vsel %vm9471_vm13, %v8066_v32, %v3659_v13 }
 0x5ba   : > { %v3456_v2 = vsel %vm9354_vm10, %v8271_v35, %v3419_v34  ;;  %v3500_v9 = vrot.slane %v3455_v15, 7  ;;  %v4171_v29 = vsel %vm9472_vm12, %v4159_v16, %v4170_v41  ;;  %v4183_v62 = vsel %vm9473_vm8, %v4170_v41, %v4182_v63  ;;  %vm9475_vm10 = vmmov %vm9468_vm0  ;;  %v9493_v63 = vld [vmem:[#allocation11_spill] sm:$0xff] }
 0x5bb   : > { %v3502_v55 = vrot.slane %v3456_v2, 7  ;;  %v4253_v22 = vrot.slane %v4207_v51, 2  ;;  %v3760_v60 = vrot.slane %v3708_v52, 6  ;;  %v4213_v30 = vsel %vm9470_vm9, %v8079_v21, %v4171_v29 }
 0x5bc   : > { %v4219_v48 = vsel %vm9470_vm9, %v8138_v0, %v4183_v62  ;;  %v3501_v38 = vsel %vm9475_vm10, %v9474_v58, %v3500_v9  ;;  %v4254_v1 = vrot.slane %v4213_v30, 2  ;;  %vm9478_vm0 = vnez %v9477_v28  ;;  %v9498_v62 = vld [vmem:[#allocation12_spill] sm:$0xff] }
 0x5bd   : > { %v3503_v57 = vsel %vm9476_vm1, %v8154_v46, %v3502_v55  ;;  %v4266_v31 = vrot.slane %v4219_v48, 2  ;;  %v3539_v42 = vsel %vm9478_vm0, %v8303_v19, %v3501_v38  ;;  %v9479_v0 = vrot.slane %v8116_v54, 6  ;;  %v9503_v38 = vld [vmem:[#allocation19_spill] sm:$0xff] }
 0x5be   : > { %v3540_v21 = vsel %vm9371_vm15, %v8271_v35, %v3503_v57  ;;  %v3584_v7 = vrot.slane %v3539_v42, 7  ;;  %vm9480_vm7 = vcmask 1041408   ;;  %v3864_v13 = vrot.slane %v3816_v40, 7  ;;  %vm9486_vm15 = vmmov %vm9476_vm1  ;;  %v9488_v40 = vld [vmem:[#allocation17_spill] sm:$0xff] }
 0x5bf   : > { %v3586_v59 = vrot.slane %v3540_v21, 7  ;;  %v3761_v44 = vsel %vm9480_vm7, %v9479_v0, %v3760_v60  ;;  %vm9481_vm9 = vcmask 1045504   ;;  %vm9483_vm8 = vcmask 159744  }
 0x5c0   : > { %v4255_v46 = vsel %vm9481_vm9, %v4253_v22, %v4254_v1  ;;  %vm9482_vm12 = vmmov %vm9481_vm9  ;;  %4452 = vst.msk [vmem:[%s5749_s8 + $0x118] sm:$0x1f] %vm9483_vm8, %v4266_v31  ;;  %v3822_v47 = vsel %vm9457_vm2, %v8066_v32, %v3761_v44  ;;  %vm9484_vm10 = vcmask 162816   ;;  %v3585_v10 = vsel %vm9486_vm15, %v9485_v17, %v3584_v7 }
 0x5c1   : > { %v4267_v25 = vsel %vm9482_vm12, %v4254_v1, %v4266_v31  ;;  %4440 = vst.msk [vmem:[%s5749_s8 + $0xb8] sm:$0xff] %vm9484_vm10, %v4255_v46  ;;  %v3587_v54 = vsel %vm9476_vm1, %v8196_v53, %v3586_v59  ;;  %v3874_v14 = vrot.slane %v3822_v47, 7  ;;  %vm9487_vm0 = vmmov %vm9484_vm10  ;;  %vm9489_vm7 = vnez %v9488_v40  ;;  %v9506_v59 = vld [vmem:[#allocation14_spill] sm:$0xff] }
 0x5c2   : > { %4446 = vst.msk [vmem:[%s5749_s8 + $0xe8] sm:$0xff] %vm9487_vm0, %v4267_v25  ;;  %v3623_v6 = vsel %vm9489_vm7, %v8303_v19, %v3585_v10  ;;  %v3624_v61 = vsel %vm9381_vm11, %v8271_v35, %v3587_v54  ;;  %vm9490_vm9 = vmmov %vm9476_vm1  ;;  %v3930_v34 = vsel %vm7582_vm4, %v7829_v11, %v3864_v13  ;;  %vm9491_vm12 = vcmask 1041408   ;;  %v9511_v25 = vld [vmem:[#allocation21_spill] sm:$0xff] }
 0x5c3   : > { %v3668_v37 = vrot.slane %v3623_v6, 7  ;;  %v3670_v16 = vrot.slane %v3624_v61, 7  ;;  %v3875_v36 = vsel %vm9490_vm9, %v3864_v13, %v3874_v14  ;;  %v8443_v53 = vsel %vm9491_vm12, %v3296_v45, 0.0  ;;  %vm9492_vm8 = vmmov %vm9491_vm12 }
 0x5c4   : > { %v8448_v41 = vsel %vm9492_vm8, %v3298_v24, 0.0  ;;  %v3936_v50 = vsel %vm7582_vm4, %v8066_v32, %v3875_v36  ;;  %vm9494_vm11 = vmmov %vm9476_vm1  ;;  %vm9497_vm15 = vnez %v9496_v27  ;;  %v3986_v52 = vrot.slane %v3930_v34, 7 }
 0x5c5   : > { %v3669_v15 = vsel %vm9494_vm11, %v9493_v63, %v3668_v37  ;;  %vm9495_vm10 = vmmov %vm9476_vm1  ;;  %v3719_v45 = vsel %vm9497_vm15, %v8443_v53, %v3668_v37  ;;  %v3720_v20 = vsel %vm9471_vm13, %v8448_v41, %v3670_v16  ;;  %v3987_v29 = vrot.slane %v3936_v50, 7  ;;  %v9513_v37 = vld [vmem:[#allocation23_spill] sm:$0xff] }
 0x5c6   : > { %v3671_v11 = vsel %vm9495_vm10, %v8320_v23, %v3670_v16  ;;  %v3713_v24 = vsel %vm9497_vm15, %v8303_v19, %v3669_v15  ;;  %v3782_v51 = vrot.slane %v3719_v45, 6  ;;  %v3784_v9 = vrot.slane %v3720_v20, 6  ;;  %vm9499_vm1 = vmmov %vm9492_vm8 }
 0x5c7   : > { %v3714_v2 = vsel %vm9471_vm13, %v8271_v35, %v3671_v11  ;;  %v3770_v55 = vrot.slane %v3713_v24, 6  ;;  %vm9500_vm0 = vmmov %vm9499_vm1  ;;  %vm9504_vm12 = vnez %v9503_v38 }
 0x5c8   : > { %v3772_v23 = vrot.slane %v3714_v2, 6  ;;  %vm9501_vm7 = vmmov %vm9500_vm0 }
 0x5c9   : > { %v3771_v22 = vsel %vm9499_vm1, %v9498_v62, %v3770_v55  ;;  %v3783_v48 = vsel %vm9501_vm7, %v3770_v55, %v3782_v51  ;;  %vm9502_vm9 = vmmov %vm9500_vm0  ;;  %vm9512_vm1 = vnez %v9511_v25 }
 0x5ca   : > { %v3773_v30 = vsel %vm9500_vm0, %v3760_v60, %v3772_v23  ;;  %v3785_v58 = vsel %vm9502_vm9, %v3772_v23, %v3784_v9  ;;  %v3827_v4 = vsel %vm9504_vm12, %v8303_v19, %v3771_v22  ;;  %v3833_v1 = vsel %vm9504_vm12, %v8443_v53, %v3783_v48  ;;  %vm9505_vm13 = vmmov %vm9495_vm10 }
 0x5cb   : > { %v3828_v57 = vsel %vm9457_vm2, %v8271_v35, %v3773_v30  ;;  %v3834_v60 = vsel %vm9457_vm2, %v8448_v41, %v3785_v58  ;;  %v3884_v31 = vrot.slane %v3827_v4, 7  ;;  %v3896_v42 = vrot.slane %v3833_v1, 7  ;;  %vm9507_vm8 = vmmov %vm9495_vm10 }
 0x5cc   : > { %v3886_v28 = vrot.slane %v3828_v57, 7  ;;  %v3898_v21 = vrot.slane %v3834_v60, 7  ;;  %v3988_v7 = vsel %vm9505_vm13, %v3986_v52, %v3987_v29  ;;  %vm9508_vm11 = vmmov %vm9507_vm8 }
 0x5cd   : > { %v3885_v0 = vsel %vm9507_vm8, %v9506_v59, %v3884_v31  ;;  %vm9509_vm10 = vmmov %vm9507_vm8  ;;  %v4038_v61 = vsel %vm8156_vm5, %v8066_v32, %v3988_v7 }
 0x5ce   : > { %v3887_v44 = vsel %vm9508_vm11, %v3874_v14, %v3886_v28  ;;  %v3897_v13 = vsel %vm9509_vm10, %v3884_v31, %v3896_v42  ;;  %vm9510_vm15 = vmmov %vm9507_vm8  ;;  %v3941_v12 = vsel %vm9512_vm1, %v8303_v19, %v3885_v0  ;;  %v4074_v45 = vrot.slane %v4038_v61, 7 }
 0x5cf   : > { %v3899_v46 = vsel %vm9510_vm15, %v3886_v28, %v3898_v21  ;;  %v3942_v47 = vsel %vm7582_vm4, %v8271_v35, %v3887_v44  ;;  %v3947_v17 = vsel %vm9512_vm1, %v8443_v53, %v3897_v13  ;;  %v3998_v54 = vrot.slane %v3941_v12, 7  ;;  %vm9514_vm2 = vmmov %vm9507_vm8 }
 0x5d0   : > { %v3948_v10 = vsel %vm7582_vm4, %v8448_v41, %v3899_v46  ;;  %v4000_v14 = vrot.slane %v3942_v47, 7  ;;  %v4010_v40 = vrot.slane %v3947_v17, 7  ;;  %vm9515_vm0 = vmmov %vm9514_vm2  ;;  %vm9519_vm4 = vnez %v9518_v3 }
 0x5d1   : > { %v4012_v6 = vrot.slane %v3948_v10, 7  ;;  %v3999_v16 = vsel %vm9514_vm2, %v9513_v37, %v3998_v54  ;;  %vm9516_vm7 = vmmov %vm9515_vm0  ;;  %v4122_v52 = vsel %vm8202_vm14, %v8066_v32, %v4074_v45 }
 0x5d2   : > { %v4001_v36 = vsel %vm9515_vm0, %v3987_v29, %v4000_v14  ;;  %v4011_v34 = vsel %vm9516_vm7, %v3998_v54, %v4010_v40  ;;  %vm9517_vm9 = vmmov %vm9515_vm0  ;;  %v4043_v63 = vsel %vm9519_vm4, %v8303_v19, %v3999_v16  ;;  %v4158_v30 = vrot.slane %v4122_v52, 7 }
 0x5d3   : > { %v4013_v50 = vsel %vm9517_vm9, %v4000_v14, %v4012_v6  ;;  %v4044_v15 = vsel %vm8156_vm5, %v8271_v35, %v4001_v36  ;;  %v4049_v11 = vsel %vm9519_vm4, %v8443_v53, %v4011_v34  ;;  %v4082_v20 = vrot.slane %v4043_v63, 7  ;;  %vm9520_vm12 = vmmov %vm9515_vm0 }
 0x5d4   : > { %v4050_v27 = vsel %vm8156_vm5, %v8448_v41, %v4013_v50  ;;  %v4084_v24 = vrot.slane %v4044_v15, 7  ;;  %v4094_v2 = vrot.slane %v4049_v11, 7  ;;  %vm9521_vm13 = vmmov %vm9515_vm0  ;;  %vm9524_vm5 = vnez %v9406_v5 }
 0x5d5   : > { %v4096_v51 = vrot.slane %v4050_v27, 7  ;;  %v4083_v9 = vsel %vm9520_vm12, %v8109_v26, %v4082_v20  ;;  %vm9522_vm8 = vmmov %vm9515_vm0  ;;  %v4206_v60 = vsel %vm8206_vm3, %v8066_v32, %v4158_v30 }
 0x5d6   : > { %v4085_v55 = vsel %vm9521_vm13, %v4074_v45, %v4084_v24  ;;  %v4095_v23 = vsel %vm9522_vm8, %v4082_v20, %v4094_v2  ;;  %vm9523_vm11 = vmmov %vm9515_vm0  ;;  %v4127_v8 = vsel %vm9524_vm5, %v8303_v19, %v4083_v9  ;;  %v4250_v7 = vrot.slane %v4206_v60, 2 }
 0x5d7   : > { %v4097_v29 = vsel %vm9523_vm11, %v4084_v24, %v4096_v51  ;;  %v4128_v62 = vsel %vm8202_vm14, %v8271_v35, %v4085_v55  ;;  %v4133_v26 = vsel %vm9524_vm5, %v8443_v53, %v4095_v23  ;;  %v4166_v48 = vrot.slane %v4127_v8, 7  ;;  %vm9525_vm10 = vmmov %vm9515_vm0 }
 0x5d8   : > { %v4134_v22 = vsel %vm8202_vm14, %v8448_v41, %v4097_v29  ;;  %v4168_v58 = vrot.slane %v4128_v62, 7  ;;  %v4178_v38 = vrot.slane %v4133_v26, 7  ;;  %vm9526_vm15 = vmmov %vm9515_vm0  ;;  %vm9529_vm14 = vcmask 1045504  }
 0x5d9   : > { %v4180_v4 = vrot.slane %v4134_v22, 7  ;;  %v4167_v57 = vsel %vm9525_vm10, %v8160_v33, %v4166_v48  ;;  %vm9527_vm1 = vmmov %vm9515_vm0 }
 0x5da   : > { %v4169_v1 = vsel %vm9526_vm15, %v4158_v30, %v4168_v58  ;;  %v4179_v5 = vsel %vm9527_vm1, %v4166_v48, %v4178_v38  ;;  %vm9528_vm2 = vmmov %vm9515_vm0  ;;  %v4211_v31 = vsel %vm9461_vm6, %v8303_v19, %v4167_v57  ;;  %v4247_v19 = vrot.slane %v4205_v43, 2 }
 0x5db   : > { %v4181_v56 = vsel %vm9528_vm2, %v4168_v58, %v4180_v4  ;;  %v4212_v28 = vsel %vm8206_vm3, %v8271_v35, %v4169_v1  ;;  %v4217_v32 = vsel %vm9461_vm6, %v8443_v53, %v4179_v5  ;;  %v4248_v21 = vrot.slane %v4211_v31, 2  ;;  %vm9530_vm0 = vmmov %vm9529_vm14 }
 0x5dc   : > { %v4218_v42 = vsel %vm8206_vm3, %v8448_v41, %v4181_v56  ;;  %v4251_v35 = vrot.slane %v4212_v28, 2  ;;  %v4262_v59 = vrot.slane %v4217_v32, 2  ;;  %vm9531_vm7 = vmmov %vm9530_vm0 }
 0x5dd   : > { %v4264_v0 = vrot.slane %v4218_v42, 2  ;;  %v4249_v44 = vsel %vm9529_vm14, %v4247_v19, %v4248_v21  ;;  %vm9532_vm9 = vmmov %vm9530_vm0 }
 0x5de   : > { %v4252_v53 = vsel %vm9530_vm0, %v4250_v7, %v4251_v35  ;;  %v4263_v49 = vsel %vm9531_vm7, %v4248_v21, %v4262_v59  ;;  %4438 = vst [vmem:[%s5749_s8 + $0xa8] sm:$0xff] %v4249_v44 }
 0x5df   : > { %v4265_v41 = vsel %vm9532_vm9, %v4251_v35, %v4264_v0  ;;  %4439 = vst [vmem:[%s5749_s8 + $0xb0] sm:$0xff] %v4252_v53 }
 0x5e0   : > { %4444 = vst [vmem:[%s5749_s8 + $0xd8] sm:$0xff] %v4263_v49 }
 0x5e1   : > { %4445 = vst [vmem:[%s5749_s8 + $0xe0] sm:$0xff] %v4265_v41 }
 0x5e2   : > { %4450 = vst [vmem:[%s5749_s8 + $0x108] sm:$0x1f] %v4262_v59 }
 0x5e3   : > { %4451 = vst [vmem:[%s5749_s8 + $0x110] sm:$0x1f] %v4264_v0 }
 0x5e4 PF: > { %p16_p4 = scmp.ge.s32.totalorder %s4716_s6, 4   ;;  %s9533_s18 = smov %s4624_s19 }
 0x5e5   : > { %s9534_s19 = smov %s4628_s20  ;;  %s9535_s20 = smov %s4729_s11 }
 0x5e6   : > { %s9536_s21 = smov %s4716_s6  ;;  %18 = sbr.rel (!%p16_p4) target bundleno = 4 (0x4), region = 85 }
 0x5eb   :  { %4329 = vsyncpa [#allocation3], 1 }
 0x5ec   :  { %4331 = vsyncpa [#allocation3 + $0x1], 1 }
 0x5ed   :  { %4332 = vsyncpa [#allocation5], 1 }

</bundles_post_ra>
